<compile_context>
chip_gen: v7x
topology: tpu7x:2x2x1
jax: 0.10.0
libtpu: 0.0.40
codegen_flags: <defaults>
</compile_context>

<pallas_src>
import math
import functools

import jax
import jax.numpy as jnp
from jax import lax
from jax.experimental import pallas as pl
from jax.experimental.pallas import tpu as pltpu


# ----------------------------------------------------------------------------
# Shared per-timestep LSTM cell (weights pre-permuted to gate order i, f, o, g;
# gx_t already contains x_t @ W_ih^T + b_ih + b_hh).
# ----------------------------------------------------------------------------
def _cell_step(gx_t, h_prev, c_prev, whh, H):
    gates = gx_t + jnp.dot(h_prev, whh, preferred_element_type=jnp.float32)
    sig = jax.nn.sigmoid(gates[:, 0:3 * H])      # i | f | o in one contiguous slab
    i_g = sig[:, 0:H]
    f_g = sig[:, H:2 * H]
    o_g = sig[:, 2 * H:3 * H]
    g_g = jnp.tanh(gates[:, 3 * H:4 * H])
    c_new = f_g * c_prev + i_g * g_g
    h_new = o_g * jnp.tanh(c_new)
    return h_new, c_new


# ----------------------------------------------------------------------------
# Kernel A: one bidirectional LSTM layer (intermediate layer).
#   x_ref   : (T*B, Din)  time-major flattened input (row t*B + b)
#   wih_*   : (Din, 4H)   W_ih^T (gate-permuted)
#   whh_*   : (H, 4H)     W_hh^T (gate-permuted)
#   b_*     : (1, 4H)     b_ih + b_hh (gate-permuted)
#   out_ref : (T*B, 2H)   fwd || bwd hidden states, time-major flattened
# ----------------------------------------------------------------------------
def bidir_lstm_kernel(x_ref, wih_f_ref, whh_f_ref, b_f_ref,
                      wih_b_ref, whh_b_ref, b_b_ref,
                      out_ref, gx_f, gx_b, hs_f, hs_b, *, T, B):
    H = whh_f_ref.shape[0]

    # (1) Hoisted input projection: one large MXU matmul per direction.
    x = x_ref[...]
    gx_f[...] = jnp.dot(x, wih_f_ref[...],
                        preferred_element_type=jnp.float32) + b_f_ref[...]
    gx_b[...] = jnp.dot(x, wih_b_ref[...],
                        preferred_element_type=jnp.float32) + b_b_ref[...]

    whh_f = whh_f_ref[...]
    whh_b = whh_b_ref[...]
    zeros = jnp.zeros((B, H), jnp.float32)

    # (2) Fused fwd+bwd recurrence; only the recurrent matmul stays in the loop.
    def body(t, carry):
        h_f, c_f, h_b, c_b = carry
        tb = T - 1 - t
        h_f, c_f = _cell_step(gx_f[pl.ds(t * B, B), :], h_f, c_f, whh_f, H)
        h_b, c_b = _cell_step(gx_b[pl.ds(tb * B, B), :], h_b, c_b, whh_b, H)
        hs_f[pl.ds(t * B, B), :] = h_f
        hs_b[pl.ds(tb * B, B), :] = h_b
        return h_f, c_f, h_b, c_b

    lax.fori_loop(0, T, body, (zeros, zeros, zeros, zeros), unroll=True)

    # (3) fwd || bwd concat via two static lane-slice stores (no jnp.concatenate).
    out_ref[:, 0:H] = hs_f[...]
    out_ref[:, H:2 * H] = hs_b[...]


# ----------------------------------------------------------------------------
# Kernel B: last bidirectional LSTM layer with the Linear(2H->1)+sigmoid head
# fused into the epilogue. Emits a lane-dense (B, T) result directly.
#   wd_f/wd_b : (1, H)  halves of the dense weight (fwd half / bwd half)
#   bd        : (1, 1)  dense bias
#   out_ref   : (B, T)
# ----------------------------------------------------------------------------
def bidir_lstm_head_kernel(x_ref, wih_f_ref, whh_f_ref, b_f_ref,
                           wih_b_ref, whh_b_ref, b_b_ref,
                           wd_f_ref, wd_b_ref, bd_ref,
                           out_ref, gx_f, gx_b, *, T, B):
    H = whh_f_ref.shape[0]

    x = x_ref[...]
    gx_f[...] = jnp.dot(x, wih_f_ref[...],
                        preferred_element_type=jnp.float32) + b_f_ref[...]
    gx_b[...] = jnp.dot(x, wih_b_ref[...],
                        preferred_element_type=jnp.float32) + b_b_ref[...]

    whh_f = whh_f_ref[...]
    whh_b = whh_b_ref[...]
    wd_f = wd_f_ref[...]                                    # (1, H)
    wd_b = wd_b_ref[...]                                    # (1, H)

    col = lax.broadcasted_iota(jnp.int32, (B, T), 1)        # output column index
    zeros_h = jnp.zeros((B, H), jnp.float32)
    zeros_l = jnp.zeros((B, T), jnp.float32)

    def body(t, carry):
        h_f, c_f, h_b, c_b, logits = carry
        tb = T - 1 - t
        h_f, c_f = _cell_step(gx_f[pl.ds(t * B, B), :], h_f, c_f, whh_f, H)
        h_b, c_b = _cell_step(gx_b[pl.ds(tb * B, B), :], h_b, c_b, whh_b, H)
        # Fused dense head: per-step partial logits via VPU mul + lane reduce,
        # scattered into the (B, T) accumulator with an iota mask (no transposes).
        lf = jnp.sum(h_f * wd_f, axis=-1, keepdims=True)    # (B, 1)
        lb = jnp.sum(h_b * wd_b, axis=-1, keepdims=True)    # (B, 1)
        logits = logits + jnp.where(col == t, lf, 0.0) + jnp.where(col == tb, lb, 0.0)
        return h_f, c_f, h_b, c_b, logits

    carry = lax.fori_loop(0, T, body,
                          (zeros_h, zeros_h, zeros_h, zeros_h, zeros_l),
                          unroll=True)
    logits = carry[4]
    out_ref[...] = jax.nn.sigmoid(logits + bd_ref[...])


# ----------------------------------------------------------------------------
# pallas_call wrappers
# ----------------------------------------------------------------------------
def _bidir_lstm_layer(x2d, T, B, p_f, p_b):
    wih_f, whh_f, b_f = p_f
    wih_b, whh_b, b_b = p_b
    H = whh_f.shape[0]
    kernel = functools.partial(bidir_lstm_kernel, T=T, B=B)
    return pl.pallas_call(
        kernel,
        out_shape=jax.ShapeDtypeStruct((T * B, 2 * H), jnp.float32),
        in_specs=[pl.BlockSpec(memory_space=pltpu.MemorySpace.VMEM)] * 7,
        out_specs=pl.BlockSpec(memory_space=pltpu.MemorySpace.VMEM),
        scratch_shapes=[
            pltpu.VMEM((T * B, 4 * H), jnp.float32),   # gx_f
            pltpu.VMEM((T * B, 4 * H), jnp.float32),   # gx_b
            pltpu.VMEM((T * B, H), jnp.float32),       # hs_f
            pltpu.VMEM((T * B, H), jnp.float32),       # hs_b
        ],
    )(x2d, wih_f, whh_f, b_f, wih_b, whh_b, b_b)


def _bidir_lstm_head_layer(x2d, T, B, p_f, p_b, wd_f, wd_b, bd):
    wih_f, whh_f, b_f = p_f
    wih_b, whh_b, b_b = p_b
    H = whh_f.shape[0]
    kernel = functools.partial(bidir_lstm_head_kernel, T=T, B=B)
    return pl.pallas_call(
        kernel,
        out_shape=jax.ShapeDtypeStruct((B, T), jnp.float32),
        in_specs=[pl.BlockSpec(memory_space=pltpu.MemorySpace.VMEM)] * 10,
        out_specs=pl.BlockSpec(memory_space=pltpu.MemorySpace.VMEM),
        scratch_shapes=[
            pltpu.VMEM((T * B, 4 * H), jnp.float32),   # gx_f
            pltpu.VMEM((T * B, 4 * H), jnp.float32),   # gx_b
        ],
    )(x2d, wih_f, whh_f, b_f, wih_b, whh_b, b_b, wd_f, wd_b, bd)


@functools.partial(jax.jit, static_argnames=("num_layers",))
def full_context_arc_forward(x, params, *, num_layers):
    """x: (B, T, vector_dim) float32 -> (B, T) float32."""
    B, T, D = x.shape
    # batch-first -> time-major, flattened (row t*B + b): one cheap XLA transpose
    # up front, then everything stays in this layout across all layers.
    h = jnp.transpose(x, (1, 0, 2)).reshape(T * B, D)
    out = None
    for layer in range(num_layers):
        p_f, p_b = params["lstm"][layer]
        if layer + 1 < num_layers:
            h = _bidir_lstm_layer(h, T, B, p_f, p_b)
        else:
            wd_f, wd_b, bd = params["dense"]
            out = _bidir_lstm_head_layer(h, T, B, p_f, p_b, wd_f, wd_b, bd)
    return out


# ----------------------------------------------------------------------------
# Parameters: raw (PyTorch layout, gate order i,f,g,o) and kernel-layout prep
# (transpose, gate reorder to i,f,o,g, bias fusion, dense weight split).
# ----------------------------------------------------------------------------
def init_raw_params(key, vector_dim, hidden_size, num_layers):
    stdv = 1.0 / math.sqrt(hidden_size)
    lstm = []
    for layer in range(num_layers):
        in_dim = vector_dim if layer == 0 else 2 * hidden_size
        dirs = []
        for _ in range(2):                       # forward, backward
            key, k1, k2, k3, k4 = jax.random.split(key, 5)
            w_ih = jax.random.uniform(k1, (4 * hidden_size, in_dim), jnp.float32, -stdv, stdv)
            w_hh = jax.random.uniform(k2, (4 * hidden_size, hidden_size), jnp.float32, -stdv, stdv)
            b_ih = jax.random.uniform(k3, (4 * hidden_size,), jnp.float32, -stdv, stdv)
            b_hh = jax.random.uniform(k4, (4 * hidden_size,), jnp.float32, -stdv, stdv)
            dirs.append((w_ih, w_hh, b_ih, b_hh))
        lstm.append(tuple(dirs))
    key, k1, k2 = jax.random.split(key, 3)
    dstdv = 1.0 / math.sqrt(2 * hidden_size)
    w = jax.random.uniform(k1, (1, 2 * hidden_size), jnp.float32, -dstdv, dstdv)
    b = jax.random.uniform(k2, (1,), jnp.float32, -dstdv, dstdv)
    return {"lstm": tuple(lstm), "dense": (w, b)}


def _reorder_ifgo_to_ifog(a):
    """Reorder gate blocks along axis 0 from (i,f,g,o) to (i,f,o,g)."""
    H = a.shape[0] // 4
    return jnp.concatenate([a[:2 * H], a[3 * H:], a[2 * H:3 * H]], axis=0)


def prepare_kernel_params(raw):
    lstm = []
    for layer_raw in raw["lstm"]:
        dirs = []
        for (w_ih, w_hh, b_ih, b_hh) in layer_raw:
            wih_t = _reorder_ifgo_to_ifog(w_ih).T                        # (in, 4H)
            whh_t = _reorder_ifgo_to_ifog(w_hh).T                        # (H, 4H)
            b = _reorder_ifgo_to_ifog(b_ih + b_hh).reshape(1, -1)        # (1, 4H)
            dirs.append((wih_t, whh_t, b))
        lstm.append(tuple(dirs))
    w, b = raw["dense"]                                                  # (1, 2H), (1,)
    H = w.shape[1] // 2
    dense = (w[:, :H], w[:, H:], b.reshape(1, 1))
    return {"lstm": tuple(lstm), "dense": dense}


# ----------------------------------------------------------------------------
# Pure-JAX reference using raw PyTorch-layout params (gate order i,f,g,o).
# ----------------------------------------------------------------------------
def reference_forward(x, raw, num_layers, hidden_size):
    B, T, _ = x.shape
    H = hidden_size
    h_seq = x
    for layer in range(num_layers):
        dir_outs = []
        for d in range(2):
            w_ih, w_hh, b_ih, b_hh = raw["lstm"][layer][d]
            seq = h_seq if d == 0 else h_seq[:, ::-1, :]
            h_t = jnp.zeros((B, H), jnp.float32)
            c_t = jnp.zeros((B, H), jnp.float32)
            outs = []
            for t in range(T):
                gates = seq[:, t, :] @ w_ih.T + h_t @ w_hh.T + b_ih + b_hh
                i_g = jax.nn.sigmoid(gates[:, 0 * H:1 * H])
                f_g = jax.nn.sigmoid(gates[:, 1 * H:2 * H])
                g_g = jnp.tanh(gates[:, 2 * H:3 * H])
                o_g = jax.nn.sigmoid(gates[:, 3 * H:4 * H])
                c_t = f_g * c_t + i_g * g_g
                h_t = o_g * jnp.tanh(c_t)
                outs.append(h_t)
            out = jnp.stack(outs, axis=1)
            if d == 1:
                out = out[:, ::-1, :]
            dir_outs.append(out)
        h_seq = jnp.concatenate(dir_outs, axis=-1)
    w, b = raw["dense"]
    logits = h_seq @ w.T + b                        # (B, T, 1)
    return jax.nn.sigmoid(logits[..., 0])           # (B, T)


# ----------------------------------------------------------------------------
if __name__ == "__main__":
    B, T = 2, 8
    vector_dim, hidden_size, num_layers = 32, 32, 2

    key = jax.random.PRNGKey(0)
    key, xk = jax.random.split(key)
    x = jax.random.normal(xk, (B, T, vector_dim), jnp.float32)

    raw_params = init_raw_params(key, vector_dim, hidden_size, num_layers)
    params = prepare_kernel_params(raw_params)

    out = full_context_arc_forward(x, params, num_layers=num_layers)
    out = jax.block_until_ready(out)

    ref = reference_forward(x, raw_params, num_layers, hidden_size)
    assert out.shape == (B, T), out.shape
    assert jnp.allclose(out, ref, atol=2e-3), (
        f"mismatch: max abs diff {jnp.max(jnp.abs(out - ref))}"
    )

    print("KERNEL_OK")
</pallas_src>

<mosaic_0001>
module attributes {stable_mosaic.version = 11 : i64} {
  func.func @bidir_lstm_kernel(%arg0: memref<16x32xf32, #tpu.memory_space<vmem>>, %arg1: memref<32x128xf32, #tpu.memory_space<vmem>>, %arg2: memref<32x128xf32, #tpu.memory_space<vmem>>, %arg3: memref<1x128xf32, #tpu.memory_space<vmem>>, %arg4: memref<32x128xf32, #tpu.memory_space<vmem>>, %arg5: memref<32x128xf32, #tpu.memory_space<vmem>>, %arg6: memref<1x128xf32, #tpu.memory_space<vmem>>, %arg7: memref<16x64xf32, #tpu.memory_space<vmem>>, %arg8: memref<16x128xf32, #tpu.memory_space<vmem>>, %arg9: memref<16x128xf32, #tpu.memory_space<vmem>>, %arg10: memref<16x32xf32, #tpu.memory_space<vmem>>, %arg11: memref<16x32xf32, #tpu.memory_space<vmem>>) attributes {dimension_semantics = [], scalar_prefetch = 0 : i64, scratch_operands = 4 : i64, tpu.core_type = #tpu.core_type<tc>} {
    %c0 = arith.constant 0 : index
    %c0_0 = arith.constant 0 : index
    %0 = vector.load %arg0[%c0, %c0_0] : memref<16x32xf32, #tpu.memory_space<vmem>>, vector<16x32xf32>
    %c0_1 = arith.constant 0 : index
    %c0_2 = arith.constant 0 : index
    %1 = vector.load %arg1[%c0_1, %c0_2] : memref<32x128xf32, #tpu.memory_space<vmem>>, vector<32x128xf32>
    %cst = arith.constant dense<0.000000e+00> : vector<16x128xf32>
    %2 = tpu.matmul %0, %1, %cst {dimension_numbers = #tpu.dot_dimension_numbers<[1], [0], [0], [1], [0, 0, 1, 1], [], []>} : vector<16x32xf32>, vector<32x128xf32>, vector<16x128xf32> -> vector<16x128xf32>
    %c0_3 = arith.constant 0 : index
    %c0_4 = arith.constant 0 : index
    %3 = vector.load %arg3[%c0_3, %c0_4] : memref<1x128xf32, #tpu.memory_space<vmem>>, vector<1x128xf32>
    %4 = vector.broadcast %3 : vector<1x128xf32> to vector<16x128xf32>
    %5 = arith.addf %2, %4 : vector<16x128xf32>
    %c0_5 = arith.constant 0 : index
    %c0_6 = arith.constant 0 : index
    %6 = vector.load %arg8[%c0_5, %c0_6] : memref<16x128xf32, #tpu.memory_space<vmem>>, vector<16x128xf32>
    tpu.vector_store %arg8[%c0_5, %c0_6], %5 {strides = array<i32>} : memref<16x128xf32, #tpu.memory_space<vmem>>, vector<16x128xf32>,
    %c0_7 = arith.constant 0 : index
    %c0_8 = arith.constant 0 : index
    %7 = vector.load %arg4[%c0_7, %c0_8] : memref<32x128xf32, #tpu.memory_space<vmem>>, vector<32x128xf32>
    %cst_9 = arith.constant dense<0.000000e+00> : vector<16x128xf32>
    %8 = tpu.matmul %0, %7, %cst_9 {dimension_numbers = #tpu.dot_dimension_numbers<[1], [0], [0], [1], [0, 0, 1, 1], [], []>} : vector<16x32xf32>, vector<32x128xf32>, vector<16x128xf32> -> vector<16x128xf32>
    %c0_10 = arith.constant 0 : index
    %c0_11 = arith.constant 0 : index
    %9 = vector.load %arg6[%c0_10, %c0_11] : memref<1x128xf32, #tpu.memory_space<vmem>>, vector<1x128xf32>
    %10 = vector.broadcast %9 : vector<1x128xf32> to vector<16x128xf32>
    %11 = arith.addf %8, %10 : vector<16x128xf32>
    %c0_12 = arith.constant 0 : index
    %c0_13 = arith.constant 0 : index
    %12 = vector.load %arg9[%c0_12, %c0_13] : memref<16x128xf32, #tpu.memory_space<vmem>>, vector<16x128xf32>
    tpu.vector_store %arg9[%c0_12, %c0_13], %11 {strides = array<i32>} : memref<16x128xf32, #tpu.memory_space<vmem>>, vector<16x128xf32>,
    %c0_14 = arith.constant 0 : index
    %c0_15 = arith.constant 0 : index
    %13 = vector.load %arg2[%c0_14, %c0_15] : memref<32x128xf32, #tpu.memory_space<vmem>>, vector<32x128xf32>
    %c0_16 = arith.constant 0 : index
    %c0_17 = arith.constant 0 : index
    %14 = vector.load %arg5[%c0_16, %c0_17] : memref<32x128xf32, #tpu.memory_space<vmem>>, vector<32x128xf32>
    %cst_18 = arith.constant 0.000000e+00 : f32
    %15 = vector.broadcast %cst_18 : f32 to vector<2x32xf32>
    %c0_i32 = arith.constant 0 : i32
    %c7_i32 = arith.constant 7 : i32
    %16 = arith.subi %c7_i32, %c0_i32 : i32
    %c2_i32 = arith.constant 2 : i32
    %17 = arith.muli %c0_i32, %c2_i32 : i32
    %18 = arith.index_cast %17 : i32 to index
    %c0_19 = arith.constant 0 : index
    %19 = vector.load %arg8[%18, %c0_19] : memref<16x128xf32, #tpu.memory_space<vmem>>, vector<2x128xf32>
    %cst_20 = arith.constant dense<0.000000e+00> : vector<2x128xf32>
    %20 = tpu.matmul %15, %13, %cst_20 {dimension_numbers = #tpu.dot_dimension_numbers<[1], [0], [0], [1], [0, 0, 1, 1], [], []>} : vector<2x32xf32>, vector<32x128xf32>, vector<2x128xf32> -> vector<2x128xf32>
    %21 = arith.addf %19, %20 : vector<2x128xf32>
    %22 = vector.extract_strided_slice %21 {offsets = [0, 0], sizes = [2, 96], strides = [1, 1]} : vector<2x128xf32> to vector<2x96xf32>
    %23 = arith.negf %22 : vector<2x96xf32>
    %24 = math.exp %23 : vector<2x96xf32>
    %cst_21 = arith.constant 1.000000e+00 : f32
    %25 = vector.broadcast %cst_21 : f32 to vector<2x96xf32>
    %26 = arith.addf %25, %24 : vector<2x96xf32>
    %27 = arith.divf %25, %26 : vector<2x96xf32>
    %28 = vector.extract_strided_slice %27 {offsets = [0, 0], sizes = [2, 32], strides = [1, 1]} : vector<2x96xf32> to vector<2x32xf32>
    %29 = vector.extract_strided_slice %27 {offsets = [0, 32], sizes = [2, 32], strides = [1, 1]} : vector<2x96xf32> to vector<2x32xf32>
    %30 = vector.extract_strided_slice %27 {offsets = [0, 64], sizes = [2, 32], strides = [1, 1]} : vector<2x96xf32> to vector<2x32xf32>
    %31 = vector.extract_strided_slice %21 {offsets = [0, 96], sizes = [2, 32], strides = [1, 1]} : vector<2x128xf32> to vector<2x32xf32>
    %32 = math.tanh %31 : vector<2x32xf32>
    %33 = arith.mulf %29, %15 : vector<2x32xf32>
    %34 = arith.mulf %28, %32 : vector<2x32xf32>
    %35 = arith.addf %33, %34 : vector<2x32xf32>
    %36 = math.tanh %35 : vector<2x32xf32>
    %37 = arith.mulf %30, %36 : vector<2x32xf32>
    %c2_i32_22 = arith.constant 2 : i32
    %38 = arith.muli %16, %c2_i32_22 : i32
    %39 = arith.index_cast %38 : i32 to index
    %c0_23 = arith.constant 0 : index
    %40 = vector.load %arg9[%39, %c0_23] : memref<16x128xf32, #tpu.memory_space<vmem>>, vector<2x128xf32>
    %cst_24 = arith.constant dense<0.000000e+00> : vector<2x128xf32>
    %41 = tpu.matmul %15, %14, %cst_24 {dimension_numbers = #tpu.dot_dimension_numbers<[1], [0], [0], [1], [0, 0, 1, 1], [], []>} : vector<2x32xf32>, vector<32x128xf32>, vector<2x128xf32> -> vector<2x128xf32>
    %42 = arith.addf %40, %41 : vector<2x128xf32>
    %43 = vector.extract_strided_slice %42 {offsets = [0, 0], sizes = [2, 96], strides = [1, 1]} : vector<2x128xf32> to vector<2x96xf32>
    %44 = arith.negf %43 : vector<2x96xf32>
    %45 = math.exp %44 : vector<2x96xf32>
    %cst_25 = arith.constant 1.000000e+00 : f32
    %46 = vector.broadcast %cst_25 : f32 to vector<2x96xf32>
    %47 = arith.addf %46, %45 : vector<2x96xf32>
    %48 = arith.divf %46, %47 : vector<2x96xf32>
    %49 = vector.extract_strided_slice %48 {offsets = [0, 0], sizes = [2, 32], strides = [1, 1]} : vector<2x96xf32> to vector<2x32xf32>
    %50 = vector.extract_strided_slice %48 {offsets = [0, 32], sizes = [2, 32], strides = [1, 1]} : vector<2x96xf32> to vector<2x32xf32>
    %51 = vector.extract_strided_slice %48 {offsets = [0, 64], sizes = [2, 32], strides = [1, 1]} : vector<2x96xf32> to vector<2x32xf32>
    %52 = vector.extract_strided_slice %42 {offsets = [0, 96], sizes = [2, 32], strides = [1, 1]} : vector<2x128xf32> to vector<2x32xf32>
    %53 = math.tanh %52 : vector<2x32xf32>
    %54 = arith.mulf %50, %15 : vector<2x32xf32>
    %55 = arith.mulf %49, %53 : vector<2x32xf32>
    %56 = arith.addf %54, %55 : vector<2x32xf32>
    %57 = math.tanh %56 : vector<2x32xf32>
    %58 = arith.mulf %51, %57 : vector<2x32xf32>
    %c2_i32_26 = arith.constant 2 : i32
    %59 = arith.muli %c0_i32, %c2_i32_26 : i32
    %60 = arith.index_cast %59 : i32 to index
    %c0_27 = arith.constant 0 : index
    %61 = vector.load %arg10[%60, %c0_27] : memref<16x32xf32, #tpu.memory_space<vmem>>, vector<2x32xf32>
    tpu.vector_store %arg10[%60, %c0_27], %37 {strides = array<i32>} : memref<16x32xf32, #tpu.memory_space<vmem>>, vector<2x32xf32>,
    %c2_i32_28 = arith.constant 2 : i32
    %62 = arith.muli %16, %c2_i32_28 : i32
    %63 = arith.index_cast %62 : i32 to index
    %c0_29 = arith.constant 0 : index
    %64 = vector.load %arg11[%63, %c0_29] : memref<16x32xf32, #tpu.memory_space<vmem>>, vector<2x32xf32>
    tpu.vector_store %arg11[%63, %c0_29], %58 {strides = array<i32>} : memref<16x32xf32, #tpu.memory_space<vmem>>, vector<2x32xf32>,
    %c1_i32 = arith.constant 1 : i32
    %c7_i32_30 = arith.constant 7 : i32
    %65 = arith.subi %c7_i32_30, %c1_i32 : i32
    %c2_i32_31 = arith.constant 2 : i32
    %66 = arith.muli %c1_i32, %c2_i32_31 : i32
    %67 = arith.index_cast %66 : i32 to index
    %c0_32 = arith.constant 0 : index
    %68 = vector.load %arg8[%67, %c0_32] : memref<16x128xf32, #tpu.memory_space<vmem>>, vector<2x128xf32>
    %cst_33 = arith.constant dense<0.000000e+00> : vector<2x128xf32>
    %69 = tpu.matmul %37, %13, %cst_33 {dimension_numbers = #tpu.dot_dimension_numbers<[1], [0], [0], [1], [0, 0, 1, 1], [], []>} : vector<2x32xf32>, vector<32x128xf32>, vector<2x128xf32> -> vector<2x128xf32>
    %70 = arith.addf %68, %69 : vector<2x128xf32>
    %71 = vector.extract_strided_slice %70 {offsets = [0, 0], sizes = [2, 96], strides = [1, 1]} : vector<2x128xf32> to vector<2x96xf32>
    %72 = arith.negf %71 : vector<2x96xf32>
    %73 = math.exp %72 : vector<2x96xf32>
    %cst_34 = arith.constant 1.000000e+00 : f32
    %74 = vector.broadcast %cst_34 : f32 to vector<2x96xf32>
    %75 = arith.addf %74, %73 : vector<2x96xf32>
    %76 = arith.divf %74, %75 : vector<2x96xf32>
    %77 = vector.extract_strided_slice %76 {offsets = [0, 0], sizes = [2, 32], strides = [1, 1]} : vector<2x96xf32> to vector<2x32xf32>
    %78 = vector.extract_strided_slice %76 {offsets = [0, 32], sizes = [2, 32], strides = [1, 1]} : vector<2x96xf32> to vector<2x32xf32>
    %79 = vector.extract_strided_slice %76 {offsets = [0, 64], sizes = [2, 32], strides = [1, 1]} : vector<2x96xf32> to vector<2x32xf32>
    %80 = vector.extract_strided_slice %70 {offsets = [0, 96], sizes = [2, 32], strides = [1, 1]} : vector<2x128xf32> to vector<2x32xf32>
    %81 = math.tanh %80 : vector<2x32xf32>
    %82 = arith.mulf %78, %35 : vector<2x32xf32>
    %83 = arith.mulf %77, %81 : vector<2x32xf32>
    %84 = arith.addf %82, %83 : vector<2x32xf32>
    %85 = math.tanh %84 : vector<2x32xf32>
    %86 = arith.mulf %79, %85 : vector<2x32xf32>
    %c2_i32_35 = arith.constant 2 : i32
    %87 = arith.muli %65, %c2_i32_35 : i32
    %88 = arith.index_cast %87 : i32 to index
    %c0_36 = arith.constant 0 : index
    %89 = vector.load %arg9[%88, %c0_36] : memref<16x128xf32, #tpu.memory_space<vmem>>, vector<2x128xf32>
    %cst_37 = arith.constant dense<0.000000e+00> : vector<2x128xf32>
    %90 = tpu.matmul %58, %14, %cst_37 {dimension_numbers = #tpu.dot_dimension_numbers<[1], [0], [0], [1], [0, 0, 1, 1], [], []>} : vector<2x32xf32>, vector<32x128xf32>, vector<2x128xf32> -> vector<2x128xf32>
    %91 = arith.addf %89, %90 : vector<2x128xf32>
    %92 = vector.extract_strided_slice %91 {offsets = [0, 0], sizes = [2, 96], strides = [1, 1]} : vector<2x128xf32> to vector<2x96xf32>
    %93 = arith.negf %92 : vector<2x96xf32>
    %94 = math.exp %93 : vector<2x96xf32>
    %cst_38 = arith.constant 1.000000e+00 : f32
    %95 = vector.broadcast %cst_38 : f32 to vector<2x96xf32>
    %96 = arith.addf %95, %94 : vector<2x96xf32>
    %97 = arith.divf %95, %96 : vector<2x96xf32>
    %98 = vector.extract_strided_slice %97 {offsets = [0, 0], sizes = [2, 32], strides = [1, 1]} : vector<2x96xf32> to vector<2x32xf32>
    %99 = vector.extract_strided_slice %97 {offsets = [0, 32], sizes = [2, 32], strides = [1, 1]} : vector<2x96xf32> to vector<2x32xf32>
    %100 = vector.extract_strided_slice %97 {offsets = [0, 64], sizes = [2, 32], strides = [1, 1]} : vector<2x96xf32> to vector<2x32xf32>
    %101 = vector.extract_strided_slice %91 {offsets = [0, 96], sizes = [2, 32], strides = [1, 1]} : vector<2x128xf32> to vector<2x32xf32>
    %102 = math.tanh %101 : vector<2x32xf32>
    %103 = arith.mulf %99, %56 : vector<2x32xf32>
    %104 = arith.mulf %98, %102 : vector<2x32xf32>
    %105 = arith.addf %103, %104 : vector<2x32xf32>
    %106 = math.tanh %105 : vector<2x32xf32>
    %107 = arith.mulf %100, %106 : vector<2x32xf32>
    %c2_i32_39 = arith.constant 2 : i32
    %108 = arith.muli %c1_i32, %c2_i32_39 : i32
    %109 = arith.index_cast %108 : i32 to index
    %c0_40 = arith.constant 0 : index
    %110 = vector.load %arg10[%109, %c0_40] : memref<16x32xf32, #tpu.memory_space<vmem>>, vector<2x32xf32>
    tpu.vector_store %arg10[%109, %c0_40], %86 {strides = array<i32>} : memref<16x32xf32, #tpu.memory_space<vmem>>, vector<2x32xf32>,
    %c2_i32_41 = arith.constant 2 : i32
    %111 = arith.muli %65, %c2_i32_41 : i32
    %112 = arith.index_cast %111 : i32 to index
    %c0_42 = arith.constant 0 : index
    %113 = vector.load %arg11[%112, %c0_42] : memref<16x32xf32, #tpu.memory_space<vmem>>, vector<2x32xf32>
    tpu.vector_store %arg11[%112, %c0_42], %107 {strides = array<i32>} : memref<16x32xf32, #tpu.memory_space<vmem>>, vector<2x32xf32>,
    %c2_i32_43 = arith.constant 2 : i32
    %c7_i32_44 = arith.constant 7 : i32
    %114 = arith.subi %c7_i32_44, %c2_i32_43 : i32
    %c2_i32_45 = arith.constant 2 : i32
    %115 = arith.muli %c2_i32_43, %c2_i32_45 : i32
    %116 = arith.index_cast %115 : i32 to index
    %c0_46 = arith.constant 0 : index
    %117 = vector.load %arg8[%116, %c0_46] : memref<16x128xf32, #tpu.memory_space<vmem>>, vector<2x128xf32>
    %cst_47 = arith.constant dense<0.000000e+00> : vector<2x128xf32>
    %118 = tpu.matmul %86, %13, %cst_47 {dimension_numbers = #tpu.dot_dimension_numbers<[1], [0], [0], [1], [0, 0, 1, 1], [], []>} : vector<2x32xf32>, vector<32x128xf32>, vector<2x128xf32> -> vector<2x128xf32>
    %119 = arith.addf %117, %118 : vector<2x128xf32>
    %120 = vector.extract_strided_slice %119 {offsets = [0, 0], sizes = [2, 96], strides = [1, 1]} : vector<2x128xf32> to vector<2x96xf32>
    %121 = arith.negf %120 : vector<2x96xf32>
    %122 = math.exp %121 : vector<2x96xf32>
    %cst_48 = arith.constant 1.000000e+00 : f32
    %123 = vector.broadcast %cst_48 : f32 to vector<2x96xf32>
    %124 = arith.addf %123, %122 : vector<2x96xf32>
    %125 = arith.divf %123, %124 : vector<2x96xf32>
    %126 = vector.extract_strided_slice %125 {offsets = [0, 0], sizes = [2, 32], strides = [1, 1]} : vector<2x96xf32> to vector<2x32xf32>
    %127 = vector.extract_strided_slice %125 {offsets = [0, 32], sizes = [2, 32], strides = [1, 1]} : vector<2x96xf32> to vector<2x32xf32>
    %128 = vector.extract_strided_slice %125 {offsets = [0, 64], sizes = [2, 32], strides = [1, 1]} : vector<2x96xf32> to vector<2x32xf32>
    %129 = vector.extract_strided_slice %119 {offsets = [0, 96], sizes = [2, 32], strides = [1, 1]} : vector<2x128xf32> to vector<2x32xf32>
    %130 = math.tanh %129 : vector<2x32xf32>
    %131 = arith.mulf %127, %84 : vector<2x32xf32>
    %132 = arith.mulf %126, %130 : vector<2x32xf32>
    %133 = arith.addf %131, %132 : vector<2x32xf32>
    %134 = math.tanh %133 : vector<2x32xf32>
    %135 = arith.mulf %128, %134 : vector<2x32xf32>
    %c2_i32_49 = arith.constant 2 : i32
    %136 = arith.muli %114, %c2_i32_49 : i32
    %137 = arith.index_cast %136 : i32 to index
    %c0_50 = arith.constant 0 : index
    %138 = vector.load %arg9[%137, %c0_50] : memref<16x128xf32, #tpu.memory_space<vmem>>, vector<2x128xf32>
    %cst_51 = arith.constant dense<0.000000e+00> : vector<2x128xf32>
    %139 = tpu.matmul %107, %14, %cst_51 {dimension_numbers = #tpu.dot_dimension_numbers<[1], [0], [0], [1], [0, 0, 1, 1], [], []>} : vector<2x32xf32>, vector<32x128xf32>, vector<2x128xf32> -> vector<2x128xf32>
    %140 = arith.addf %138, %139 : vector<2x128xf32>
    %141 = vector.extract_strided_slice %140 {offsets = [0, 0], sizes = [2, 96], strides = [1, 1]} : vector<2x128xf32> to vector<2x96xf32>
    %142 = arith.negf %141 : vector<2x96xf32>
    %143 = math.exp %142 : vector<2x96xf32>
    %cst_52 = arith.constant 1.000000e+00 : f32
    %144 = vector.broadcast %cst_52 : f32 to vector<2x96xf32>
    %145 = arith.addf %144, %143 : vector<2x96xf32>
    %146 = arith.divf %144, %145 : vector<2x96xf32>
    %147 = vector.extract_strided_slice %146 {offsets = [0, 0], sizes = [2, 32], strides = [1, 1]} : vector<2x96xf32> to vector<2x32xf32>
    %148 = vector.extract_strided_slice %146 {offsets = [0, 32], sizes = [2, 32], strides = [1, 1]} : vector<2x96xf32> to vector<2x32xf32>
    %149 = vector.extract_strided_slice %146 {offsets = [0, 64], sizes = [2, 32], strides = [1, 1]} : vector<2x96xf32> to vector<2x32xf32>
    %150 = vector.extract_strided_slice %140 {offsets = [0, 96], sizes = [2, 32], strides = [1, 1]} : vector<2x128xf32> to vector<2x32xf32>
    %151 = math.tanh %150 : vector<2x32xf32>
    %152 = arith.mulf %148, %105 : vector<2x32xf32>
    %153 = arith.mulf %147, %151 : vector<2x32xf32>
    %154 = arith.addf %152, %153 : vector<2x32xf32>
    %155 = math.tanh %154 : vector<2x32xf32>
    %156 = arith.mulf %149, %155 : vector<2x32xf32>
    %c2_i32_53 = arith.constant 2 : i32
    %157 = arith.muli %c2_i32_43, %c2_i32_53 : i32
    %158 = arith.index_cast %157 : i32 to index
    %c0_54 = arith.constant 0 : index
    %159 = vector.load %arg10[%158, %c0_54] : memref<16x32xf32, #tpu.memory_space<vmem>>, vector<2x32xf32>
    tpu.vector_store %arg10[%158, %c0_54], %135 {strides = array<i32>} : memref<16x32xf32, #tpu.memory_space<vmem>>, vector<2x32xf32>,
    %c2_i32_55 = arith.constant 2 : i32
    %160 = arith.muli %114, %c2_i32_55 : i32
    %161 = arith.index_cast %160 : i32 to index
    %c0_56 = arith.constant 0 : index
    %162 = vector.load %arg11[%161, %c0_56] : memref<16x32xf32, #tpu.memory_space<vmem>>, vector<2x32xf32>
    tpu.vector_store %arg11[%161, %c0_56], %156 {strides = array<i32>} : memref<16x32xf32, #tpu.memory_space<vmem>>, vector<2x32xf32>,
    %c3_i32 = arith.constant 3 : i32
    %c7_i32_57 = arith.constant 7 : i32
    %163 = arith.subi %c7_i32_57, %c3_i32 : i32
    %c2_i32_58 = arith.constant 2 : i32
    %164 = arith.muli %c3_i32, %c2_i32_58 : i32
    %165 = arith.index_cast %164 : i32 to index
    %c0_59 = arith.constant 0 : index
    %166 = vector.load %arg8[%165, %c0_59] : memref<16x128xf32, #tpu.memory_space<vmem>>, vector<2x128xf32>
    %cst_60 = arith.constant dense<0.000000e+00> : vector<2x128xf32>
    %167 = tpu.matmul %135, %13, %cst_60 {dimension_numbers = #tpu.dot_dimension_numbers<[1], [0], [0], [1], [0, 0, 1, 1], [], []>} : vector<2x32xf32>, vector<32x128xf32>, vector<2x128xf32> -> vector<2x128xf32>
    %168 = arith.addf %166, %167 : vector<2x128xf32>
    %169 = vector.extract_strided_slice %168 {offsets = [0, 0], sizes = [2, 96], strides = [1, 1]} : vector<2x128xf32> to vector<2x96xf32>
    %170 = arith.negf %169 : vector<2x96xf32>
    %171 = math.exp %170 : vector<2x96xf32>
    %cst_61 = arith.constant 1.000000e+00 : f32
    %172 = vector.broadcast %cst_61 : f32 to vector<2x96xf32>
    %173 = arith.addf %172, %171 : vector<2x96xf32>
    %174 = arith.divf %172, %173 : vector<2x96xf32>
    %175 = vector.extract_strided_slice %174 {offsets = [0, 0], sizes = [2, 32], strides = [1, 1]} : vector<2x96xf32> to vector<2x32xf32>
    %176 = vector.extract_strided_slice %174 {offsets = [0, 32], sizes = [2, 32], strides = [1, 1]} : vector<2x96xf32> to vector<2x32xf32>
    %177 = vector.extract_strided_slice %174 {offsets = [0, 64], sizes = [2, 32], strides = [1, 1]} : vector<2x96xf32> to vector<2x32xf32>
    %178 = vector.extract_strided_slice %168 {offsets = [0, 96], sizes = [2, 32], strides = [1, 1]} : vector<2x128xf32> to vector<2x32xf32>
    %179 = math.tanh %178 : vector<2x32xf32>
    %180 = arith.mulf %176, %133 : vector<2x32xf32>
    %181 = arith.mulf %175, %179 : vector<2x32xf32>
    %182 = arith.addf %180, %181 : vector<2x32xf32>
    %183 = math.tanh %182 : vector<2x32xf32>
    %184 = arith.mulf %177, %183 : vector<2x32xf32>
    %c2_i32_62 = arith.constant 2 : i32
    %185 = arith.muli %163, %c2_i32_62 : i32
    %186 = arith.index_cast %185 : i32 to index
    %c0_63 = arith.constant 0 : index
    %187 = vector.load %arg9[%186, %c0_63] : memref<16x128xf32, #tpu.memory_space<vmem>>, vector<2x128xf32>
    %cst_64 = arith.constant dense<0.000000e+00> : vector<2x128xf32>
    %188 = tpu.matmul %156, %14, %cst_64 {dimension_numbers = #tpu.dot_dimension_numbers<[1], [0], [0], [1], [0, 0, 1, 1], [], []>} : vector<2x32xf32>, vector<32x128xf32>, vector<2x128xf32> -> vector<2x128xf32>
    %189 = arith.addf %187, %188 : vector<2x128xf32>
    %190 = vector.extract_strided_slice %189 {offsets = [0, 0], sizes = [2, 96], strides = [1, 1]} : vector<2x128xf32> to vector<2x96xf32>
    %191 = arith.negf %190 : vector<2x96xf32>
    %192 = math.exp %191 : vector<2x96xf32>
    %cst_65 = arith.constant 1.000000e+00 : f32
    %193 = vector.broadcast %cst_65 : f32 to vector<2x96xf32>
    %194 = arith.addf %193, %192 : vector<2x96xf32>
    %195 = arith.divf %193, %194 : vector<2x96xf32>
    %196 = vector.extract_strided_slice %195 {offsets = [0, 0], sizes = [2, 32], strides = [1, 1]} : vector<2x96xf32> to vector<2x32xf32>
    %197 = vector.extract_strided_slice %195 {offsets = [0, 32], sizes = [2, 32], strides = [1, 1]} : vector<2x96xf32> to vector<2x32xf32>
    %198 = vector.extract_strided_slice %195 {offsets = [0, 64], sizes = [2, 32], strides = [1, 1]} : vector<2x96xf32> to vector<2x32xf32>
    %199 = vector.extract_strided_slice %189 {offsets = [0, 96], sizes = [2, 32], strides = [1, 1]} : vector<2x128xf32> to vector<2x32xf32>
    %200 = math.tanh %199 : vector<2x32xf32>
    %201 = arith.mulf %197, %154 : vector<2x32xf32>
    %202 = arith.mulf %196, %200 : vector<2x32xf32>
    %203 = arith.addf %201, %202 : vector<2x32xf32>
    %204 = math.tanh %203 : vector<2x32xf32>
    %205 = arith.mulf %198, %204 : vector<2x32xf32>
    %c2_i32_66 = arith.constant 2 : i32
    %206 = arith.muli %c3_i32, %c2_i32_66 : i32
    %207 = arith.index_cast %206 : i32 to index
    %c0_67 = arith.constant 0 : index
    %208 = vector.load %arg10[%207, %c0_67] : memref<16x32xf32, #tpu.memory_space<vmem>>, vector<2x32xf32>
    tpu.vector_store %arg10[%207, %c0_67], %184 {strides = array<i32>} : memref<16x32xf32, #tpu.memory_space<vmem>>, vector<2x32xf32>,
    %c2_i32_68 = arith.constant 2 : i32
    %209 = arith.muli %163, %c2_i32_68 : i32
    %210 = arith.index_cast %209 : i32 to index
    %c0_69 = arith.constant 0 : index
    %211 = vector.load %arg11[%210, %c0_69] : memref<16x32xf32, #tpu.memory_space<vmem>>, vector<2x32xf32>
    tpu.vector_store %arg11[%210, %c0_69], %205 {strides = array<i32>} : memref<16x32xf32, #tpu.memory_space<vmem>>, vector<2x32xf32>,
    %c4_i32 = arith.constant 4 : i32
    %c7_i32_70 = arith.constant 7 : i32
    %212 = arith.subi %c7_i32_70, %c4_i32 : i32
    %c2_i32_71 = arith.constant 2 : i32
    %213 = arith.muli %c4_i32, %c2_i32_71 : i32
    %214 = arith.index_cast %213 : i32 to index
    %c0_72 = arith.constant 0 : index
    %215 = vector.load %arg8[%214, %c0_72] : memref<16x128xf32, #tpu.memory_space<vmem>>, vector<2x128xf32>
    %cst_73 = arith.constant dense<0.000000e+00> : vector<2x128xf32>
    %216 = tpu.matmul %184, %13, %cst_73 {dimension_numbers = #tpu.dot_dimension_numbers<[1], [0], [0], [1], [0, 0, 1, 1], [], []>} : vector<2x32xf32>, vector<32x128xf32>, vector<2x128xf32> -> vector<2x128xf32>
    %217 = arith.addf %215, %216 : vector<2x128xf32>
    %218 = vector.extract_strided_slice %217 {offsets = [0, 0], sizes = [2, 96], strides = [1, 1]} : vector<2x128xf32> to vector<2x96xf32>
    %219 = arith.negf %218 : vector<2x96xf32>
    %220 = math.exp %219 : vector<2x96xf32>
    %cst_74 = arith.constant 1.000000e+00 : f32
    %221 = vector.broadcast %cst_74 : f32 to vector<2x96xf32>
    %222 = arith.addf %221, %220 : vector<2x96xf32>
    %223 = arith.divf %221, %222 : vector<2x96xf32>
    %224 = vector.extract_strided_slice %223 {offsets = [0, 0], sizes = [2, 32], strides = [1, 1]} : vector<2x96xf32> to vector<2x32xf32>
    %225 = vector.extract_strided_slice %223 {offsets = [0, 32], sizes = [2, 32], strides = [1, 1]} : vector<2x96xf32> to vector<2x32xf32>
    %226 = vector.extract_strided_slice %223 {offsets = [0, 64], sizes = [2, 32], strides = [1, 1]} : vector<2x96xf32> to vector<2x32xf32>
    %227 = vector.extract_strided_slice %217 {offsets = [0, 96], sizes = [2, 32], strides = [1, 1]} : vector<2x128xf32> to vector<2x32xf32>
    %228 = math.tanh %227 : vector<2x32xf32>
    %229 = arith.mulf %225, %182 : vector<2x32xf32>
    %230 = arith.mulf %224, %228 : vector<2x32xf32>
    %231 = arith.addf %229, %230 : vector<2x32xf32>
    %232 = math.tanh %231 : vector<2x32xf32>
    %233 = arith.mulf %226, %232 : vector<2x32xf32>
    %c2_i32_75 = arith.constant 2 : i32
    %234 = arith.muli %212, %c2_i32_75 : i32
    %235 = arith.index_cast %234 : i32 to index
    %c0_76 = arith.constant 0 : index
    %236 = vector.load %arg9[%235, %c0_76] : memref<16x128xf32, #tpu.memory_space<vmem>>, vector<2x128xf32>
    %cst_77 = arith.constant dense<0.000000e+00> : vector<2x128xf32>
    %237 = tpu.matmul %205, %14, %cst_77 {dimension_numbers = #tpu.dot_dimension_numbers<[1], [0], [0], [1], [0, 0, 1, 1], [], []>} : vector<2x32xf32>, vector<32x128xf32>, vector<2x128xf32> -> vector<2x128xf32>
    %238 = arith.addf %236, %237 : vector<2x128xf32>
    %239 = vector.extract_strided_slice %238 {offsets = [0, 0], sizes = [2, 96], strides = [1, 1]} : vector<2x128xf32> to vector<2x96xf32>
    %240 = arith.negf %239 : vector<2x96xf32>
    %241 = math.exp %240 : vector<2x96xf32>
    %cst_78 = arith.constant 1.000000e+00 : f32
    %242 = vector.broadcast %cst_78 : f32 to vector<2x96xf32>
    %243 = arith.addf %242, %241 : vector<2x96xf32>
    %244 = arith.divf %242, %243 : vector<2x96xf32>
    %245 = vector.extract_strided_slice %244 {offsets = [0, 0], sizes = [2, 32], strides = [1, 1]} : vector<2x96xf32> to vector<2x32xf32>
    %246 = vector.extract_strided_slice %244 {offsets = [0, 32], sizes = [2, 32], strides = [1, 1]} : vector<2x96xf32> to vector<2x32xf32>
    %247 = vector.extract_strided_slice %244 {offsets = [0, 64], sizes = [2, 32], strides = [1, 1]} : vector<2x96xf32> to vector<2x32xf32>
    %248 = vector.extract_strided_slice %238 {offsets = [0, 96], sizes = [2, 32], strides = [1, 1]} : vector<2x128xf32> to vector<2x32xf32>
    %249 = math.tanh %248 : vector<2x32xf32>
    %250 = arith.mulf %246, %203 : vector<2x32xf32>
    %251 = arith.mulf %245, %249 : vector<2x32xf32>
    %252 = arith.addf %250, %251 : vector<2x32xf32>
    %253 = math.tanh %252 : vector<2x32xf32>
    %254 = arith.mulf %247, %253 : vector<2x32xf32>
    %c2_i32_79 = arith.constant 2 : i32
    %255 = arith.muli %c4_i32, %c2_i32_79 : i32
    %256 = arith.index_cast %255 : i32 to index
    %c0_80 = arith.constant 0 : index
    %257 = vector.load %arg10[%256, %c0_80] : memref<16x32xf32, #tpu.memory_space<vmem>>, vector<2x32xf32>
    tpu.vector_store %arg10[%256, %c0_80], %233 {strides = array<i32>} : memref<16x32xf32, #tpu.memory_space<vmem>>, vector<2x32xf32>,
    %c2_i32_81 = arith.constant 2 : i32
    %258 = arith.muli %212, %c2_i32_81 : i32
    %259 = arith.index_cast %258 : i32 to index
    %c0_82 = arith.constant 0 : index
    %260 = vector.load %arg11[%259, %c0_82] : memref<16x32xf32, #tpu.memory_space<vmem>>, vector<2x32xf32>
    tpu.vector_store %arg11[%259, %c0_82], %254 {strides = array<i32>} : memref<16x32xf32, #tpu.memory_space<vmem>>, vector<2x32xf32>,
    %c5_i32 = arith.constant 5 : i32
    %c7_i32_83 = arith.constant 7 : i32
    %261 = arith.subi %c7_i32_83, %c5_i32 : i32
    %c2_i32_84 = arith.constant 2 : i32
    %262 = arith.muli %c5_i32, %c2_i32_84 : i32
    %263 = arith.index_cast %262 : i32 to index
    %c0_85 = arith.constant 0 : index
    %264 = vector.load %arg8[%263, %c0_85] : memref<16x128xf32, #tpu.memory_space<vmem>>, vector<2x128xf32>
    %cst_86 = arith.constant dense<0.000000e+00> : vector<2x128xf32>
    %265 = tpu.matmul %233, %13, %cst_86 {dimension_numbers = #tpu.dot_dimension_numbers<[1], [0], [0], [1], [0, 0, 1, 1], [], []>} : vector<2x32xf32>, vector<32x128xf32>, vector<2x128xf32> -> vector<2x128xf32>
    %266 = arith.addf %264, %265 : vector<2x128xf32>
    %267 = vector.extract_strided_slice %266 {offsets = [0, 0], sizes = [2, 96], strides = [1, 1]} : vector<2x128xf32> to vector<2x96xf32>
    %268 = arith.negf %267 : vector<2x96xf32>
    %269 = math.exp %268 : vector<2x96xf32>
    %cst_87 = arith.constant 1.000000e+00 : f32
    %270 = vector.broadcast %cst_87 : f32 to vector<2x96xf32>
    %271 = arith.addf %270, %269 : vector<2x96xf32>
    %272 = arith.divf %270, %271 : vector<2x96xf32>
    %273 = vector.extract_strided_slice %272 {offsets = [0, 0], sizes = [2, 32], strides = [1, 1]} : vector<2x96xf32> to vector<2x32xf32>
    %274 = vector.extract_strided_slice %272 {offsets = [0, 32], sizes = [2, 32], strides = [1, 1]} : vector<2x96xf32> to vector<2x32xf32>
    %275 = vector.extract_strided_slice %272 {offsets = [0, 64], sizes = [2, 32], strides = [1, 1]} : vector<2x96xf32> to vector<2x32xf32>
    %276 = vector.extract_strided_slice %266 {offsets = [0, 96], sizes = [2, 32], strides = [1, 1]} : vector<2x128xf32> to vector<2x32xf32>
    %277 = math.tanh %276 : vector<2x32xf32>
    %278 = arith.mulf %274, %231 : vector<2x32xf32>
    %279 = arith.mulf %273, %277 : vector<2x32xf32>
    %280 = arith.addf %278, %279 : vector<2x32xf32>
    %281 = math.tanh %280 : vector<2x32xf32>
    %282 = arith.mulf %275, %281 : vector<2x32xf32>
    %c2_i32_88 = arith.constant 2 : i32
    %283 = arith.muli %261, %c2_i32_88 : i32
    %284 = arith.index_cast %283 : i32 to index
    %c0_89 = arith.constant 0 : index
    %285 = vector.load %arg9[%284, %c0_89] : memref<16x128xf32, #tpu.memory_space<vmem>>, vector<2x128xf32>
    %cst_90 = arith.constant dense<0.000000e+00> : vector<2x128xf32>
    %286 = tpu.matmul %254, %14, %cst_90 {dimension_numbers = #tpu.dot_dimension_numbers<[1], [0], [0], [1], [0, 0, 1, 1], [], []>} : vector<2x32xf32>, vector<32x128xf32>, vector<2x128xf32> -> vector<2x128xf32>
    %287 = arith.addf %285, %286 : vector<2x128xf32>
    %288 = vector.extract_strided_slice %287 {offsets = [0, 0], sizes = [2, 96], strides = [1, 1]} : vector<2x128xf32> to vector<2x96xf32>
    %289 = arith.negf %288 : vector<2x96xf32>
    %290 = math.exp %289 : vector<2x96xf32>
    %cst_91 = arith.constant 1.000000e+00 : f32
    %291 = vector.broadcast %cst_91 : f32 to vector<2x96xf32>
    %292 = arith.addf %291, %290 : vector<2x96xf32>
    %293 = arith.divf %291, %292 : vector<2x96xf32>
    %294 = vector.extract_strided_slice %293 {offsets = [0, 0], sizes = [2, 32], strides = [1, 1]} : vector<2x96xf32> to vector<2x32xf32>
    %295 = vector.extract_strided_slice %293 {offsets = [0, 32], sizes = [2, 32], strides = [1, 1]} : vector<2x96xf32> to vector<2x32xf32>
    %296 = vector.extract_strided_slice %293 {offsets = [0, 64], sizes = [2, 32], strides = [1, 1]} : vector<2x96xf32> to vector<2x32xf32>
    %297 = vector.extract_strided_slice %287 {offsets = [0, 96], sizes = [2, 32], strides = [1, 1]} : vector<2x128xf32> to vector<2x32xf32>
    %298 = math.tanh %297 : vector<2x32xf32>
    %299 = arith.mulf %295, %252 : vector<2x32xf32>
    %300 = arith.mulf %294, %298 : vector<2x32xf32>
    %301 = arith.addf %299, %300 : vector<2x32xf32>
    %302 = math.tanh %301 : vector<2x32xf32>
    %303 = arith.mulf %296, %302 : vector<2x32xf32>
    %c2_i32_92 = arith.constant 2 : i32
    %304 = arith.muli %c5_i32, %c2_i32_92 : i32
    %305 = arith.index_cast %304 : i32 to index
    %c0_93 = arith.constant 0 : index
    %306 = vector.load %arg10[%305, %c0_93] : memref<16x32xf32, #tpu.memory_space<vmem>>, vector<2x32xf32>
    tpu.vector_store %arg10[%305, %c0_93], %282 {strides = array<i32>} : memref<16x32xf32, #tpu.memory_space<vmem>>, vector<2x32xf32>,
    %c2_i32_94 = arith.constant 2 : i32
    %307 = arith.muli %261, %c2_i32_94 : i32
    %308 = arith.index_cast %307 : i32 to index
    %c0_95 = arith.constant 0 : index
    %309 = vector.load %arg11[%308, %c0_95] : memref<16x32xf32, #tpu.memory_space<vmem>>, vector<2x32xf32>
    tpu.vector_store %arg11[%308, %c0_95], %303 {strides = array<i32>} : memref<16x32xf32, #tpu.memory_space<vmem>>, vector<2x32xf32>,
    %c6_i32 = arith.constant 6 : i32
    %c7_i32_96 = arith.constant 7 : i32
    %310 = arith.subi %c7_i32_96, %c6_i32 : i32
    %c2_i32_97 = arith.constant 2 : i32
    %311 = arith.muli %c6_i32, %c2_i32_97 : i32
    %312 = arith.index_cast %311 : i32 to index
    %c0_98 = arith.constant 0 : index
    %313 = vector.load %arg8[%312, %c0_98] : memref<16x128xf32, #tpu.memory_space<vmem>>, vector<2x128xf32>
    %cst_99 = arith.constant dense<0.000000e+00> : vector<2x128xf32>
    %314 = tpu.matmul %282, %13, %cst_99 {dimension_numbers = #tpu.dot_dimension_numbers<[1], [0], [0], [1], [0, 0, 1, 1], [], []>} : vector<2x32xf32>, vector<32x128xf32>, vector<2x128xf32> -> vector<2x128xf32>
    %315 = arith.addf %313, %314 : vector<2x128xf32>
    %316 = vector.extract_strided_slice %315 {offsets = [0, 0], sizes = [2, 96], strides = [1, 1]} : vector<2x128xf32> to vector<2x96xf32>
    %317 = arith.negf %316 : vector<2x96xf32>
    %318 = math.exp %317 : vector<2x96xf32>
    %cst_100 = arith.constant 1.000000e+00 : f32
    %319 = vector.broadcast %cst_100 : f32 to vector<2x96xf32>
    %320 = arith.addf %319, %318 : vector<2x96xf32>
    %321 = arith.divf %319, %320 : vector<2x96xf32>
    %322 = vector.extract_strided_slice %321 {offsets = [0, 0], sizes = [2, 32], strides = [1, 1]} : vector<2x96xf32> to vector<2x32xf32>
    %323 = vector.extract_strided_slice %321 {offsets = [0, 32], sizes = [2, 32], strides = [1, 1]} : vector<2x96xf32> to vector<2x32xf32>
    %324 = vector.extract_strided_slice %321 {offsets = [0, 64], sizes = [2, 32], strides = [1, 1]} : vector<2x96xf32> to vector<2x32xf32>
    %325 = vector.extract_strided_slice %315 {offsets = [0, 96], sizes = [2, 32], strides = [1, 1]} : vector<2x128xf32> to vector<2x32xf32>
    %326 = math.tanh %325 : vector<2x32xf32>
    %327 = arith.mulf %323, %280 : vector<2x32xf32>
    %328 = arith.mulf %322, %326 : vector<2x32xf32>
    %329 = arith.addf %327, %328 : vector<2x32xf32>
    %330 = math.tanh %329 : vector<2x32xf32>
    %331 = arith.mulf %324, %330 : vector<2x32xf32>
    %c2_i32_101 = arith.constant 2 : i32
    %332 = arith.muli %310, %c2_i32_101 : i32
    %333 = arith.index_cast %332 : i32 to index
    %c0_102 = arith.constant 0 : index
    %334 = vector.load %arg9[%333, %c0_102] : memref<16x128xf32, #tpu.memory_space<vmem>>, vector<2x128xf32>
    %cst_103 = arith.constant dense<0.000000e+00> : vector<2x128xf32>
    %335 = tpu.matmul %303, %14, %cst_103 {dimension_numbers = #tpu.dot_dimension_numbers<[1], [0], [0], [1], [0, 0, 1, 1], [], []>} : vector<2x32xf32>, vector<32x128xf32>, vector<2x128xf32> -> vector<2x128xf32>
    %336 = arith.addf %334, %335 : vector<2x128xf32>
    %337 = vector.extract_strided_slice %336 {offsets = [0, 0], sizes = [2, 96], strides = [1, 1]} : vector<2x128xf32> to vector<2x96xf32>
    %338 = arith.negf %337 : vector<2x96xf32>
    %339 = math.exp %338 : vector<2x96xf32>
    %cst_104 = arith.constant 1.000000e+00 : f32
    %340 = vector.broadcast %cst_104 : f32 to vector<2x96xf32>
    %341 = arith.addf %340, %339 : vector<2x96xf32>
    %342 = arith.divf %340, %341 : vector<2x96xf32>
    %343 = vector.extract_strided_slice %342 {offsets = [0, 0], sizes = [2, 32], strides = [1, 1]} : vector<2x96xf32> to vector<2x32xf32>
    %344 = vector.extract_strided_slice %342 {offsets = [0, 32], sizes = [2, 32], strides = [1, 1]} : vector<2x96xf32> to vector<2x32xf32>
    %345 = vector.extract_strided_slice %342 {offsets = [0, 64], sizes = [2, 32], strides = [1, 1]} : vector<2x96xf32> to vector<2x32xf32>
    %346 = vector.extract_strided_slice %336 {offsets = [0, 96], sizes = [2, 32], strides = [1, 1]} : vector<2x128xf32> to vector<2x32xf32>
    %347 = math.tanh %346 : vector<2x32xf32>
    %348 = arith.mulf %344, %301 : vector<2x32xf32>
    %349 = arith.mulf %343, %347 : vector<2x32xf32>
    %350 = arith.addf %348, %349 : vector<2x32xf32>
    %351 = math.tanh %350 : vector<2x32xf32>
    %352 = arith.mulf %345, %351 : vector<2x32xf32>
    %c2_i32_105 = arith.constant 2 : i32
    %353 = arith.muli %c6_i32, %c2_i32_105 : i32
    %354 = arith.index_cast %353 : i32 to index
    %c0_106 = arith.constant 0 : index
    %355 = vector.load %arg10[%354, %c0_106] : memref<16x32xf32, #tpu.memory_space<vmem>>, vector<2x32xf32>
    tpu.vector_store %arg10[%354, %c0_106], %331 {strides = array<i32>} : memref<16x32xf32, #tpu.memory_space<vmem>>, vector<2x32xf32>,
    %c2_i32_107 = arith.constant 2 : i32
    %356 = arith.muli %310, %c2_i32_107 : i32
    %357 = arith.index_cast %356 : i32 to index
    %c0_108 = arith.constant 0 : index
    %358 = vector.load %arg11[%357, %c0_108] : memref<16x32xf32, #tpu.memory_space<vmem>>, vector<2x32xf32>
    tpu.vector_store %arg11[%357, %c0_108], %352 {strides = array<i32>} : memref<16x32xf32, #tpu.memory_space<vmem>>, vector<2x32xf32>,
    %c7_i32_109 = arith.constant 7 : i32
    %c7_i32_110 = arith.constant 7 : i32
    %359 = arith.subi %c7_i32_110, %c7_i32_109 : i32
    %c2_i32_111 = arith.constant 2 : i32
    %360 = arith.muli %c7_i32_109, %c2_i32_111 : i32
    %361 = arith.index_cast %360 : i32 to index
    %c0_112 = arith.constant 0 : index
    %362 = vector.load %arg8[%361, %c0_112] : memref<16x128xf32, #tpu.memory_space<vmem>>, vector<2x128xf32>
    %cst_113 = arith.constant dense<0.000000e+00> : vector<2x128xf32>
    %363 = tpu.matmul %331, %13, %cst_113 {dimension_numbers = #tpu.dot_dimension_numbers<[1], [0], [0], [1], [0, 0, 1, 1], [], []>} : vector<2x32xf32>, vector<32x128xf32>, vector<2x128xf32> -> vector<2x128xf32>
    %364 = arith.addf %362, %363 : vector<2x128xf32>
    %365 = vector.extract_strided_slice %364 {offsets = [0, 0], sizes = [2, 96], strides = [1, 1]} : vector<2x128xf32> to vector<2x96xf32>
    %366 = arith.negf %365 : vector<2x96xf32>
    %367 = math.exp %366 : vector<2x96xf32>
    %cst_114 = arith.constant 1.000000e+00 : f32
    %368 = vector.broadcast %cst_114 : f32 to vector<2x96xf32>
    %369 = arith.addf %368, %367 : vector<2x96xf32>
    %370 = arith.divf %368, %369 : vector<2x96xf32>
    %371 = vector.extract_strided_slice %370 {offsets = [0, 0], sizes = [2, 32], strides = [1, 1]} : vector<2x96xf32> to vector<2x32xf32>
    %372 = vector.extract_strided_slice %370 {offsets = [0, 32], sizes = [2, 32], strides = [1, 1]} : vector<2x96xf32> to vector<2x32xf32>
    %373 = vector.extract_strided_slice %370 {offsets = [0, 64], sizes = [2, 32], strides = [1, 1]} : vector<2x96xf32> to vector<2x32xf32>
    %374 = vector.extract_strided_slice %364 {offsets = [0, 96], sizes = [2, 32], strides = [1, 1]} : vector<2x128xf32> to vector<2x32xf32>
    %375 = math.tanh %374 : vector<2x32xf32>
    %376 = arith.mulf %372, %329 : vector<2x32xf32>
    %377 = arith.mulf %371, %375 : vector<2x32xf32>
    %378 = arith.addf %376, %377 : vector<2x32xf32>
    %379 = math.tanh %378 : vector<2x32xf32>
    %380 = arith.mulf %373, %379 : vector<2x32xf32>
    %c2_i32_115 = arith.constant 2 : i32
    %381 = arith.muli %359, %c2_i32_115 : i32
    %382 = arith.index_cast %381 : i32 to index
    %c0_116 = arith.constant 0 : index
    %383 = vector.load %arg9[%382, %c0_116] : memref<16x128xf32, #tpu.memory_space<vmem>>, vector<2x128xf32>
    %cst_117 = arith.constant dense<0.000000e+00> : vector<2x128xf32>
    %384 = tpu.matmul %352, %14, %cst_117 {dimension_numbers = #tpu.dot_dimension_numbers<[1], [0], [0], [1], [0, 0, 1, 1], [], []>} : vector<2x32xf32>, vector<32x128xf32>, vector<2x128xf32> -> vector<2x128xf32>
    %385 = arith.addf %383, %384 : vector<2x128xf32>
    %386 = vector.extract_strided_slice %385 {offsets = [0, 0], sizes = [2, 96], strides = [1, 1]} : vector<2x128xf32> to vector<2x96xf32>
    %387 = arith.negf %386 : vector<2x96xf32>
    %388 = math.exp %387 : vector<2x96xf32>
    %cst_118 = arith.constant 1.000000e+00 : f32
    %389 = vector.broadcast %cst_118 : f32 to vector<2x96xf32>
    %390 = arith.addf %389, %388 : vector<2x96xf32>
    %391 = arith.divf %389, %390 : vector<2x96xf32>
    %392 = vector.extract_strided_slice %391 {offsets = [0, 0], sizes = [2, 32], strides = [1, 1]} : vector<2x96xf32> to vector<2x32xf32>
    %393 = vector.extract_strided_slice %391 {offsets = [0, 32], sizes = [2, 32], strides = [1, 1]} : vector<2x96xf32> to vector<2x32xf32>
    %394 = vector.extract_strided_slice %391 {offsets = [0, 64], sizes = [2, 32], strides = [1, 1]} : vector<2x96xf32> to vector<2x32xf32>
    %395 = vector.extract_strided_slice %385 {offsets = [0, 96], sizes = [2, 32], strides = [1, 1]} : vector<2x128xf32> to vector<2x32xf32>
    %396 = math.tanh %395 : vector<2x32xf32>
    %397 = arith.mulf %393, %350 : vector<2x32xf32>
    %398 = arith.mulf %392, %396 : vector<2x32xf32>
    %399 = arith.addf %397, %398 : vector<2x32xf32>
    %400 = math.tanh %399 : vector<2x32xf32>
    %401 = arith.mulf %394, %400 : vector<2x32xf32>
    %c2_i32_119 = arith.constant 2 : i32
    %402 = arith.muli %c7_i32_109, %c2_i32_119 : i32
    %403 = arith.index_cast %402 : i32 to index
    %c0_120 = arith.constant 0 : index
    %404 = vector.load %arg10[%403, %c0_120] : memref<16x32xf32, #tpu.memory_space<vmem>>, vector<2x32xf32>
    tpu.vector_store %arg10[%403, %c0_120], %380 {strides = array<i32>} : memref<16x32xf32, #tpu.memory_space<vmem>>, vector<2x32xf32>,
    %c2_i32_121 = arith.constant 2 : i32
    %405 = arith.muli %359, %c2_i32_121 : i32
    %406 = arith.index_cast %405 : i32 to index
    %c0_122 = arith.constant 0 : index
    %407 = vector.load %arg11[%406, %c0_122] : memref<16x32xf32, #tpu.memory_space<vmem>>, vector<2x32xf32>
    tpu.vector_store %arg11[%406, %c0_122], %401 {strides = array<i32>} : memref<16x32xf32, #tpu.memory_space<vmem>>, vector<2x32xf32>,
    %c8_i32 = arith.constant 8 : i32
    %c0_123 = arith.constant 0 : index
    %c0_124 = arith.constant 0 : index
    %408 = vector.load %arg10[%c0_123, %c0_124] : memref<16x32xf32, #tpu.memory_space<vmem>>, vector<16x32xf32>
    %c0_125 = arith.constant 0 : index
    %c0_126 = arith.constant 0 : index
    %409 = vector.load %arg7[%c0_125, %c0_126] : memref<16x64xf32, #tpu.memory_space<vmem>>, vector<16x32xf32>
    tpu.vector_store %arg7[%c0_125, %c0_126], %408 {strides = array<i32>} : memref<16x64xf32, #tpu.memory_space<vmem>>, vector<16x32xf32>,
    %c0_127 = arith.constant 0 : index
    %c0_128 = arith.constant 0 : index
    %410 = vector.load %arg11[%c0_127, %c0_128] : memref<16x32xf32, #tpu.memory_space<vmem>>, vector<16x32xf32>
    %c0_129 = arith.constant 0 : index
    %c32 = arith.constant 32 : index
    %411 = vector.load %arg7[%c0_129, %c32] : memref<16x64xf32, #tpu.memory_space<vmem>>, vector<16x32xf32>
    tpu.vector_store %arg7[%c0_129, %c32], %410 {strides = array<i32>} : memref<16x64xf32, #tpu.memory_space<vmem>>, vector<16x32xf32>,
    return
  }
}

module attributes {stable_mosaic.version = 11 : i64} {
  func.func @bidir_lstm_head_kernel(%arg0: memref<16x64xf32, #tpu.memory_space<vmem>>, %arg1: memref<64x128xf32, #tpu.memory_space<vmem>>, %arg2: memref<32x128xf32, #tpu.memory_space<vmem>>, %arg3: memref<1x128xf32, #tpu.memory_space<vmem>>, %arg4: memref<64x128xf32, #tpu.memory_space<vmem>>, %arg5: memref<32x128xf32, #tpu.memory_space<vmem>>, %arg6: memref<1x128xf32, #tpu.memory_space<vmem>>, %arg7: memref<1x32xf32, #tpu.memory_space<vmem>>, %arg8: memref<1x32xf32, #tpu.memory_space<vmem>>, %arg9: memref<1x1xf32, #tpu.memory_space<vmem>>, %arg10: memref<2x8xf32, #tpu.memory_space<vmem>>, %arg11: memref<16x128xf32, #tpu.memory_space<vmem>>, %arg12: memref<16x128xf32, #tpu.memory_space<vmem>>) attributes {dimension_semantics = [], scalar_prefetch = 0 : i64, scratch_operands = 2 : i64, tpu.core_type = #tpu.core_type<tc>} {
    %c0 = arith.constant 0 : index
    %c0_0 = arith.constant 0 : index
    %0 = vector.load %arg0[%c0, %c0_0] : memref<16x64xf32, #tpu.memory_space<vmem>>, vector<16x64xf32>
    %c0_1 = arith.constant 0 : index
    %c0_2 = arith.constant 0 : index
    %1 = vector.load %arg1[%c0_1, %c0_2] : memref<64x128xf32, #tpu.memory_space<vmem>>, vector<64x128xf32>
    %cst = arith.constant dense<0.000000e+00> : vector<16x128xf32>
    %2 = tpu.matmul %0, %1, %cst {dimension_numbers = #tpu.dot_dimension_numbers<[1], [0], [0], [1], [0, 0, 1, 1], [], []>} : vector<16x64xf32>, vector<64x128xf32>, vector<16x128xf32> -> vector<16x128xf32>
    %c0_3 = arith.constant 0 : index
    %c0_4 = arith.constant 0 : index
    %3 = vector.load %arg3[%c0_3, %c0_4] : memref<1x128xf32, #tpu.memory_space<vmem>>, vector<1x128xf32>
    %4 = vector.broadcast %3 : vector<1x128xf32> to vector<16x128xf32>
    %5 = arith.addf %2, %4 : vector<16x128xf32>
    %c0_5 = arith.constant 0 : index
    %c0_6 = arith.constant 0 : index
    %6 = vector.load %arg11[%c0_5, %c0_6] : memref<16x128xf32, #tpu.memory_space<vmem>>, vector<16x128xf32>
    tpu.vector_store %arg11[%c0_5, %c0_6], %5 {strides = array<i32>} : memref<16x128xf32, #tpu.memory_space<vmem>>, vector<16x128xf32>,
    %c0_7 = arith.constant 0 : index
    %c0_8 = arith.constant 0 : index
    %7 = vector.load %arg4[%c0_7, %c0_8] : memref<64x128xf32, #tpu.memory_space<vmem>>, vector<64x128xf32>
    %cst_9 = arith.constant dense<0.000000e+00> : vector<16x128xf32>
    %8 = tpu.matmul %0, %7, %cst_9 {dimension_numbers = #tpu.dot_dimension_numbers<[1], [0], [0], [1], [0, 0, 1, 1], [], []>} : vector<16x64xf32>, vector<64x128xf32>, vector<16x128xf32> -> vector<16x128xf32>
    %c0_10 = arith.constant 0 : index
    %c0_11 = arith.constant 0 : index
    %9 = vector.load %arg6[%c0_10, %c0_11] : memref<1x128xf32, #tpu.memory_space<vmem>>, vector<1x128xf32>
    %10 = vector.broadcast %9 : vector<1x128xf32> to vector<16x128xf32>
    %11 = arith.addf %8, %10 : vector<16x128xf32>
    %c0_12 = arith.constant 0 : index
    %c0_13 = arith.constant 0 : index
    %12 = vector.load %arg12[%c0_12, %c0_13] : memref<16x128xf32, #tpu.memory_space<vmem>>, vector<16x128xf32>
    tpu.vector_store %arg12[%c0_12, %c0_13], %11 {strides = array<i32>} : memref<16x128xf32, #tpu.memory_space<vmem>>, vector<16x128xf32>,
    %c0_14 = arith.constant 0 : index
    %c0_15 = arith.constant 0 : index
    %13 = vector.load %arg2[%c0_14, %c0_15] : memref<32x128xf32, #tpu.memory_space<vmem>>, vector<32x128xf32>
    %c0_16 = arith.constant 0 : index
    %c0_17 = arith.constant 0 : index
    %14 = vector.load %arg5[%c0_16, %c0_17] : memref<32x128xf32, #tpu.memory_space<vmem>>, vector<32x128xf32>
    %c0_18 = arith.constant 0 : index
    %c0_19 = arith.constant 0 : index
    %15 = vector.load %arg7[%c0_18, %c0_19] : memref<1x32xf32, #tpu.memory_space<vmem>>, vector<1x32xf32>
    %c0_20 = arith.constant 0 : index
    %c0_21 = arith.constant 0 : index
    %16 = vector.load %arg8[%c0_20, %c0_21] : memref<1x32xf32, #tpu.memory_space<vmem>>, vector<1x32xf32>
    %17 = tpu.iota {dimensions = array<i32: 1>} : vector<2x8xi32>
    %cst_22 = arith.constant 0.000000e+00 : f32
    %18 = vector.broadcast %cst_22 : f32 to vector<2x32xf32>
    %cst_23 = arith.constant 0.000000e+00 : f32
    %19 = vector.broadcast %cst_23 : f32 to vector<2x8xf32>
    %c0_i32 = arith.constant 0 : i32
    %c7_i32 = arith.constant 7 : i32
    %20 = arith.subi %c7_i32, %c0_i32 : i32
    %c2_i32 = arith.constant 2 : i32
    %21 = arith.muli %c0_i32, %c2_i32 : i32
    %22 = arith.index_cast %21 : i32 to index
    %c0_24 = arith.constant 0 : index
    %23 = vector.load %arg11[%22, %c0_24] : memref<16x128xf32, #tpu.memory_space<vmem>>, vector<2x128xf32>
    %cst_25 = arith.constant dense<0.000000e+00> : vector<2x128xf32>
    %24 = tpu.matmul %18, %13, %cst_25 {dimension_numbers = #tpu.dot_dimension_numbers<[1], [0], [0], [1], [0, 0, 1, 1], [], []>} : vector<2x32xf32>, vector<32x128xf32>, vector<2x128xf32> -> vector<2x128xf32>
    %25 = arith.addf %23, %24 : vector<2x128xf32>
    %26 = vector.extract_strided_slice %25 {offsets = [0, 0], sizes = [2, 96], strides = [1, 1]} : vector<2x128xf32> to vector<2x96xf32>
    %27 = arith.negf %26 : vector<2x96xf32>
    %28 = math.exp %27 : vector<2x96xf32>
    %cst_26 = arith.constant 1.000000e+00 : f32
    %29 = vector.broadcast %cst_26 : f32 to vector<2x96xf32>
    %30 = arith.addf %29, %28 : vector<2x96xf32>
    %31 = arith.divf %29, %30 : vector<2x96xf32>
    %32 = vector.extract_strided_slice %31 {offsets = [0, 0], sizes = [2, 32], strides = [1, 1]} : vector<2x96xf32> to vector<2x32xf32>
    %33 = vector.extract_strided_slice %31 {offsets = [0, 32], sizes = [2, 32], strides = [1, 1]} : vector<2x96xf32> to vector<2x32xf32>
    %34 = vector.extract_strided_slice %31 {offsets = [0, 64], sizes = [2, 32], strides = [1, 1]} : vector<2x96xf32> to vector<2x32xf32>
    %35 = vector.extract_strided_slice %25 {offsets = [0, 96], sizes = [2, 32], strides = [1, 1]} : vector<2x128xf32> to vector<2x32xf32>
    %36 = math.tanh %35 : vector<2x32xf32>
    %37 = arith.mulf %33, %18 : vector<2x32xf32>
    %38 = arith.mulf %32, %36 : vector<2x32xf32>
    %39 = arith.addf %37, %38 : vector<2x32xf32>
    %40 = math.tanh %39 : vector<2x32xf32>
    %41 = arith.mulf %34, %40 : vector<2x32xf32>
    %c2_i32_27 = arith.constant 2 : i32
    %42 = arith.muli %20, %c2_i32_27 : i32
    %43 = arith.index_cast %42 : i32 to index
    %c0_28 = arith.constant 0 : index
    %44 = vector.load %arg12[%43, %c0_28] : memref<16x128xf32, #tpu.memory_space<vmem>>, vector<2x128xf32>
    %cst_29 = arith.constant dense<0.000000e+00> : vector<2x128xf32>
    %45 = tpu.matmul %18, %14, %cst_29 {dimension_numbers = #tpu.dot_dimension_numbers<[1], [0], [0], [1], [0, 0, 1, 1], [], []>} : vector<2x32xf32>, vector<32x128xf32>, vector<2x128xf32> -> vector<2x128xf32>
    %46 = arith.addf %44, %45 : vector<2x128xf32>
    %47 = vector.extract_strided_slice %46 {offsets = [0, 0], sizes = [2, 96], strides = [1, 1]} : vector<2x128xf32> to vector<2x96xf32>
    %48 = arith.negf %47 : vector<2x96xf32>
    %49 = math.exp %48 : vector<2x96xf32>
    %cst_30 = arith.constant 1.000000e+00 : f32
    %50 = vector.broadcast %cst_30 : f32 to vector<2x96xf32>
    %51 = arith.addf %50, %49 : vector<2x96xf32>
    %52 = arith.divf %50, %51 : vector<2x96xf32>
    %53 = vector.extract_strided_slice %52 {offsets = [0, 0], sizes = [2, 32], strides = [1, 1]} : vector<2x96xf32> to vector<2x32xf32>
    %54 = vector.extract_strided_slice %52 {offsets = [0, 32], sizes = [2, 32], strides = [1, 1]} : vector<2x96xf32> to vector<2x32xf32>
    %55 = vector.extract_strided_slice %52 {offsets = [0, 64], sizes = [2, 32], strides = [1, 1]} : vector<2x96xf32> to vector<2x32xf32>
    %56 = vector.extract_strided_slice %46 {offsets = [0, 96], sizes = [2, 32], strides = [1, 1]} : vector<2x128xf32> to vector<2x32xf32>
    %57 = math.tanh %56 : vector<2x32xf32>
    %58 = arith.mulf %54, %18 : vector<2x32xf32>
    %59 = arith.mulf %53, %57 : vector<2x32xf32>
    %60 = arith.addf %58, %59 : vector<2x32xf32>
    %61 = math.tanh %60 : vector<2x32xf32>
    %62 = arith.mulf %55, %61 : vector<2x32xf32>
    %63 = vector.broadcast %15 : vector<1x32xf32> to vector<2x32xf32>
    %64 = arith.mulf %41, %63 : vector<2x32xf32>
    %cst_31 = arith.constant dense<0.000000e+00> : vector<2xf32>
    %65 = vector.multi_reduction <add>, %64, %cst_31 [1] : vector<2x32xf32> to vector<2xf32>
    %66 = vector.shape_cast %65 : vector<2xf32> to vector<2x1xf32>
    %67 = vector.broadcast %16 : vector<1x32xf32> to vector<2x32xf32>
    %68 = arith.mulf %62, %67 : vector<2x32xf32>
    %cst_32 = arith.constant dense<0.000000e+00> : vector<2xf32>
    %69 = vector.multi_reduction <add>, %68, %cst_32 [1] : vector<2x32xf32> to vector<2xf32>
    %70 = vector.shape_cast %69 : vector<2xf32> to vector<2x1xf32>
    %71 = vector.broadcast %c0_i32 : i32 to vector<2x8xi32>
    %72 = arith.cmpi eq, %17, %71 : vector<2x8xi32>
    %cst_33 = arith.constant 0.000000e+00 : f32
    %73 = vector.shape_cast %66 : vector<2x1xf32> to vector<2x1xf32>
    %74 = vector.broadcast %73 : vector<2x1xf32> to vector<2x8xf32>
    %75 = vector.broadcast %cst_33 : f32 to vector<2x8xf32>
    %76 = arith.select %72, %74, %75 : vector<2x8xi1>, vector<2x8xf32>
    %77 = arith.addf %19, %76 : vector<2x8xf32>
    %78 = vector.broadcast %20 : i32 to vector<2x8xi32>
    %79 = arith.cmpi eq, %17, %78 : vector<2x8xi32>
    %cst_34 = arith.constant 0.000000e+00 : f32
    %80 = vector.shape_cast %70 : vector<2x1xf32> to vector<2x1xf32>
    %81 = vector.broadcast %80 : vector<2x1xf32> to vector<2x8xf32>
    %82 = vector.broadcast %cst_34 : f32 to vector<2x8xf32>
    %83 = arith.select %79, %81, %82 : vector<2x8xi1>, vector<2x8xf32>
    %84 = arith.addf %77, %83 : vector<2x8xf32>
    %c1_i32 = arith.constant 1 : i32
    %c7_i32_35 = arith.constant 7 : i32
    %85 = arith.subi %c7_i32_35, %c1_i32 : i32
    %c2_i32_36 = arith.constant 2 : i32
    %86 = arith.muli %c1_i32, %c2_i32_36 : i32
    %87 = arith.index_cast %86 : i32 to index
    %c0_37 = arith.constant 0 : index
    %88 = vector.load %arg11[%87, %c0_37] : memref<16x128xf32, #tpu.memory_space<vmem>>, vector<2x128xf32>
    %cst_38 = arith.constant dense<0.000000e+00> : vector<2x128xf32>
    %89 = tpu.matmul %41, %13, %cst_38 {dimension_numbers = #tpu.dot_dimension_numbers<[1], [0], [0], [1], [0, 0, 1, 1], [], []>} : vector<2x32xf32>, vector<32x128xf32>, vector<2x128xf32> -> vector<2x128xf32>
    %90 = arith.addf %88, %89 : vector<2x128xf32>
    %91 = vector.extract_strided_slice %90 {offsets = [0, 0], sizes = [2, 96], strides = [1, 1]} : vector<2x128xf32> to vector<2x96xf32>
    %92 = arith.negf %91 : vector<2x96xf32>
    %93 = math.exp %92 : vector<2x96xf32>
    %cst_39 = arith.constant 1.000000e+00 : f32
    %94 = vector.broadcast %cst_39 : f32 to vector<2x96xf32>
    %95 = arith.addf %94, %93 : vector<2x96xf32>
    %96 = arith.divf %94, %95 : vector<2x96xf32>
    %97 = vector.extract_strided_slice %96 {offsets = [0, 0], sizes = [2, 32], strides = [1, 1]} : vector<2x96xf32> to vector<2x32xf32>
    %98 = vector.extract_strided_slice %96 {offsets = [0, 32], sizes = [2, 32], strides = [1, 1]} : vector<2x96xf32> to vector<2x32xf32>
    %99 = vector.extract_strided_slice %96 {offsets = [0, 64], sizes = [2, 32], strides = [1, 1]} : vector<2x96xf32> to vector<2x32xf32>
    %100 = vector.extract_strided_slice %90 {offsets = [0, 96], sizes = [2, 32], strides = [1, 1]} : vector<2x128xf32> to vector<2x32xf32>
    %101 = math.tanh %100 : vector<2x32xf32>
    %102 = arith.mulf %98, %39 : vector<2x32xf32>
    %103 = arith.mulf %97, %101 : vector<2x32xf32>
    %104 = arith.addf %102, %103 : vector<2x32xf32>
    %105 = math.tanh %104 : vector<2x32xf32>
    %106 = arith.mulf %99, %105 : vector<2x32xf32>
    %c2_i32_40 = arith.constant 2 : i32
    %107 = arith.muli %85, %c2_i32_40 : i32
    %108 = arith.index_cast %107 : i32 to index
    %c0_41 = arith.constant 0 : index
    %109 = vector.load %arg12[%108, %c0_41] : memref<16x128xf32, #tpu.memory_space<vmem>>, vector<2x128xf32>
    %cst_42 = arith.constant dense<0.000000e+00> : vector<2x128xf32>
    %110 = tpu.matmul %62, %14, %cst_42 {dimension_numbers = #tpu.dot_dimension_numbers<[1], [0], [0], [1], [0, 0, 1, 1], [], []>} : vector<2x32xf32>, vector<32x128xf32>, vector<2x128xf32> -> vector<2x128xf32>
    %111 = arith.addf %109, %110 : vector<2x128xf32>
    %112 = vector.extract_strided_slice %111 {offsets = [0, 0], sizes = [2, 96], strides = [1, 1]} : vector<2x128xf32> to vector<2x96xf32>
    %113 = arith.negf %112 : vector<2x96xf32>
    %114 = math.exp %113 : vector<2x96xf32>
    %cst_43 = arith.constant 1.000000e+00 : f32
    %115 = vector.broadcast %cst_43 : f32 to vector<2x96xf32>
    %116 = arith.addf %115, %114 : vector<2x96xf32>
    %117 = arith.divf %115, %116 : vector<2x96xf32>
    %118 = vector.extract_strided_slice %117 {offsets = [0, 0], sizes = [2, 32], strides = [1, 1]} : vector<2x96xf32> to vector<2x32xf32>
    %119 = vector.extract_strided_slice %117 {offsets = [0, 32], sizes = [2, 32], strides = [1, 1]} : vector<2x96xf32> to vector<2x32xf32>
    %120 = vector.extract_strided_slice %117 {offsets = [0, 64], sizes = [2, 32], strides = [1, 1]} : vector<2x96xf32> to vector<2x32xf32>
    %121 = vector.extract_strided_slice %111 {offsets = [0, 96], sizes = [2, 32], strides = [1, 1]} : vector<2x128xf32> to vector<2x32xf32>
    %122 = math.tanh %121 : vector<2x32xf32>
    %123 = arith.mulf %119, %60 : vector<2x32xf32>
    %124 = arith.mulf %118, %122 : vector<2x32xf32>
    %125 = arith.addf %123, %124 : vector<2x32xf32>
    %126 = math.tanh %125 : vector<2x32xf32>
    %127 = arith.mulf %120, %126 : vector<2x32xf32>
    %128 = vector.broadcast %15 : vector<1x32xf32> to vector<2x32xf32>
    %129 = arith.mulf %106, %128 : vector<2x32xf32>
    %cst_44 = arith.constant dense<0.000000e+00> : vector<2xf32>
    %130 = vector.multi_reduction <add>, %129, %cst_44 [1] : vector<2x32xf32> to vector<2xf32>
    %131 = vector.shape_cast %130 : vector<2xf32> to vector<2x1xf32>
    %132 = vector.broadcast %16 : vector<1x32xf32> to vector<2x32xf32>
    %133 = arith.mulf %127, %132 : vector<2x32xf32>
    %cst_45 = arith.constant dense<0.000000e+00> : vector<2xf32>
    %134 = vector.multi_reduction <add>, %133, %cst_45 [1] : vector<2x32xf32> to vector<2xf32>
    %135 = vector.shape_cast %134 : vector<2xf32> to vector<2x1xf32>
    %136 = vector.broadcast %c1_i32 : i32 to vector<2x8xi32>
    %137 = arith.cmpi eq, %17, %136 : vector<2x8xi32>
    %cst_46 = arith.constant 0.000000e+00 : f32
    %138 = vector.shape_cast %131 : vector<2x1xf32> to vector<2x1xf32>
    %139 = vector.broadcast %138 : vector<2x1xf32> to vector<2x8xf32>
    %140 = vector.broadcast %cst_46 : f32 to vector<2x8xf32>
    %141 = arith.select %137, %139, %140 : vector<2x8xi1>, vector<2x8xf32>
    %142 = arith.addf %84, %141 : vector<2x8xf32>
    %143 = vector.broadcast %85 : i32 to vector<2x8xi32>
    %144 = arith.cmpi eq, %17, %143 : vector<2x8xi32>
    %cst_47 = arith.constant 0.000000e+00 : f32
    %145 = vector.shape_cast %135 : vector<2x1xf32> to vector<2x1xf32>
    %146 = vector.broadcast %145 : vector<2x1xf32> to vector<2x8xf32>
    %147 = vector.broadcast %cst_47 : f32 to vector<2x8xf32>
    %148 = arith.select %144, %146, %147 : vector<2x8xi1>, vector<2x8xf32>
    %149 = arith.addf %142, %148 : vector<2x8xf32>
    %c2_i32_48 = arith.constant 2 : i32
    %c7_i32_49 = arith.constant 7 : i32
    %150 = arith.subi %c7_i32_49, %c2_i32_48 : i32
    %c2_i32_50 = arith.constant 2 : i32
    %151 = arith.muli %c2_i32_48, %c2_i32_50 : i32
    %152 = arith.index_cast %151 : i32 to index
    %c0_51 = arith.constant 0 : index
    %153 = vector.load %arg11[%152, %c0_51] : memref<16x128xf32, #tpu.memory_space<vmem>>, vector<2x128xf32>
    %cst_52 = arith.constant dense<0.000000e+00> : vector<2x128xf32>
    %154 = tpu.matmul %106, %13, %cst_52 {dimension_numbers = #tpu.dot_dimension_numbers<[1], [0], [0], [1], [0, 0, 1, 1], [], []>} : vector<2x32xf32>, vector<32x128xf32>, vector<2x128xf32> -> vector<2x128xf32>
    %155 = arith.addf %153, %154 : vector<2x128xf32>
    %156 = vector.extract_strided_slice %155 {offsets = [0, 0], sizes = [2, 96], strides = [1, 1]} : vector<2x128xf32> to vector<2x96xf32>
    %157 = arith.negf %156 : vector<2x96xf32>
    %158 = math.exp %157 : vector<2x96xf32>
    %cst_53 = arith.constant 1.000000e+00 : f32
    %159 = vector.broadcast %cst_53 : f32 to vector<2x96xf32>
    %160 = arith.addf %159, %158 : vector<2x96xf32>
    %161 = arith.divf %159, %160 : vector<2x96xf32>
    %162 = vector.extract_strided_slice %161 {offsets = [0, 0], sizes = [2, 32], strides = [1, 1]} : vector<2x96xf32> to vector<2x32xf32>
    %163 = vector.extract_strided_slice %161 {offsets = [0, 32], sizes = [2, 32], strides = [1, 1]} : vector<2x96xf32> to vector<2x32xf32>
    %164 = vector.extract_strided_slice %161 {offsets = [0, 64], sizes = [2, 32], strides = [1, 1]} : vector<2x96xf32> to vector<2x32xf32>
    %165 = vector.extract_strided_slice %155 {offsets = [0, 96], sizes = [2, 32], strides = [1, 1]} : vector<2x128xf32> to vector<2x32xf32>
    %166 = math.tanh %165 : vector<2x32xf32>
    %167 = arith.mulf %163, %104 : vector<2x32xf32>
    %168 = arith.mulf %162, %166 : vector<2x32xf32>
    %169 = arith.addf %167, %168 : vector<2x32xf32>
    %170 = math.tanh %169 : vector<2x32xf32>
    %171 = arith.mulf %164, %170 : vector<2x32xf32>
    %c2_i32_54 = arith.constant 2 : i32
    %172 = arith.muli %150, %c2_i32_54 : i32
    %173 = arith.index_cast %172 : i32 to index
    %c0_55 = arith.constant 0 : index
    %174 = vector.load %arg12[%173, %c0_55] : memref<16x128xf32, #tpu.memory_space<vmem>>, vector<2x128xf32>
    %cst_56 = arith.constant dense<0.000000e+00> : vector<2x128xf32>
    %175 = tpu.matmul %127, %14, %cst_56 {dimension_numbers = #tpu.dot_dimension_numbers<[1], [0], [0], [1], [0, 0, 1, 1], [], []>} : vector<2x32xf32>, vector<32x128xf32>, vector<2x128xf32> -> vector<2x128xf32>
    %176 = arith.addf %174, %175 : vector<2x128xf32>
    %177 = vector.extract_strided_slice %176 {offsets = [0, 0], sizes = [2, 96], strides = [1, 1]} : vector<2x128xf32> to vector<2x96xf32>
    %178 = arith.negf %177 : vector<2x96xf32>
    %179 = math.exp %178 : vector<2x96xf32>
    %cst_57 = arith.constant 1.000000e+00 : f32
    %180 = vector.broadcast %cst_57 : f32 to vector<2x96xf32>
    %181 = arith.addf %180, %179 : vector<2x96xf32>
    %182 = arith.divf %180, %181 : vector<2x96xf32>
    %183 = vector.extract_strided_slice %182 {offsets = [0, 0], sizes = [2, 32], strides = [1, 1]} : vector<2x96xf32> to vector<2x32xf32>
    %184 = vector.extract_strided_slice %182 {offsets = [0, 32], sizes = [2, 32], strides = [1, 1]} : vector<2x96xf32> to vector<2x32xf32>
    %185 = vector.extract_strided_slice %182 {offsets = [0, 64], sizes = [2, 32], strides = [1, 1]} : vector<2x96xf32> to vector<2x32xf32>
    %186 = vector.extract_strided_slice %176 {offsets = [0, 96], sizes = [2, 32], strides = [1, 1]} : vector<2x128xf32> to vector<2x32xf32>
    %187 = math.tanh %186 : vector<2x32xf32>
    %188 = arith.mulf %184, %125 : vector<2x32xf32>
    %189 = arith.mulf %183, %187 : vector<2x32xf32>
    %190 = arith.addf %188, %189 : vector<2x32xf32>
    %191 = math.tanh %190 : vector<2x32xf32>
    %192 = arith.mulf %185, %191 : vector<2x32xf32>
    %193 = vector.broadcast %15 : vector<1x32xf32> to vector<2x32xf32>
    %194 = arith.mulf %171, %193 : vector<2x32xf32>
    %cst_58 = arith.constant dense<0.000000e+00> : vector<2xf32>
    %195 = vector.multi_reduction <add>, %194, %cst_58 [1] : vector<2x32xf32> to vector<2xf32>
    %196 = vector.shape_cast %195 : vector<2xf32> to vector<2x1xf32>
    %197 = vector.broadcast %16 : vector<1x32xf32> to vector<2x32xf32>
    %198 = arith.mulf %192, %197 : vector<2x32xf32>
    %cst_59 = arith.constant dense<0.000000e+00> : vector<2xf32>
    %199 = vector.multi_reduction <add>, %198, %cst_59 [1] : vector<2x32xf32> to vector<2xf32>
    %200 = vector.shape_cast %199 : vector<2xf32> to vector<2x1xf32>
    %201 = vector.broadcast %c2_i32_48 : i32 to vector<2x8xi32>
    %202 = arith.cmpi eq, %17, %201 : vector<2x8xi32>
    %cst_60 = arith.constant 0.000000e+00 : f32
    %203 = vector.shape_cast %196 : vector<2x1xf32> to vector<2x1xf32>
    %204 = vector.broadcast %203 : vector<2x1xf32> to vector<2x8xf32>
    %205 = vector.broadcast %cst_60 : f32 to vector<2x8xf32>
    %206 = arith.select %202, %204, %205 : vector<2x8xi1>, vector<2x8xf32>
    %207 = arith.addf %149, %206 : vector<2x8xf32>
    %208 = vector.broadcast %150 : i32 to vector<2x8xi32>
    %209 = arith.cmpi eq, %17, %208 : vector<2x8xi32>
    %cst_61 = arith.constant 0.000000e+00 : f32
    %210 = vector.shape_cast %200 : vector<2x1xf32> to vector<2x1xf32>
    %211 = vector.broadcast %210 : vector<2x1xf32> to vector<2x8xf32>
    %212 = vector.broadcast %cst_61 : f32 to vector<2x8xf32>
    %213 = arith.select %209, %211, %212 : vector<2x8xi1>, vector<2x8xf32>
    %214 = arith.addf %207, %213 : vector<2x8xf32>
    %c3_i32 = arith.constant 3 : i32
    %c7_i32_62 = arith.constant 7 : i32
    %215 = arith.subi %c7_i32_62, %c3_i32 : i32
    %c2_i32_63 = arith.constant 2 : i32
    %216 = arith.muli %c3_i32, %c2_i32_63 : i32
    %217 = arith.index_cast %216 : i32 to index
    %c0_64 = arith.constant 0 : index
    %218 = vector.load %arg11[%217, %c0_64] : memref<16x128xf32, #tpu.memory_space<vmem>>, vector<2x128xf32>
    %cst_65 = arith.constant dense<0.000000e+00> : vector<2x128xf32>
    %219 = tpu.matmul %171, %13, %cst_65 {dimension_numbers = #tpu.dot_dimension_numbers<[1], [0], [0], [1], [0, 0, 1, 1], [], []>} : vector<2x32xf32>, vector<32x128xf32>, vector<2x128xf32> -> vector<2x128xf32>
    %220 = arith.addf %218, %219 : vector<2x128xf32>
    %221 = vector.extract_strided_slice %220 {offsets = [0, 0], sizes = [2, 96], strides = [1, 1]} : vector<2x128xf32> to vector<2x96xf32>
    %222 = arith.negf %221 : vector<2x96xf32>
    %223 = math.exp %222 : vector<2x96xf32>
    %cst_66 = arith.constant 1.000000e+00 : f32
    %224 = vector.broadcast %cst_66 : f32 to vector<2x96xf32>
    %225 = arith.addf %224, %223 : vector<2x96xf32>
    %226 = arith.divf %224, %225 : vector<2x96xf32>
    %227 = vector.extract_strided_slice %226 {offsets = [0, 0], sizes = [2, 32], strides = [1, 1]} : vector<2x96xf32> to vector<2x32xf32>
    %228 = vector.extract_strided_slice %226 {offsets = [0, 32], sizes = [2, 32], strides = [1, 1]} : vector<2x96xf32> to vector<2x32xf32>
    %229 = vector.extract_strided_slice %226 {offsets = [0, 64], sizes = [2, 32], strides = [1, 1]} : vector<2x96xf32> to vector<2x32xf32>
    %230 = vector.extract_strided_slice %220 {offsets = [0, 96], sizes = [2, 32], strides = [1, 1]} : vector<2x128xf32> to vector<2x32xf32>
    %231 = math.tanh %230 : vector<2x32xf32>
    %232 = arith.mulf %228, %169 : vector<2x32xf32>
    %233 = arith.mulf %227, %231 : vector<2x32xf32>
    %234 = arith.addf %232, %233 : vector<2x32xf32>
    %235 = math.tanh %234 : vector<2x32xf32>
    %236 = arith.mulf %229, %235 : vector<2x32xf32>
    %c2_i32_67 = arith.constant 2 : i32
    %237 = arith.muli %215, %c2_i32_67 : i32
    %238 = arith.index_cast %237 : i32 to index
    %c0_68 = arith.constant 0 : index
    %239 = vector.load %arg12[%238, %c0_68] : memref<16x128xf32, #tpu.memory_space<vmem>>, vector<2x128xf32>
    %cst_69 = arith.constant dense<0.000000e+00> : vector<2x128xf32>
    %240 = tpu.matmul %192, %14, %cst_69 {dimension_numbers = #tpu.dot_dimension_numbers<[1], [0], [0], [1], [0, 0, 1, 1], [], []>} : vector<2x32xf32>, vector<32x128xf32>, vector<2x128xf32> -> vector<2x128xf32>
    %241 = arith.addf %239, %240 : vector<2x128xf32>
    %242 = vector.extract_strided_slice %241 {offsets = [0, 0], sizes = [2, 96], strides = [1, 1]} : vector<2x128xf32> to vector<2x96xf32>
    %243 = arith.negf %242 : vector<2x96xf32>
    %244 = math.exp %243 : vector<2x96xf32>
    %cst_70 = arith.constant 1.000000e+00 : f32
    %245 = vector.broadcast %cst_70 : f32 to vector<2x96xf32>
    %246 = arith.addf %245, %244 : vector<2x96xf32>
    %247 = arith.divf %245, %246 : vector<2x96xf32>
    %248 = vector.extract_strided_slice %247 {offsets = [0, 0], sizes = [2, 32], strides = [1, 1]} : vector<2x96xf32> to vector<2x32xf32>
    %249 = vector.extract_strided_slice %247 {offsets = [0, 32], sizes = [2, 32], strides = [1, 1]} : vector<2x96xf32> to vector<2x32xf32>
    %250 = vector.extract_strided_slice %247 {offsets = [0, 64], sizes = [2, 32], strides = [1, 1]} : vector<2x96xf32> to vector<2x32xf32>
    %251 = vector.extract_strided_slice %241 {offsets = [0, 96], sizes = [2, 32], strides = [1, 1]} : vector<2x128xf32> to vector<2x32xf32>
    %252 = math.tanh %251 : vector<2x32xf32>
    %253 = arith.mulf %249, %190 : vector<2x32xf32>
    %254 = arith.mulf %248, %252 : vector<2x32xf32>
    %255 = arith.addf %253, %254 : vector<2x32xf32>
    %256 = math.tanh %255 : vector<2x32xf32>
    %257 = arith.mulf %250, %256 : vector<2x32xf32>
    %258 = vector.broadcast %15 : vector<1x32xf32> to vector<2x32xf32>
    %259 = arith.mulf %236, %258 : vector<2x32xf32>
    %cst_71 = arith.constant dense<0.000000e+00> : vector<2xf32>
    %260 = vector.multi_reduction <add>, %259, %cst_71 [1] : vector<2x32xf32> to vector<2xf32>
    %261 = vector.shape_cast %260 : vector<2xf32> to vector<2x1xf32>
    %262 = vector.broadcast %16 : vector<1x32xf32> to vector<2x32xf32>
    %263 = arith.mulf %257, %262 : vector<2x32xf32>
    %cst_72 = arith.constant dense<0.000000e+00> : vector<2xf32>
    %264 = vector.multi_reduction <add>, %263, %cst_72 [1] : vector<2x32xf32> to vector<2xf32>
    %265 = vector.shape_cast %264 : vector<2xf32> to vector<2x1xf32>
    %266 = vector.broadcast %c3_i32 : i32 to vector<2x8xi32>
    %267 = arith.cmpi eq, %17, %266 : vector<2x8xi32>
    %cst_73 = arith.constant 0.000000e+00 : f32
    %268 = vector.shape_cast %261 : vector<2x1xf32> to vector<2x1xf32>
    %269 = vector.broadcast %268 : vector<2x1xf32> to vector<2x8xf32>
    %270 = vector.broadcast %cst_73 : f32 to vector<2x8xf32>
    %271 = arith.select %267, %269, %270 : vector<2x8xi1>, vector<2x8xf32>
    %272 = arith.addf %214, %271 : vector<2x8xf32>
    %273 = vector.broadcast %215 : i32 to vector<2x8xi32>
    %274 = arith.cmpi eq, %17, %273 : vector<2x8xi32>
    %cst_74 = arith.constant 0.000000e+00 : f32
    %275 = vector.shape_cast %265 : vector<2x1xf32> to vector<2x1xf32>
    %276 = vector.broadcast %275 : vector<2x1xf32> to vector<2x8xf32>
    %277 = vector.broadcast %cst_74 : f32 to vector<2x8xf32>
    %278 = arith.select %274, %276, %277 : vector<2x8xi1>, vector<2x8xf32>
    %279 = arith.addf %272, %278 : vector<2x8xf32>
    %c4_i32 = arith.constant 4 : i32
    %c7_i32_75 = arith.constant 7 : i32
    %280 = arith.subi %c7_i32_75, %c4_i32 : i32
    %c2_i32_76 = arith.constant 2 : i32
    %281 = arith.muli %c4_i32, %c2_i32_76 : i32
    %282 = arith.index_cast %281 : i32 to index
    %c0_77 = arith.constant 0 : index
    %283 = vector.load %arg11[%282, %c0_77] : memref<16x128xf32, #tpu.memory_space<vmem>>, vector<2x128xf32>
    %cst_78 = arith.constant dense<0.000000e+00> : vector<2x128xf32>
    %284 = tpu.matmul %236, %13, %cst_78 {dimension_numbers = #tpu.dot_dimension_numbers<[1], [0], [0], [1], [0, 0, 1, 1], [], []>} : vector<2x32xf32>, vector<32x128xf32>, vector<2x128xf32> -> vector<2x128xf32>
    %285 = arith.addf %283, %284 : vector<2x128xf32>
    %286 = vector.extract_strided_slice %285 {offsets = [0, 0], sizes = [2, 96], strides = [1, 1]} : vector<2x128xf32> to vector<2x96xf32>
    %287 = arith.negf %286 : vector<2x96xf32>
    %288 = math.exp %287 : vector<2x96xf32>
    %cst_79 = arith.constant 1.000000e+00 : f32
    %289 = vector.broadcast %cst_79 : f32 to vector<2x96xf32>
    %290 = arith.addf %289, %288 : vector<2x96xf32>
    %291 = arith.divf %289, %290 : vector<2x96xf32>
    %292 = vector.extract_strided_slice %291 {offsets = [0, 0], sizes = [2, 32], strides = [1, 1]} : vector<2x96xf32> to vector<2x32xf32>
    %293 = vector.extract_strided_slice %291 {offsets = [0, 32], sizes = [2, 32], strides = [1, 1]} : vector<2x96xf32> to vector<2x32xf32>
    %294 = vector.extract_strided_slice %291 {offsets = [0, 64], sizes = [2, 32], strides = [1, 1]} : vector<2x96xf32> to vector<2x32xf32>
    %295 = vector.extract_strided_slice %285 {offsets = [0, 96], sizes = [2, 32], strides = [1, 1]} : vector<2x128xf32> to vector<2x32xf32>
    %296 = math.tanh %295 : vector<2x32xf32>
    %297 = arith.mulf %293, %234 : vector<2x32xf32>
    %298 = arith.mulf %292, %296 : vector<2x32xf32>
    %299 = arith.addf %297, %298 : vector<2x32xf32>
    %300 = math.tanh %299 : vector<2x32xf32>
    %301 = arith.mulf %294, %300 : vector<2x32xf32>
    %c2_i32_80 = arith.constant 2 : i32
    %302 = arith.muli %280, %c2_i32_80 : i32
    %303 = arith.index_cast %302 : i32 to index
    %c0_81 = arith.constant 0 : index
    %304 = vector.load %arg12[%303, %c0_81] : memref<16x128xf32, #tpu.memory_space<vmem>>, vector<2x128xf32>
    %cst_82 = arith.constant dense<0.000000e+00> : vector<2x128xf32>
    %305 = tpu.matmul %257, %14, %cst_82 {dimension_numbers = #tpu.dot_dimension_numbers<[1], [0], [0], [1], [0, 0, 1, 1], [], []>} : vector<2x32xf32>, vector<32x128xf32>, vector<2x128xf32> -> vector<2x128xf32>
    %306 = arith.addf %304, %305 : vector<2x128xf32>
    %307 = vector.extract_strided_slice %306 {offsets = [0, 0], sizes = [2, 96], strides = [1, 1]} : vector<2x128xf32> to vector<2x96xf32>
    %308 = arith.negf %307 : vector<2x96xf32>
    %309 = math.exp %308 : vector<2x96xf32>
    %cst_83 = arith.constant 1.000000e+00 : f32
    %310 = vector.broadcast %cst_83 : f32 to vector<2x96xf32>
    %311 = arith.addf %310, %309 : vector<2x96xf32>
    %312 = arith.divf %310, %311 : vector<2x96xf32>
    %313 = vector.extract_strided_slice %312 {offsets = [0, 0], sizes = [2, 32], strides = [1, 1]} : vector<2x96xf32> to vector<2x32xf32>
    %314 = vector.extract_strided_slice %312 {offsets = [0, 32], sizes = [2, 32], strides = [1, 1]} : vector<2x96xf32> to vector<2x32xf32>
    %315 = vector.extract_strided_slice %312 {offsets = [0, 64], sizes = [2, 32], strides = [1, 1]} : vector<2x96xf32> to vector<2x32xf32>
    %316 = vector.extract_strided_slice %306 {offsets = [0, 96], sizes = [2, 32], strides = [1, 1]} : vector<2x128xf32> to vector<2x32xf32>
    %317 = math.tanh %316 : vector<2x32xf32>
    %318 = arith.mulf %314, %255 : vector<2x32xf32>
    %319 = arith.mulf %313, %317 : vector<2x32xf32>
    %320 = arith.addf %318, %319 : vector<2x32xf32>
    %321 = math.tanh %320 : vector<2x32xf32>
    %322 = arith.mulf %315, %321 : vector<2x32xf32>
    %323 = vector.broadcast %15 : vector<1x32xf32> to vector<2x32xf32>
    %324 = arith.mulf %301, %323 : vector<2x32xf32>
    %cst_84 = arith.constant dense<0.000000e+00> : vector<2xf32>
    %325 = vector.multi_reduction <add>, %324, %cst_84 [1] : vector<2x32xf32> to vector<2xf32>
    %326 = vector.shape_cast %325 : vector<2xf32> to vector<2x1xf32>
    %327 = vector.broadcast %16 : vector<1x32xf32> to vector<2x32xf32>
    %328 = arith.mulf %322, %327 : vector<2x32xf32>
    %cst_85 = arith.constant dense<0.000000e+00> : vector<2xf32>
    %329 = vector.multi_reduction <add>, %328, %cst_85 [1] : vector<2x32xf32> to vector<2xf32>
    %330 = vector.shape_cast %329 : vector<2xf32> to vector<2x1xf32>
    %331 = vector.broadcast %c4_i32 : i32 to vector<2x8xi32>
    %332 = arith.cmpi eq, %17, %331 : vector<2x8xi32>
    %cst_86 = arith.constant 0.000000e+00 : f32
    %333 = vector.shape_cast %326 : vector<2x1xf32> to vector<2x1xf32>
    %334 = vector.broadcast %333 : vector<2x1xf32> to vector<2x8xf32>
    %335 = vector.broadcast %cst_86 : f32 to vector<2x8xf32>
    %336 = arith.select %332, %334, %335 : vector<2x8xi1>, vector<2x8xf32>
    %337 = arith.addf %279, %336 : vector<2x8xf32>
    %338 = vector.broadcast %280 : i32 to vector<2x8xi32>
    %339 = arith.cmpi eq, %17, %338 : vector<2x8xi32>
    %cst_87 = arith.constant 0.000000e+00 : f32
    %340 = vector.shape_cast %330 : vector<2x1xf32> to vector<2x1xf32>
    %341 = vector.broadcast %340 : vector<2x1xf32> to vector<2x8xf32>
    %342 = vector.broadcast %cst_87 : f32 to vector<2x8xf32>
    %343 = arith.select %339, %341, %342 : vector<2x8xi1>, vector<2x8xf32>
    %344 = arith.addf %337, %343 : vector<2x8xf32>
    %c5_i32 = arith.constant 5 : i32
    %c7_i32_88 = arith.constant 7 : i32
    %345 = arith.subi %c7_i32_88, %c5_i32 : i32
    %c2_i32_89 = arith.constant 2 : i32
    %346 = arith.muli %c5_i32, %c2_i32_89 : i32
    %347 = arith.index_cast %346 : i32 to index
    %c0_90 = arith.constant 0 : index
    %348 = vector.load %arg11[%347, %c0_90] : memref<16x128xf32, #tpu.memory_space<vmem>>, vector<2x128xf32>
    %cst_91 = arith.constant dense<0.000000e+00> : vector<2x128xf32>
    %349 = tpu.matmul %301, %13, %cst_91 {dimension_numbers = #tpu.dot_dimension_numbers<[1], [0], [0], [1], [0, 0, 1, 1], [], []>} : vector<2x32xf32>, vector<32x128xf32>, vector<2x128xf32> -> vector<2x128xf32>
    %350 = arith.addf %348, %349 : vector<2x128xf32>
    %351 = vector.extract_strided_slice %350 {offsets = [0, 0], sizes = [2, 96], strides = [1, 1]} : vector<2x128xf32> to vector<2x96xf32>
    %352 = arith.negf %351 : vector<2x96xf32>
    %353 = math.exp %352 : vector<2x96xf32>
    %cst_92 = arith.constant 1.000000e+00 : f32
    %354 = vector.broadcast %cst_92 : f32 to vector<2x96xf32>
    %355 = arith.addf %354, %353 : vector<2x96xf32>
    %356 = arith.divf %354, %355 : vector<2x96xf32>
    %357 = vector.extract_strided_slice %356 {offsets = [0, 0], sizes = [2, 32], strides = [1, 1]} : vector<2x96xf32> to vector<2x32xf32>
    %358 = vector.extract_strided_slice %356 {offsets = [0, 32], sizes = [2, 32], strides = [1, 1]} : vector<2x96xf32> to vector<2x32xf32>
    %359 = vector.extract_strided_slice %356 {offsets = [0, 64], sizes = [2, 32], strides = [1, 1]} : vector<2x96xf32> to vector<2x32xf32>
    %360 = vector.extract_strided_slice %350 {offsets = [0, 96], sizes = [2, 32], strides = [1, 1]} : vector<2x128xf32> to vector<2x32xf32>
    %361 = math.tanh %360 : vector<2x32xf32>
    %362 = arith.mulf %358, %299 : vector<2x32xf32>
    %363 = arith.mulf %357, %361 : vector<2x32xf32>
    %364 = arith.addf %362, %363 : vector<2x32xf32>
    %365 = math.tanh %364 : vector<2x32xf32>
    %366 = arith.mulf %359, %365 : vector<2x32xf32>
    %c2_i32_93 = arith.constant 2 : i32
    %367 = arith.muli %345, %c2_i32_93 : i32
    %368 = arith.index_cast %367 : i32 to index
    %c0_94 = arith.constant 0 : index
    %369 = vector.load %arg12[%368, %c0_94] : memref<16x128xf32, #tpu.memory_space<vmem>>, vector<2x128xf32>
    %cst_95 = arith.constant dense<0.000000e+00> : vector<2x128xf32>
    %370 = tpu.matmul %322, %14, %cst_95 {dimension_numbers = #tpu.dot_dimension_numbers<[1], [0], [0], [1], [0, 0, 1, 1], [], []>} : vector<2x32xf32>, vector<32x128xf32>, vector<2x128xf32> -> vector<2x128xf32>
    %371 = arith.addf %369, %370 : vector<2x128xf32>
    %372 = vector.extract_strided_slice %371 {offsets = [0, 0], sizes = [2, 96], strides = [1, 1]} : vector<2x128xf32> to vector<2x96xf32>
    %373 = arith.negf %372 : vector<2x96xf32>
    %374 = math.exp %373 : vector<2x96xf32>
    %cst_96 = arith.constant 1.000000e+00 : f32
    %375 = vector.broadcast %cst_96 : f32 to vector<2x96xf32>
    %376 = arith.addf %375, %374 : vector<2x96xf32>
    %377 = arith.divf %375, %376 : vector<2x96xf32>
    %378 = vector.extract_strided_slice %377 {offsets = [0, 0], sizes = [2, 32], strides = [1, 1]} : vector<2x96xf32> to vector<2x32xf32>
    %379 = vector.extract_strided_slice %377 {offsets = [0, 32], sizes = [2, 32], strides = [1, 1]} : vector<2x96xf32> to vector<2x32xf32>
    %380 = vector.extract_strided_slice %377 {offsets = [0, 64], sizes = [2, 32], strides = [1, 1]} : vector<2x96xf32> to vector<2x32xf32>
    %381 = vector.extract_strided_slice %371 {offsets = [0, 96], sizes = [2, 32], strides = [1, 1]} : vector<2x128xf32> to vector<2x32xf32>
    %382 = math.tanh %381 : vector<2x32xf32>
    %383 = arith.mulf %379, %320 : vector<2x32xf32>
    %384 = arith.mulf %378, %382 : vector<2x32xf32>
    %385 = arith.addf %383, %384 : vector<2x32xf32>
    %386 = math.tanh %385 : vector<2x32xf32>
    %387 = arith.mulf %380, %386 : vector<2x32xf32>
    %388 = vector.broadcast %15 : vector<1x32xf32> to vector<2x32xf32>
    %389 = arith.mulf %366, %388 : vector<2x32xf32>
    %cst_97 = arith.constant dense<0.000000e+00> : vector<2xf32>
    %390 = vector.multi_reduction <add>, %389, %cst_97 [1] : vector<2x32xf32> to vector<2xf32>
    %391 = vector.shape_cast %390 : vector<2xf32> to vector<2x1xf32>
    %392 = vector.broadcast %16 : vector<1x32xf32> to vector<2x32xf32>
    %393 = arith.mulf %387, %392 : vector<2x32xf32>
    %cst_98 = arith.constant dense<0.000000e+00> : vector<2xf32>
    %394 = vector.multi_reduction <add>, %393, %cst_98 [1] : vector<2x32xf32> to vector<2xf32>
    %395 = vector.shape_cast %394 : vector<2xf32> to vector<2x1xf32>
    %396 = vector.broadcast %c5_i32 : i32 to vector<2x8xi32>
    %397 = arith.cmpi eq, %17, %396 : vector<2x8xi32>
    %cst_99 = arith.constant 0.000000e+00 : f32
    %398 = vector.shape_cast %391 : vector<2x1xf32> to vector<2x1xf32>
    %399 = vector.broadcast %398 : vector<2x1xf32> to vector<2x8xf32>
    %400 = vector.broadcast %cst_99 : f32 to vector<2x8xf32>
    %401 = arith.select %397, %399, %400 : vector<2x8xi1>, vector<2x8xf32>
    %402 = arith.addf %344, %401 : vector<2x8xf32>
    %403 = vector.broadcast %345 : i32 to vector<2x8xi32>
    %404 = arith.cmpi eq, %17, %403 : vector<2x8xi32>
    %cst_100 = arith.constant 0.000000e+00 : f32
    %405 = vector.shape_cast %395 : vector<2x1xf32> to vector<2x1xf32>
    %406 = vector.broadcast %405 : vector<2x1xf32> to vector<2x8xf32>
    %407 = vector.broadcast %cst_100 : f32 to vector<2x8xf32>
    %408 = arith.select %404, %406, %407 : vector<2x8xi1>, vector<2x8xf32>
    %409 = arith.addf %402, %408 : vector<2x8xf32>
    %c6_i32 = arith.constant 6 : i32
    %c7_i32_101 = arith.constant 7 : i32
    %410 = arith.subi %c7_i32_101, %c6_i32 : i32
    %c2_i32_102 = arith.constant 2 : i32
    %411 = arith.muli %c6_i32, %c2_i32_102 : i32
    %412 = arith.index_cast %411 : i32 to index
    %c0_103 = arith.constant 0 : index
    %413 = vector.load %arg11[%412, %c0_103] : memref<16x128xf32, #tpu.memory_space<vmem>>, vector<2x128xf32>
    %cst_104 = arith.constant dense<0.000000e+00> : vector<2x128xf32>
    %414 = tpu.matmul %366, %13, %cst_104 {dimension_numbers = #tpu.dot_dimension_numbers<[1], [0], [0], [1], [0, 0, 1, 1], [], []>} : vector<2x32xf32>, vector<32x128xf32>, vector<2x128xf32> -> vector<2x128xf32>
    %415 = arith.addf %413, %414 : vector<2x128xf32>
    %416 = vector.extract_strided_slice %415 {offsets = [0, 0], sizes = [2, 96], strides = [1, 1]} : vector<2x128xf32> to vector<2x96xf32>
    %417 = arith.negf %416 : vector<2x96xf32>
    %418 = math.exp %417 : vector<2x96xf32>
    %cst_105 = arith.constant 1.000000e+00 : f32
    %419 = vector.broadcast %cst_105 : f32 to vector<2x96xf32>
    %420 = arith.addf %419, %418 : vector<2x96xf32>
    %421 = arith.divf %419, %420 : vector<2x96xf32>
    %422 = vector.extract_strided_slice %421 {offsets = [0, 0], sizes = [2, 32], strides = [1, 1]} : vector<2x96xf32> to vector<2x32xf32>
    %423 = vector.extract_strided_slice %421 {offsets = [0, 32], sizes = [2, 32], strides = [1, 1]} : vector<2x96xf32> to vector<2x32xf32>
    %424 = vector.extract_strided_slice %421 {offsets = [0, 64], sizes = [2, 32], strides = [1, 1]} : vector<2x96xf32> to vector<2x32xf32>
    %425 = vector.extract_strided_slice %415 {offsets = [0, 96], sizes = [2, 32], strides = [1, 1]} : vector<2x128xf32> to vector<2x32xf32>
    %426 = math.tanh %425 : vector<2x32xf32>
    %427 = arith.mulf %423, %364 : vector<2x32xf32>
    %428 = arith.mulf %422, %426 : vector<2x32xf32>
    %429 = arith.addf %427, %428 : vector<2x32xf32>
    %430 = math.tanh %429 : vector<2x32xf32>
    %431 = arith.mulf %424, %430 : vector<2x32xf32>
    %c2_i32_106 = arith.constant 2 : i32
    %432 = arith.muli %410, %c2_i32_106 : i32
    %433 = arith.index_cast %432 : i32 to index
    %c0_107 = arith.constant 0 : index
    %434 = vector.load %arg12[%433, %c0_107] : memref<16x128xf32, #tpu.memory_space<vmem>>, vector<2x128xf32>
    %cst_108 = arith.constant dense<0.000000e+00> : vector<2x128xf32>
    %435 = tpu.matmul %387, %14, %cst_108 {dimension_numbers = #tpu.dot_dimension_numbers<[1], [0], [0], [1], [0, 0, 1, 1], [], []>} : vector<2x32xf32>, vector<32x128xf32>, vector<2x128xf32> -> vector<2x128xf32>
    %436 = arith.addf %434, %435 : vector<2x128xf32>
    %437 = vector.extract_strided_slice %436 {offsets = [0, 0], sizes = [2, 96], strides = [1, 1]} : vector<2x128xf32> to vector<2x96xf32>
    %438 = arith.negf %437 : vector<2x96xf32>
    %439 = math.exp %438 : vector<2x96xf32>
    %cst_109 = arith.constant 1.000000e+00 : f32
    %440 = vector.broadcast %cst_109 : f32 to vector<2x96xf32>
    %441 = arith.addf %440, %439 : vector<2x96xf32>
    %442 = arith.divf %440, %441 : vector<2x96xf32>
    %443 = vector.extract_strided_slice %442 {offsets = [0, 0], sizes = [2, 32], strides = [1, 1]} : vector<2x96xf32> to vector<2x32xf32>
    %444 = vector.extract_strided_slice %442 {offsets = [0, 32], sizes = [2, 32], strides = [1, 1]} : vector<2x96xf32> to vector<2x32xf32>
    %445 = vector.extract_strided_slice %442 {offsets = [0, 64], sizes = [2, 32], strides = [1, 1]} : vector<2x96xf32> to vector<2x32xf32>
    %446 = vector.extract_strided_slice %436 {offsets = [0, 96], sizes = [2, 32], strides = [1, 1]} : vector<2x128xf32> to vector<2x32xf32>
    %447 = math.tanh %446 : vector<2x32xf32>
    %448 = arith.mulf %444, %385 : vector<2x32xf32>
    %449 = arith.mulf %443, %447 : vector<2x32xf32>
    %450 = arith.addf %448, %449 : vector<2x32xf32>
    %451 = math.tanh %450 : vector<2x32xf32>
    %452 = arith.mulf %445, %451 : vector<2x32xf32>
    %453 = vector.broadcast %15 : vector<1x32xf32> to vector<2x32xf32>
    %454 = arith.mulf %431, %453 : vector<2x32xf32>
    %cst_110 = arith.constant dense<0.000000e+00> : vector<2xf32>
    %455 = vector.multi_reduction <add>, %454, %cst_110 [1] : vector<2x32xf32> to vector<2xf32>
    %456 = vector.shape_cast %455 : vector<2xf32> to vector<2x1xf32>
    %457 = vector.broadcast %16 : vector<1x32xf32> to vector<2x32xf32>
    %458 = arith.mulf %452, %457 : vector<2x32xf32>
    %cst_111 = arith.constant dense<0.000000e+00> : vector<2xf32>
    %459 = vector.multi_reduction <add>, %458, %cst_111 [1] : vector<2x32xf32> to vector<2xf32>
    %460 = vector.shape_cast %459 : vector<2xf32> to vector<2x1xf32>
    %461 = vector.broadcast %c6_i32 : i32 to vector<2x8xi32>
    %462 = arith.cmpi eq, %17, %461 : vector<2x8xi32>
    %cst_112 = arith.constant 0.000000e+00 : f32
    %463 = vector.shape_cast %456 : vector<2x1xf32> to vector<2x1xf32>
    %464 = vector.broadcast %463 : vector<2x1xf32> to vector<2x8xf32>
    %465 = vector.broadcast %cst_112 : f32 to vector<2x8xf32>
    %466 = arith.select %462, %464, %465 : vector<2x8xi1>, vector<2x8xf32>
    %467 = arith.addf %409, %466 : vector<2x8xf32>
    %468 = vector.broadcast %410 : i32 to vector<2x8xi32>
    %469 = arith.cmpi eq, %17, %468 : vector<2x8xi32>
    %cst_113 = arith.constant 0.000000e+00 : f32
    %470 = vector.shape_cast %460 : vector<2x1xf32> to vector<2x1xf32>
    %471 = vector.broadcast %470 : vector<2x1xf32> to vector<2x8xf32>
    %472 = vector.broadcast %cst_113 : f32 to vector<2x8xf32>
    %473 = arith.select %469, %471, %472 : vector<2x8xi1>, vector<2x8xf32>
    %474 = arith.addf %467, %473 : vector<2x8xf32>
    %c7_i32_114 = arith.constant 7 : i32
    %c7_i32_115 = arith.constant 7 : i32
    %475 = arith.subi %c7_i32_115, %c7_i32_114 : i32
    %c2_i32_116 = arith.constant 2 : i32
    %476 = arith.muli %c7_i32_114, %c2_i32_116 : i32
    %477 = arith.index_cast %476 : i32 to index
    %c0_117 = arith.constant 0 : index
    %478 = vector.load %arg11[%477, %c0_117] : memref<16x128xf32, #tpu.memory_space<vmem>>, vector<2x128xf32>
    %cst_118 = arith.constant dense<0.000000e+00> : vector<2x128xf32>
    %479 = tpu.matmul %431, %13, %cst_118 {dimension_numbers = #tpu.dot_dimension_numbers<[1], [0], [0], [1], [0, 0, 1, 1], [], []>} : vector<2x32xf32>, vector<32x128xf32>, vector<2x128xf32> -> vector<2x128xf32>
    %480 = arith.addf %478, %479 : vector<2x128xf32>
    %481 = vector.extract_strided_slice %480 {offsets = [0, 0], sizes = [2, 96], strides = [1, 1]} : vector<2x128xf32> to vector<2x96xf32>
    %482 = arith.negf %481 : vector<2x96xf32>
    %483 = math.exp %482 : vector<2x96xf32>
    %cst_119 = arith.constant 1.000000e+00 : f32
    %484 = vector.broadcast %cst_119 : f32 to vector<2x96xf32>
    %485 = arith.addf %484, %483 : vector<2x96xf32>
    %486 = arith.divf %484, %485 : vector<2x96xf32>
    %487 = vector.extract_strided_slice %486 {offsets = [0, 0], sizes = [2, 32], strides = [1, 1]} : vector<2x96xf32> to vector<2x32xf32>
    %488 = vector.extract_strided_slice %486 {offsets = [0, 32], sizes = [2, 32], strides = [1, 1]} : vector<2x96xf32> to vector<2x32xf32>
    %489 = vector.extract_strided_slice %486 {offsets = [0, 64], sizes = [2, 32], strides = [1, 1]} : vector<2x96xf32> to vector<2x32xf32>
    %490 = vector.extract_strided_slice %480 {offsets = [0, 96], sizes = [2, 32], strides = [1, 1]} : vector<2x128xf32> to vector<2x32xf32>
    %491 = math.tanh %490 : vector<2x32xf32>
    %492 = arith.mulf %488, %429 : vector<2x32xf32>
    %493 = arith.mulf %487, %491 : vector<2x32xf32>
    %494 = arith.addf %492, %493 : vector<2x32xf32>
    %495 = math.tanh %494 : vector<2x32xf32>
    %496 = arith.mulf %489, %495 : vector<2x32xf32>
    %c2_i32_120 = arith.constant 2 : i32
    %497 = arith.muli %475, %c2_i32_120 : i32
    %498 = arith.index_cast %497 : i32 to index
    %c0_121 = arith.constant 0 : index
    %499 = vector.load %arg12[%498, %c0_121] : memref<16x128xf32, #tpu.memory_space<vmem>>, vector<2x128xf32>
    %cst_122 = arith.constant dense<0.000000e+00> : vector<2x128xf32>
    %500 = tpu.matmul %452, %14, %cst_122 {dimension_numbers = #tpu.dot_dimension_numbers<[1], [0], [0], [1], [0, 0, 1, 1], [], []>} : vector<2x32xf32>, vector<32x128xf32>, vector<2x128xf32> -> vector<2x128xf32>
    %501 = arith.addf %499, %500 : vector<2x128xf32>
    %502 = vector.extract_strided_slice %501 {offsets = [0, 0], sizes = [2, 96], strides = [1, 1]} : vector<2x128xf32> to vector<2x96xf32>
    %503 = arith.negf %502 : vector<2x96xf32>
    %504 = math.exp %503 : vector<2x96xf32>
    %cst_123 = arith.constant 1.000000e+00 : f32
    %505 = vector.broadcast %cst_123 : f32 to vector<2x96xf32>
    %506 = arith.addf %505, %504 : vector<2x96xf32>
    %507 = arith.divf %505, %506 : vector<2x96xf32>
    %508 = vector.extract_strided_slice %507 {offsets = [0, 0], sizes = [2, 32], strides = [1, 1]} : vector<2x96xf32> to vector<2x32xf32>
    %509 = vector.extract_strided_slice %507 {offsets = [0, 32], sizes = [2, 32], strides = [1, 1]} : vector<2x96xf32> to vector<2x32xf32>
    %510 = vector.extract_strided_slice %507 {offsets = [0, 64], sizes = [2, 32], strides = [1, 1]} : vector<2x96xf32> to vector<2x32xf32>
    %511 = vector.extract_strided_slice %501 {offsets = [0, 96], sizes = [2, 32], strides = [1, 1]} : vector<2x128xf32> to vector<2x32xf32>
    %512 = math.tanh %511 : vector<2x32xf32>
    %513 = arith.mulf %509, %450 : vector<2x32xf32>
    %514 = arith.mulf %508, %512 : vector<2x32xf32>
    %515 = arith.addf %513, %514 : vector<2x32xf32>
    %516 = math.tanh %515 : vector<2x32xf32>
    %517 = arith.mulf %510, %516 : vector<2x32xf32>
    %518 = vector.broadcast %15 : vector<1x32xf32> to vector<2x32xf32>
    %519 = arith.mulf %496, %518 : vector<2x32xf32>
    %cst_124 = arith.constant dense<0.000000e+00> : vector<2xf32>
    %520 = vector.multi_reduction <add>, %519, %cst_124 [1] : vector<2x32xf32> to vector<2xf32>
    %521 = vector.shape_cast %520 : vector<2xf32> to vector<2x1xf32>
    %522 = vector.broadcast %16 : vector<1x32xf32> to vector<2x32xf32>
    %523 = arith.mulf %517, %522 : vector<2x32xf32>
    %cst_125 = arith.constant dense<0.000000e+00> : vector<2xf32>
    %524 = vector.multi_reduction <add>, %523, %cst_125 [1] : vector<2x32xf32> to vector<2xf32>
    %525 = vector.shape_cast %524 : vector<2xf32> to vector<2x1xf32>
    %526 = vector.broadcast %c7_i32_114 : i32 to vector<2x8xi32>
    %527 = arith.cmpi eq, %17, %526 : vector<2x8xi32>
    %cst_126 = arith.constant 0.000000e+00 : f32
    %528 = vector.shape_cast %521 : vector<2x1xf32> to vector<2x1xf32>
    %529 = vector.broadcast %528 : vector<2x1xf32> to vector<2x8xf32>
    %530 = vector.broadcast %cst_126 : f32 to vector<2x8xf32>
    %531 = arith.select %527, %529, %530 : vector<2x8xi1>, vector<2x8xf32>
    %532 = arith.addf %474, %531 : vector<2x8xf32>
    %533 = vector.broadcast %475 : i32 to vector<2x8xi32>
    %534 = arith.cmpi eq, %17, %533 : vector<2x8xi32>
    %cst_127 = arith.constant 0.000000e+00 : f32
    %535 = vector.shape_cast %525 : vector<2x1xf32> to vector<2x1xf32>
    %536 = vector.broadcast %535 : vector<2x1xf32> to vector<2x8xf32>
    %537 = vector.broadcast %cst_127 : f32 to vector<2x8xf32>
    %538 = arith.select %534, %536, %537 : vector<2x8xi1>, vector<2x8xf32>
    %539 = arith.addf %532, %538 : vector<2x8xf32>
    %c8_i32 = arith.constant 8 : i32
    %c0_128 = arith.constant 0 : index
    %c0_129 = arith.constant 0 : index
    %540 = vector.load %arg9[%c0_128, %c0_129] : memref<1x1xf32, #tpu.memory_space<vmem>>, vector<1x1xf32>
    %541 = vector.broadcast %540 : vector<1x1xf32> to vector<2x8xf32>
    %542 = arith.addf %539, %541 : vector<2x8xf32>
    %543 = arith.negf %542 : vector<2x8xf32>
    %544 = math.exp %543 : vector<2x8xf32>
    %cst_130 = arith.constant 1.000000e+00 : f32
    %545 = vector.broadcast %cst_130 : f32 to vector<2x8xf32>
    %546 = arith.addf %545, %544 : vector<2x8xf32>
    %547 = arith.divf %545, %546 : vector<2x8xf32>
    %c0_131 = arith.constant 0 : index
    %c0_132 = arith.constant 0 : index
    %548 = vector.load %arg10[%c0_131, %c0_132] : memref<2x8xf32, #tpu.memory_space<vmem>>, vector<2x8xf32>
    tpu.vector_store %arg10[%c0_131, %c0_132], %547 {strides = array<i32>} : memref<2x8xf32, #tpu.memory_space<vmem>>, vector<2x8xf32>,
    return
  }
}

</mosaic_0001>

<bundles_post_ra>
// kernel: full_context_arc_forward.2
= control target key start
LH: loop header
LB: loop body
LE: loop exit
PB: predicated region body
PF: predicated region fallthrough
CT: control target
= control target key end

     0   :  { %12 = vsyncpa [#allocation7], 0  ;;  %s3011_s0 = inlined_call_operand.vmem [shape: f32[16,32], index: 0, kind: input, shape index: {}]   ;;  %s3012_s1 = inlined_call_operand.vmem [shape: f32[32,128], index: 1, kind: input, shape index: {}]   ;;  %s3013_s2 = inlined_call_operand.hbm [shape: f32[32,128], index: 2, kind: input, shape index: {}]   ;;  %s3014_s3 = inlined_call_operand.vmem [shape: f32[1,128], index: 3, kind: input, shape index: {}]   ;;  %s3015_s4 = inlined_call_operand.hbm [shape: f32[32,128], index: 4, kind: input, shape index: {}]   ;;  %s3016_s5 = inlined_call_operand.hbm [shape: f32[32,128], index: 5, kind: input, shape index: {}]   ;;  %s3017_s6 = inlined_call_operand.hbm [shape: f32[1,128], index: 6, kind: input, shape index: {}]   ;;  %s3018_s7 = inlined_call_operand.vmem [shape: f32[16,64], index: 7, kind: output, shape index: {}]  }
   0x1   :  { %13 = vsyncpa [#allocation9], 0 }
   0x2   :  { %14 = vsyncpa [#allocation12], 0  ;;  %s2615_s24 = smov [#allocation8]   ;;  %s2616_s26 = smov [#allocation6]  }
   0x3   :  { %s38_s25 = sshll.u32 %s2615_s24, 4  ;;  %s24_s27 = sshll.u32 %s2616_s26, 4  ;;  %s39_s25 = int_to_ptr.vmem [resolvable:$true] %s38_s25  ;;  %s2666_s27 = int_to_ptr.vmem [resolvable:$true] %s24_s27 }
   0x4   :  { %s2521_s30 = scalar_lea.hbm %s3015_s4, 512 }
   0x5   :  { %p2522_p0 = scmp.ne.s32.totalorder %s3015_s4, %s2521_s30  ;;  %p2525_p1 = scmp.lt.u32.totalorder %s2521_s30, %s3015_s4 }
   0x7   :  { %p2527_p2 = pnand %p2525_p1, %p2522_p0 }
   0x9   :  { %2530 = shalt.err (!%p2527_p2)
}
   0xa   :  { %s2531_s12 = scalar_lea.vmem %s39_s25, 512  ;;  %p2536_p4 = scmp.lt.s32.totalorder %s39_s25, %s39_s25 }
   0xb   :  { %p2532_p3 = scmp.ne.s32.totalorder %s39_s25, %s2531_s12  ;;  %p2537_p5 = scmp.lt.s32.totalorder %s2531_s12, %s2531_s12 }
   0xd   :  { %p2538_p6 = por %p2537_p5, %p2536_p4 }
   0xf   :  { %p2539_p7 = pnand %p2538_p6, %p2532_p3 }
  0x11   :  { %2542 = shalt.err (!%p2539_p7)
}
  0x12   :  { %s2617_s13 = smov 128   ;;  %s2618_s14 = smov 8  }
  0x13   :  { %44 = dma.hbm_to_vmem [thread:$0]  %s3015_s4, 512, %s39_s25, [#allocation9], %s2617_s13, %s2617_s13, %s2618_s14  }
  0x14   :  { %s2543_s19 = scalar_lea.hbm %s3013_s2, 512 }
  0x15   :  { %p2544_p8 = scmp.ne.s32.totalorder %s3013_s2, %s2543_s19  ;;  %p2547_p9 = scmp.lt.u32.totalorder %s2543_s19, %s3013_s2 }
  0x17   :  { %p2549_p10 = pnand %p2547_p9, %p2544_p8 }
  0x19   :  { %2552 = shalt.err (!%p2549_p10)
}
  0x1a   :  { %s2553_s24 = scalar_lea.vmem %s2666_s27, 512  ;;  %p2558_p12 = scmp.lt.s32.totalorder %s2666_s27, %s2666_s27 }
  0x1b   :  { %p2554_p11 = scmp.ne.s32.totalorder %s2666_s27, %s2553_s24  ;;  %p2559_p13 = scmp.lt.s32.totalorder %s2553_s24, %s2553_s24 }
  0x1d   :  { %p2560_p0 = por %p2559_p13, %p2558_p12 }
  0x1f   :  { %p2561_p1 = pnand %p2560_p0, %p2554_p11 }
  0x21   :  { %2564 = shalt.err (!%p2561_p1)
}
  0x22   :  { %30 = dma.hbm_to_vmem [thread:$0]  %s3013_s2, 512, %s2666_s27, [#allocation7], %s2617_s13, %s2617_s13, %s2618_s14  }
  0x23   :  { %s2619_s26 = smov [#allocation10]   ;;  %s2620_s29 = smov [#allocation11]  }
  0x24   :  { %s50_s28 = sshll.u32 %s2619_s26, 4  ;;  %s63_s30 = sshll.u32 %s2620_s29, 4  ;;  %s51_s28 = int_to_ptr.vmem [resolvable:$true] %s50_s28  ;;  %s64_s30 = int_to_ptr.vmem [resolvable:$true] %s63_s30 }
  0x25   :  { %s2565_s10 = scalar_lea.hbm %s3016_s5, 512 }
  0x26   :  { %p2566_p2 = scmp.ne.s32.totalorder %s3016_s5, %s2565_s10  ;;  %p2569_p3 = scmp.lt.u32.totalorder %s2565_s10, %s3016_s5 }
  0x28   :  { %p2571_p4 = pnand %p2569_p3, %p2566_p2 }
  0x2a   :  { %2574 = shalt.err (!%p2571_p4)
}
  0x2b   :  { %s2575_s2 = scalar_lea.vmem %s51_s28, 512  ;;  %p2580_p6 = scmp.lt.s32.totalorder %s51_s28, %s51_s28 }
  0x2c   :  { %p2576_p5 = scmp.ne.s32.totalorder %s51_s28, %s2575_s2  ;;  %p2581_p7 = scmp.lt.s32.totalorder %s2575_s2, %s2575_s2 }
  0x2e   :  { %p2582_p8 = por %p2581_p7, %p2580_p6 }
  0x30   :  { %p2583_p9 = pnand %p2582_p8, %p2576_p5 }
  0x32   :  { %2586 = shalt.err (!%p2583_p9)
}
  0x33   :  { %56 = dma.hbm_to_vmem [thread:$0]  %s3016_s5, 512, %s51_s28, [#allocation9], %s2617_s13, %s2617_s13, %s2618_s14  }
  0x34   :  { %s2587_s20 = scalar_lea.hbm %s3017_s6, 16 }
  0x35   :  { %p2588_p10 = scmp.ne.s32.totalorder %s3017_s6, %s2587_s20  ;;  %p2591_p11 = scmp.lt.u32.totalorder %s2587_s20, %s3017_s6 }
  0x37   :  { %p2593_p12 = pnand %p2591_p11, %p2588_p10 }
  0x39   :  { %2596 = shalt.err (!%p2593_p12)
}
  0x3a   :  { %s2597_s4 = scalar_lea.vmem %s64_s30, 16  ;;  %s2601_s25 = scalar_lea.vmem %s64_s30, 32 }
  0x3b   :  { %p2598_p13 = scmp.ne.s32.totalorder %s64_s30, %s2597_s4  ;;  %p2602_p0 = scmp.lt.s32.totalorder %s64_s30, %s64_s30 }
  0x3c   :  { %p2603_p1 = scmp.lt.s32.totalorder %s2601_s25, %s2597_s4 }
  0x3e   :  { %p2604_p2 = por %p2603_p1, %p2602_p0 }
  0x40   :  { %p2605_p3 = pnand %p2604_p2, %p2598_p13 }
  0x42   :  { %2608 = shalt.err (!%p2605_p3)
}
  0x43   :  { %66 = dma.hbm_to_vmem [thread:$0]  %s3017_s6, 16, %s64_s30, [#allocation12]  }
  0x44   :  { %2609 = dma.done.wait [#allocation7], 512  }
  0x45   :  { %2610 = vsyncadd [#allocation7], 4294966784 }
  0x46   :  { %2611 = dma.done.wait [#allocation9], 1024  }
  0x47   :  { %2612 = vsyncadd [#allocation9], 4294966272 }
  0x48   :  { %2613 = dma.done.wait [#allocation12], 16  }
  0x49   :  { %2614 = vsyncadd [#allocation12], 4294967280  ;;  %v176_v0 = vld [vmem:[#allocation8] sm:$0xff]  ;;  %v177_v1 = vld [vmem:[#allocation8 + $0x8] sm:$0xff]  ;;  %vm92_vm0 = vcmask 261120   ;;  %v2621_v19 = vmov 0.0|0.0  }
  0x4a   :  { %v81_v2 = vld [vmem:[%s3012_s1] sm:$0xff]  ;;  %v2278_v3 = vpack.c.bf16 %v177_v1, %v176_v0  ;;  %v82_v4 = vld [vmem:[%s3012_s1 + $0x8] sm:$0xff]  ;;  %v178_v5 = vld [vmem:[#allocation8 + $0x10] sm:$0xff]  ;;  %vm2622_vm1 = vmmov 0   ;;  %v2623_v27 = vmov 0.0   ;;  %s2625_s16 = smov 64  }
  0x4b   :  { %v179_v6 = vld [vmem:[#allocation8 + $0x18] sm:$0xff]  ;;  %v2270_v7 = vpack.c.bf16 %v82_v4, %v81_v2  ;;  %v83_v9 = vld [vmem:[%s3012_s1 + $0x10] sm:$0xff]  ;;  %v79_v11 = vld [vmem:[%s3011_s0] sm:$0xff]  ;;  %vm471_vm2 = vcmask 254976   ;;  %vm1934_vm3 = vcmask 523520  }
  0x4c   :  { %v2282_v8 = vpack.c.bf16 %v179_v6, %v178_v5  ;;  %v84_v10 = vld [vmem:[%s3012_s1 + $0x18] sm:$0xff]  ;;  %2279 = vmatprep.subr.bf16.mxu1 %v2278_v3  ;;  %2091 = vmatprep.mubr.msk.f32.mxu1 %vm92_vm0, %v79_v11  ;;  %v268_v13 = vld [vmem:[#allocation10] sm:$0xff]  ;;  %v269_v14 = vld [vmem:[#allocation10 + $0x8] sm:$0xff] }
  0x4d   :  { %v2274_v12 = vpack.c.bf16 %v84_v10, %v83_v9  ;;  %2281 = vmatpush3.bf16.msra.mxu1 %v2278_v3  ;;  %2271 = vmatprep.subr.bf16.mxu0 %v2270_v7  ;;  %v264_v15 = vld [vmem:[#allocation6] sm:$0xff]  ;;  %v265_v16 = vld [vmem:[#allocation6 + $0x8] sm:$0xff]  ;;  %v2750_v18 = vpack.c.bf16 %v269_v14, %v268_v13  ;;  %v270_v20 = vld [vmem:[#allocation10 + $0x10] sm:$0xff] }
  0x4e   :  { %2273 = vmatpush3.bf16.msra.mxu0 %v2270_v7  ;;  %2283 = vmatprep.subr.bf16.mxu1 %v2282_v8  ;;  %v80_v17 = vld [vmem:[%s3011_s0 + $0x8] sm:$0xff]  ;;  %v271_v21 = vld [vmem:[#allocation10 + $0x18] sm:$0xff]  ;;  %v2753_v22 = vpack.c.bf16 %v265_v16, %v264_v15  ;;  %v266_v23 = vld [vmem:[#allocation6 + $0x10] sm:$0xff] }
  0x4f   :  { %2275 = vmatprep.subr.bf16.mxu0 %v2274_v12  ;;  %2080 = vmatprep.mubr.msk.f32.mxu0 %vm92_vm0, %v79_v11  ;;  %v267_v24 = vld [vmem:[#allocation6 + $0x18] sm:$0xff]  ;;  %v2759_v25 = vpack.c.bf16 %v271_v21, %v270_v20  ;;  %v1947_v28 = vld [vmem:[#allocation11] ss:$0 sm:$0xff] }
  0x50   :  { %v2763_v26 = vpack.c.bf16 %v267_v24, %v266_v23  ;;  %v1944_v30 = vld [vmem:[%s3014_s3] ss:$0 sm:$0xff]  ;;  %s2624_s3 = smov 32  }
  0x51   :  { %2285 = vmatpush3.bf16.msra.mxu1 %v2282_v8 }
  0x52   :  { %2277 = vmatpush3.bf16.msra.mxu0 %v2274_v12  ;;  %2292 = vmatprep.subr.bf16.mxu1 %v2621_v19 }
  0x53   :  { %2286 = vmatprep.subr.bf16.mxu0 %v2621_v19 }
  0x54   :  { %2092 = vmatmul.mubr.msk.f32.vlgmr.msra.gmra.mrb[0].mxu1 %vm92_vm0, %v80_v17 }
  0x55   :  { %2294 = vmatpush3.bf16.msra.mxu1 %v2750_v18  ;;  %2081 = vmatmul.mubr.msk.f32.vlgmr.msra.gmra.mrb[0].mxu0 %vm92_vm0, %v80_v17 }
  0x56   :  { %2295 = vmatprep.subr.bf16.mxu1 %v2621_v19  ;;  %2288 = vmatpush3.bf16.msra.mxu0 %v2753_v22 }
  0x57   :  { %2113 = vmatprep.mubr.msk.f32.mxu1 %vm2622_vm1, %v2623_v27  ;;  %2289 = vmatprep.subr.bf16.mxu0 %v2621_v19 }
  0x58   :  { %2102 = vmatprep.mubr.msk.f32.mxu0 %vm2622_vm1, %v2623_v27 }
  0x59   :  { %2297 = vmatpush3.bf16.msra.mxu1 %v2759_v25 }
  0x5a   :  { %2291 = vmatpush3.bf16.msra.mxu0 %v2763_v26  ;;  %2304 = vmatprep.subr.bf16.mxu1 %v2621_v19 }
  0x5b   :  { %2298 = vmatprep.subr.bf16.mxu0 %v2621_v19 }
  0x5c   :  { %2114 = vmatmul.mubr.f32.vlgmr.msra.gmra.mrb[2].mxu1 %v2623_v27 }
  0x5d   :  { %2103 = vmatmul.mubr.f32.vlgmr.msra.gmra.mrb[2].mxu0 %v2623_v27  ;;  %2306 = vmatpush3.bf16.msra.mxu1 %v2750_v18 }
  0x5e   :  { %2307 = vmatprep.subr.bf16.mxu1 %v2621_v19  ;;  %2300 = vmatpush3.bf16.msra.mxu0 %v2753_v22 }
  0x5f   :  { %2135 = vmatprep.mubr.msk.f32.mxu1 %vm2622_vm1, %v2623_v27  ;;  %2301 = vmatprep.subr.bf16.mxu0 %v2621_v19 }
  0x60   :  { %2124 = vmatprep.mubr.msk.f32.mxu0 %vm2622_vm1, %v2623_v27 }
  0x61   :  { %2309 = vmatpush3.bf16.msra.mxu1 %v2759_v25 }
  0x62   :  { %2303 = vmatpush3.bf16.msra.mxu0 %v2763_v26  ;;  %2316 = vmatprep.subr.bf16.mxu1 %v2621_v19 }
  0x63   :  { %2310 = vmatprep.subr.bf16.mxu0 %v2621_v19 }
 0x127   :  { %v2093_v29 = vpop.f32.mrb[0].mxu1 }
 0x128   :  { %v259_v31 = vadd.f32 %v2093_v29, %v1947_v28  ;;  %v253_v32 = vpop.f32.mrb[1].mxu1  ;;  %v2082_v33 = vpop.f32.mrb[0].mxu0 }
 0x129   :  { %v254_v34 = vadd.f32 %v1947_v28, %v253_v32  ;;  %v171_v35 = vadd.f32 %v2082_v33, %v1944_v30  ;;  %v165_v36 = vpop.f32.mrb[1].mxu0 }
 0x12a   :  { %263 = vst [vmem:[#allocation3 + $0x8] sm:$0xff] %v259_v31  ;;  %v166_v37 = vadd.f32 %v1944_v30, %v165_v36 }
 0x12b   :  { %262 = vst [vmem:[#allocation3] sm:$0xff] %v254_v34  ;;  %175 = vst [vmem:[#allocation2 + $0x8] sm:$0xff] %v171_v35 }
 0x12c   :  { %174 = vst [vmem:[#allocation2] sm:$0xff] %v166_v37 }
 0x12f   :  { %v438_v38 = vpop.f32.mrb[2].mxu1 }
 0x130   :  { %v2115_v39 = vpop.f32.mrb[3].mxu1  ;;  %v342_v40 = vpop.f32.mrb[2].mxu0 }
 0x131   :  { %v371_v41 = vld [vmem:[#allocation3 + $0xe] sm:$0x3]  ;;  %v2104_v42 = vpop.f32.mrb[3].mxu0  ;;  %v576_v10 = vld [vmem:[#allocation3 + $0xc] sm:$0x3] }
 0x132   :  { %v442_v43 = vadd.f32 %v438_v38, %v371_v41 }
 0x133   :  { %v272_v44 = vld [vmem:[#allocation2] sm:$0x3]  ;;  %v478_v14 = vld [vmem:[#allocation2 + $0x2] sm:$0x3] }
 0x134   :  { %2393 = vtanh.f32 %v442_v43  ;;  %v346_v45 = vadd.f32 %v342_v40, %v272_v44  ;;  %v1951_v48 = vmul.f32 -1.442695, %v442_v43 }
 0x136   :  { %2395 = vtanh.f32 %v346_v45  ;;  %v1950_v49 = vmul.f32 -1.442695, %v346_v45 }
 0x137   :  { %2397 = vpow2.f32 %v1951_v48 }
 0x138   :  { %2399 = vpow2.f32 %v1950_v49 }
 0x13e   :  { %v2394_v46 = vpop.eup %2393 }
 0x13f   :  { %452 = vrot.lane.b32.xlu0 %v2394_v46, %s2624_s3 }
 0x140   :  { %v2396_v47 = vpop.eup %2395 }
 0x141   :  { %v2398_v50 = vpop.eup %2397 }
 0x142   :  { %v2400_v51 = vpop.eup %2399  ;;  %v446_v52 = vadd.f32 1.0, %v2398_v50 }
 0x143   :  { %356 = vrot.lane.b32.xlu0 %v2396_v47, %s2624_s3  ;;  %v350_v53 = vadd.f32 1.0, %v2400_v51 }
 0x144   :  { %2401 = vrcp.f32 %v446_v52  ;;  %v782_v52 = vld [vmem:[#allocation3 + $0xa] sm:$0x3] }
 0x145   :  { %2403 = vrcp.f32 %v350_v53 }
 0x14e   :  { %v2402_v54 = vpop.eup %2401 }
 0x14f   :  { %v2404_v57 = vpop.eup %2403  ;;  %v450_v60 = vmul.f32 0.0, %v2402_v54 }
 0x150   :  { %v354_v63 = vmul.f32 0.0, %v2404_v57 }
 0x1b1   :  { %v453_v55 = vpop.permute.xlu0 %452 }
 0x1b2   :  { %v455_v56 = vmul.f32 %v2402_v54, %v453_v55 }
 0x1b4   :  { %457 = vrot.lane.b32.xlu1 %v455_v56, %s2624_s3  ;;  %v684_v56 = vld [vmem:[#allocation2 + $0x4] sm:$0x3] }
 0x1b5   :  { %v357_v58 = vpop.permute.xlu0 %356 }
 0x1b6   :  { %v359_v59 = vmul.f32 %v2404_v57, %v357_v58 }
 0x1b8   :  { %361 = vrot.lane.b32.xlu1 %v359_v59, %s2624_s3 }
 0x226   :  { %v458_v61 = vpop.permute.xlu1 %457 }
 0x227   :  { %v2795_v62 = vadd.f32 %v458_v61, %v450_v60 }
 0x229   :  { %2405 = vtanh.f32 %v2795_v62 }
 0x22a   :  { %v362_v0 = vpop.permute.xlu1 %361 }
 0x22b   :  { %v2798_v1 = vadd.f32 %v362_v0, %v354_v63 }
 0x22d   :  { %2407 = vtanh.f32 %v2798_v1 }
 0x233   :  { %v2406_v2 = vpop.eup %2405 }
 0x234   :  { %463 = vrot.lane.b32.xlu0 %v2406_v2, %s2624_s3 }
 0x237   :  { %v2408_v3 = vpop.eup %2407 }
 0x238   :  { %367 = vrot.lane.b32.xlu1 %v2408_v3, %s2624_s3 }
 0x2a6   :  { %v464_v4 = vpop.permute.xlu0 %463 }
 0x2a7   :  { %v466_v5 = vmul.f32 %v2402_v54, %v464_v4 }
 0x2a9   :  { %474 = vrot.lane.b32.xlu0 %v466_v5, %s2625_s16 }
 0x2aa   :  { %v368_v6 = vpop.permute.xlu1 %367 }
 0x2ab   :  { %v370_v7 = vmul.f32 %v2404_v57, %v368_v6 }
 0x2ad   :  { %468 = vrot.lane.b32.xlu1 %v370_v7, %s2625_s16 }
 0x31b   :  { %v475_v8 = vpop.permute.xlu0 %474 }
 0x31c   :  { %477 = vst.msk [vmem:[#allocation5 + $0xe] sm:$0x3] %vm471_vm2, %v475_v8  ;;  %2136 = vmatmul.mubr.msk.f32.vlgmr.msra.gmra.mrb[4].mxu1 %vm92_vm0, %v475_v8 }
 0x31d   :  { %2318 = vmatpush3.bf16.msra.mxu1 %v2750_v18  ;;  %2157 = vmatprep.mubr.msk.f32.mxu1 %vm2622_vm1, %v2623_v27 }
 0x31e   :  { %2319 = vmatprep.subr.bf16.mxu1 %v2621_v19 }
 0x31f   :  { %v469_v9 = vpop.permute.xlu1 %468 }
 0x320   :  { %472 = vst.msk [vmem:[#allocation4] sm:$0x3] %vm471_vm2, %v469_v9  ;;  %2125 = vmatmul.mubr.msk.f32.vlgmr.msra.gmra.mrb[4].mxu0 %vm92_vm0, %v469_v9 }
 0x321   :  { %2312 = vmatpush3.bf16.msra.mxu0 %v2753_v22  ;;  %2321 = vmatpush3.bf16.msra.mxu1 %v2759_v25 }
 0x322   :  { %2313 = vmatprep.subr.bf16.mxu0 %v2621_v19  ;;  %2146 = vmatprep.mubr.msk.f32.mxu0 %vm2622_vm1, %v2623_v27 }
 0x323   :  { %2328 = vmatprep.subr.bf16.mxu1 %v2621_v19 }
 0x325   :  { %2315 = vmatpush3.bf16.msra.mxu0 %v2763_v26 }
 0x326   :  { %2322 = vmatprep.subr.bf16.mxu0 %v2621_v19 }
 0x3ef   :  { %v645_v11 = vpop.f32.mrb[4].mxu1 }
 0x3f0   :  { %v649_v12 = vadd.f32 %v645_v11, %v576_v10  ;;  %v2137_v13 = vpop.f32.mrb[5].mxu1 }
 0x3f2   :  { %2409 = vtanh.f32 %v649_v12  ;;  %v1955_v23 = vmul.f32 -1.442695, %v649_v12 }
 0x3f3   :  { %v547_v15 = vpop.f32.mrb[4].mxu0 }
 0x3f4   :  { %v551_v16 = vadd.f32 %v547_v15, %v478_v14  ;;  %v2126_v17 = vpop.f32.mrb[5].mxu0 }
 0x3f6   :  { %2411 = vtanh.f32 %v551_v16  ;;  %v1953_v24 = vmul.f32 -1.442695, %v551_v16 }
 0x3f7   :  { %2413 = vpow2.f32 %v1955_v23 }
 0x3f8   :  { %2415 = vpow2.f32 %v1953_v24 }
 0x3fc   :  { %v2410_v20 = vpop.eup %2409 }
 0x3fd   :  { %659 = vrot.lane.b32.xlu0 %v2410_v20, %s2624_s3 }
 0x400   :  { %v2412_v21 = vpop.eup %2411 }
 0x401   :  { %561 = vrot.lane.b32.xlu1 %v2412_v21, %s2624_s3  ;;  %v2414_v28 = vpop.eup %2413 }
 0x402   :  { %v653_v29 = vadd.f32 1.0, %v2414_v28  ;;  %v2416_v30 = vpop.eup %2415 }
 0x403   :  { %v555_v31 = vadd.f32 1.0, %v2416_v30  ;;  %v988_v30 = vld [vmem:[#allocation3 + $0x8] sm:$0x3] }
 0x404   :  { %2417 = vrcp.f32 %v653_v29 }
 0x405   :  { %2419 = vrcp.f32 %v555_v31 }
 0x40e   :  { %v2418_v32 = vpop.eup %2417 }
 0x40f   :  { %v2420_v35 = vpop.eup %2419  ;;  %v657_v38 = vmul.f32 %v2418_v32, %v2795_v62 }
 0x410   :  { %v559_v41 = vmul.f32 %v2420_v35, %v2798_v1 }
 0x46f   :  { %v660_v33 = vpop.permute.xlu0 %659 }
 0x470   :  { %v662_v34 = vmul.f32 %v2418_v32, %v660_v33 }
 0x472   :  { %664 = vrot.lane.b32.xlu0 %v662_v34, %s2624_s3  ;;  %v890_v34 = vld [vmem:[#allocation2 + $0x6] sm:$0x3] }
 0x473   :  { %v562_v36 = vpop.permute.xlu1 %561 }
 0x474   :  { %v564_v37 = vmul.f32 %v2420_v35, %v562_v36 }
 0x476   :  { %566 = vrot.lane.b32.xlu1 %v564_v37, %s2624_s3 }
 0x4e4   :  { %v665_v39 = vpop.permute.xlu0 %664 }
 0x4e5   :  { %v2826_v40 = vadd.f32 %v665_v39, %v657_v38 }
 0x4e7   :  { %2421 = vtanh.f32 %v2826_v40 }
 0x4e8   :  { %v567_v42 = vpop.permute.xlu1 %566 }
 0x4e9   :  { %v2830_v43 = vadd.f32 %v567_v42, %v559_v41 }
 0x4eb   :  { %2423 = vtanh.f32 %v2830_v43 }
 0x4f1   :  { %v2422_v44 = vpop.eup %2421 }
 0x4f2   :  { %670 = vrot.lane.b32.xlu0 %v2422_v44, %s2624_s3 }
 0x4f5   :  { %v2424_v45 = vpop.eup %2423 }
 0x4f6   :  { %572 = vrot.lane.b32.xlu1 %v2424_v45, %s2624_s3 }
 0x564   :  { %v671_v46 = vpop.permute.xlu0 %670 }
 0x565   :  { %v673_v47 = vmul.f32 %v2418_v32, %v671_v46 }
 0x567   :  { %680 = vrot.lane.b32.xlu0 %v673_v47, %s2625_s16 }
 0x568   :  { %v573_v48 = vpop.permute.xlu1 %572 }
 0x569   :  { %v575_v49 = vmul.f32 %v2420_v35, %v573_v48 }
 0x56b   :  { %675 = vrot.lane.b32.xlu1 %v575_v49, %s2625_s16 }
 0x5d9   :  { %v681_v50 = vpop.permute.xlu0 %680 }
 0x5da   :  { %683 = vst.msk [vmem:[#allocation5 + $0xc] sm:$0x3] %vm471_vm2, %v681_v50  ;;  %2158 = vmatmul.mubr.msk.f32.vlgmr.msra.gmra.mrb[6].mxu1 %vm92_vm0, %v681_v50 }
 0x5db   :  { %2330 = vmatpush3.bf16.msra.mxu1 %v2750_v18  ;;  %2179 = vmatprep.mubr.msk.f32.mxu1 %vm2622_vm1, %v2623_v27 }
 0x5dc   :  { %2331 = vmatprep.subr.bf16.mxu1 %v2621_v19 }
 0x5dd   :  { %v676_v51 = vpop.permute.xlu1 %675 }
 0x5de   :  { %678 = vst.msk [vmem:[#allocation4 + $0x2] sm:$0x3] %vm471_vm2, %v676_v51  ;;  %2147 = vmatmul.mubr.msk.f32.vlgmr.msra.gmra.mrb[6].mxu0 %vm92_vm0, %v676_v51 }
 0x5df   :  { %2324 = vmatpush3.bf16.msra.mxu0 %v2753_v22  ;;  %2333 = vmatpush3.bf16.msra.mxu1 %v2759_v25 }
 0x5e0   :  { %2325 = vmatprep.subr.bf16.mxu0 %v2621_v19  ;;  %2168 = vmatprep.mubr.msk.f32.mxu0 %vm2622_vm1, %v2623_v27 }
 0x5e1   :  { %2340 = vmatprep.subr.bf16.mxu1 %v2621_v19 }
 0x5e3   :  { %2327 = vmatpush3.bf16.msra.mxu0 %v2763_v26 }
 0x5e4   :  { %2334 = vmatprep.subr.bf16.mxu0 %v2621_v19 }
 0x6ad   :  { %v851_v53 = vpop.f32.mrb[6].mxu1 }
 0x6ae   :  { %v855_v54 = vadd.f32 %v851_v53, %v782_v52  ;;  %v2159_v55 = vpop.f32.mrb[7].mxu1 }
 0x6b0   :  { %2425 = vtanh.f32 %v855_v54  ;;  %v1959_v62 = vmul.f32 -1.442695, %v855_v54 }
 0x6b1   :  { %v753_v57 = vpop.f32.mrb[6].mxu0 }
 0x6b2   :  { %v757_v58 = vadd.f32 %v753_v57, %v684_v56  ;;  %v2148_v59 = vpop.f32.mrb[7].mxu0 }
 0x6b4   :  { %2427 = vtanh.f32 %v757_v58  ;;  %v1957_v63 = vmul.f32 -1.442695, %v757_v58 }
 0x6b5   :  { %2429 = vpow2.f32 %v1959_v62 }
 0x6b6   :  { %2431 = vpow2.f32 %v1957_v63 }
 0x6ba   :  { %v2426_v60 = vpop.eup %2425 }
 0x6bb   :  { %865 = vrot.lane.b32.xlu0 %v2426_v60, %s2624_s3 }
 0x6be   :  { %v2428_v61 = vpop.eup %2427 }
 0x6bf   :  { %767 = vrot.lane.b32.xlu1 %v2428_v61, %s2624_s3  ;;  %v2430_v0 = vpop.eup %2429 }
 0x6c0   :  { %v859_v1 = vadd.f32 1.0, %v2430_v0  ;;  %v2432_v2 = vpop.eup %2431 }
 0x6c1   :  { %v761_v3 = vadd.f32 1.0, %v2432_v2 }
 0x6c2   :  { %2433 = vrcp.f32 %v859_v1 }
 0x6c3   :  { %2435 = vrcp.f32 %v761_v3  ;;  %v1194_v3 = vld [vmem:[#allocation3 + $0x6] sm:$0x3] }
 0x6cc   :  { %v2434_v4 = vpop.eup %2433 }
 0x6cd   :  { %v2436_v7 = vpop.eup %2435  ;;  %v863_v10 = vmul.f32 %v2434_v4, %v2826_v40 }
 0x6ce   :  { %v765_v13 = vmul.f32 %v2436_v7, %v2830_v43 }
 0x72d   :  { %v866_v5 = vpop.permute.xlu0 %865 }
 0x72e   :  { %v868_v6 = vmul.f32 %v2434_v4, %v866_v5 }
 0x730   :  { %870 = vrot.lane.b32.xlu0 %v868_v6, %s2624_s3 }
 0x731   :  { %v768_v8 = vpop.permute.xlu1 %767 }
 0x732   :  { %v770_v9 = vmul.f32 %v2436_v7, %v768_v8 }
 0x734   :  { %772 = vrot.lane.b32.xlu1 %v770_v9, %s2624_s3 }
 0x7a2   :  { %v871_v11 = vpop.permute.xlu0 %870 }
 0x7a3   :  { %v2858_v12 = vadd.f32 %v871_v11, %v863_v10 }
 0x7a5   :  { %2437 = vtanh.f32 %v2858_v12 }
 0x7a6   :  { %v773_v14 = vpop.permute.xlu1 %772 }
 0x7a7   :  { %v2862_v15 = vadd.f32 %v773_v14, %v765_v13 }
 0x7a9   :  { %2439 = vtanh.f32 %v2862_v15 }
 0x7af   :  { %v2438_v16 = vpop.eup %2437 }
 0x7b0   :  { %876 = vrot.lane.b32.xlu0 %v2438_v16, %s2624_s3 }
 0x7b3   :  { %v2440_v17 = vpop.eup %2439 }
 0x7b4   :  { %778 = vrot.lane.b32.xlu1 %v2440_v17, %s2624_s3 }
 0x822   :  { %v877_v20 = vpop.permute.xlu0 %876 }
 0x823   :  { %v879_v21 = vmul.f32 %v2434_v4, %v877_v20 }
 0x825   :  { %886 = vrot.lane.b32.xlu0 %v879_v21, %s2625_s16 }
 0x826   :  { %v779_v23 = vpop.permute.xlu1 %778 }
 0x827   :  { %v781_v24 = vmul.f32 %v2436_v7, %v779_v23  ;;  %v1096_v7 = vld [vmem:[#allocation2 + $0x8] sm:$0x3] }
 0x829   :  { %881 = vrot.lane.b32.xlu1 %v781_v24, %s2625_s16 }
 0x897   :  { %v887_v28 = vpop.permute.xlu0 %886 }
 0x898   :  { %889 = vst.msk [vmem:[#allocation5 + $0xa] sm:$0x3] %vm471_vm2, %v887_v28  ;;  %2180 = vmatmul.mubr.msk.f32.vlgmr.msra.gmra.mrb[8].mxu1 %vm92_vm0, %v887_v28 }
 0x899   :  { %2342 = vmatpush3.bf16.msra.mxu1 %v2750_v18  ;;  %2201 = vmatprep.mubr.msk.f32.mxu1 %vm2622_vm1, %v2623_v27 }
 0x89a   :  { %2343 = vmatprep.subr.bf16.mxu1 %v2621_v19 }
 0x89b   :  { %v882_v29 = vpop.permute.xlu1 %881 }
 0x89c   :  { %884 = vst.msk [vmem:[#allocation4 + $0x4] sm:$0x3] %vm471_vm2, %v882_v29  ;;  %2169 = vmatmul.mubr.msk.f32.vlgmr.msra.gmra.mrb[8].mxu0 %vm92_vm0, %v882_v29 }
 0x89d   :  { %2336 = vmatpush3.bf16.msra.mxu0 %v2753_v22  ;;  %2345 = vmatpush3.bf16.msra.mxu1 %v2759_v25 }
 0x89e   :  { %2337 = vmatprep.subr.bf16.mxu0 %v2621_v19  ;;  %2190 = vmatprep.mubr.msk.f32.mxu0 %vm2622_vm1, %v2623_v27 }
 0x89f   :  { %2352 = vmatprep.subr.bf16.mxu1 %v2621_v19 }
 0x8a1   :  { %2339 = vmatpush3.bf16.msra.mxu0 %v2763_v26 }
 0x8a2   :  { %2346 = vmatprep.subr.bf16.mxu0 %v2621_v19 }
 0x96b   :  { %v1057_v31 = vpop.f32.mrb[8].mxu1 }
 0x96c   :  { %v1061_v32 = vadd.f32 %v1057_v31, %v988_v30  ;;  %v2181_v33 = vpop.f32.mrb[9].mxu1 }
 0x96e   :  { %2441 = vtanh.f32 %v1061_v32  ;;  %v1963_v40 = vmul.f32 -1.442695, %v1061_v32 }
 0x96f   :  { %v959_v35 = vpop.f32.mrb[8].mxu0 }
 0x970   :  { %v963_v36 = vadd.f32 %v959_v35, %v890_v34  ;;  %v2170_v37 = vpop.f32.mrb[9].mxu0 }
 0x972   :  { %2443 = vtanh.f32 %v963_v36  ;;  %v1961_v41 = vmul.f32 -1.442695, %v963_v36 }
 0x973   :  { %2445 = vpow2.f32 %v1963_v40 }
 0x974   :  { %2447 = vpow2.f32 %v1961_v41 }
 0x978   :  { %v2442_v38 = vpop.eup %2441 }
 0x979   :  { %1071 = vrot.lane.b32.xlu0 %v2442_v38, %s2624_s3 }
 0x97c   :  { %v2444_v39 = vpop.eup %2443 }
 0x97d   :  { %973 = vrot.lane.b32.xlu1 %v2444_v39, %s2624_s3  ;;  %v2446_v42 = vpop.eup %2445 }
 0x97e   :  { %v1065_v43 = vadd.f32 1.0, %v2446_v42  ;;  %v2448_v44 = vpop.eup %2447 }
 0x97f   :  { %v967_v45 = vadd.f32 1.0, %v2448_v44 }
 0x980   :  { %2449 = vrcp.f32 %v1065_v43 }
 0x981   :  { %2451 = vrcp.f32 %v967_v45  ;;  %v1400_v45 = vld [vmem:[#allocation3 + $0x4] sm:$0x3] }
 0x98a   :  { %v2450_v46 = vpop.eup %2449 }
 0x98b   :  { %v2452_v49 = vpop.eup %2451  ;;  %v1069_v52 = vmul.f32 %v2450_v46, %v2858_v12 }
 0x98c   :  { %v971_v55 = vmul.f32 %v2452_v49, %v2862_v15 }
 0x9eb   :  { %v1072_v47 = vpop.permute.xlu0 %1071 }
 0x9ec   :  { %v1074_v48 = vmul.f32 %v2450_v46, %v1072_v47 }
 0x9ee   :  { %1076 = vrot.lane.b32.xlu0 %v1074_v48, %s2624_s3 }
 0x9ef   :  { %v974_v50 = vpop.permute.xlu1 %973 }
 0x9f0   :  { %v976_v51 = vmul.f32 %v2452_v49, %v974_v50 }
 0x9f2   :  { %978 = vrot.lane.b32.xlu1 %v976_v51, %s2624_s3 }
 0xa60   :  { %v1077_v53 = vpop.permute.xlu0 %1076 }
 0xa61   :  { %v2890_v54 = vadd.f32 %v1077_v53, %v1069_v52 }
 0xa63   :  { %2453 = vtanh.f32 %v2890_v54 }
 0xa64   :  { %v979_v56 = vpop.permute.xlu1 %978 }
 0xa65   :  { %v2894_v57 = vadd.f32 %v979_v56, %v971_v55 }
 0xa67   :  { %2455 = vtanh.f32 %v2894_v57 }
 0xa6d   :  { %v2454_v58 = vpop.eup %2453 }
 0xa6e   :  { %1082 = vrot.lane.b32.xlu0 %v2454_v58, %s2624_s3 }
 0xa71   :  { %v2456_v59 = vpop.eup %2455 }
 0xa72   :  { %984 = vrot.lane.b32.xlu1 %v2456_v59, %s2624_s3 }
 0xae0   :  { %v1083_v60 = vpop.permute.xlu0 %1082 }
 0xae1   :  { %v1085_v61 = vmul.f32 %v2450_v46, %v1083_v60 }
 0xae3   :  { %1092 = vrot.lane.b32.xlu0 %v1085_v61, %s2625_s16 }
 0xae4   :  { %v985_v62 = vpop.permute.xlu1 %984 }
 0xae5   :  { %v987_v63 = vmul.f32 %v2452_v49, %v985_v62  ;;  %v1302_v49 = vld [vmem:[#allocation2 + $0xa] sm:$0x3] }
 0xae7   :  { %1087 = vrot.lane.b32.xlu1 %v987_v63, %s2625_s16 }
 0xb55   :  { %v1093_v0 = vpop.permute.xlu0 %1092 }
 0xb56   :  { %1095 = vst.msk [vmem:[#allocation5 + $0x8] sm:$0x3] %vm471_vm2, %v1093_v0  ;;  %2202 = vmatmul.mubr.msk.f32.vlgmr.msra.gmra.mrb[10].mxu1 %vm92_vm0, %v1093_v0 }
 0xb57   :  { %2354 = vmatpush3.bf16.msra.mxu1 %v2750_v18  ;;  %2223 = vmatprep.mubr.msk.f32.mxu1 %vm2622_vm1, %v2623_v27 }
 0xb58   :  { %2355 = vmatprep.subr.bf16.mxu1 %v2621_v19 }
 0xb59   :  { %v1088_v1 = vpop.permute.xlu1 %1087 }
 0xb5a   :  { %1090 = vst.msk [vmem:[#allocation4 + $0x6] sm:$0x3] %vm471_vm2, %v1088_v1  ;;  %2191 = vmatmul.mubr.msk.f32.vlgmr.msra.gmra.mrb[10].mxu0 %vm92_vm0, %v1088_v1 }
 0xb5b   :  { %2348 = vmatpush3.bf16.msra.mxu0 %v2753_v22  ;;  %2357 = vmatpush3.bf16.msra.mxu1 %v2759_v25 }
 0xb5c   :  { %2349 = vmatprep.subr.bf16.mxu0 %v2621_v19  ;;  %2212 = vmatprep.mubr.msk.f32.mxu0 %vm2622_vm1, %v2623_v27 }
 0xb5d   :  { %2364 = vmatprep.subr.bf16.mxu1 %v2621_v19 }
 0xb5f   :  { %2351 = vmatpush3.bf16.msra.mxu0 %v2763_v26 }
 0xb60   :  { %2358 = vmatprep.subr.bf16.mxu0 %v2621_v19 }
 0xb61   :  { %v1920_v2 = vld [vmem:[#allocation4] sm:$0xff] }
 0xb62   :  { %1922 = vst.msk [vmem:[%s3018_s7] sm:$0xff] %vm92_vm0, %v1920_v2 }
 0xc29   :  { %v1263_v4 = vpop.f32.mrb[10].mxu1 }
 0xc2a   :  { %v1267_v5 = vadd.f32 %v1263_v4, %v1194_v3  ;;  %v2203_v6 = vpop.f32.mrb[11].mxu1 }
 0xc2c   :  { %2457 = vtanh.f32 %v1267_v5  ;;  %v1967_v13 = vmul.f32 -1.442695, %v1267_v5 }
 0xc2d   :  { %v1165_v8 = vpop.f32.mrb[10].mxu0 }
 0xc2e   :  { %v1169_v9 = vadd.f32 %v1165_v8, %v1096_v7  ;;  %v2192_v10 = vpop.f32.mrb[11].mxu0 }
 0xc30   :  { %2459 = vtanh.f32 %v1169_v9  ;;  %v1965_v14 = vmul.f32 -1.442695, %v1169_v9 }
 0xc31   :  { %2461 = vpow2.f32 %v1967_v13 }
 0xc32   :  { %2463 = vpow2.f32 %v1965_v14 }
 0xc36   :  { %v2458_v11 = vpop.eup %2457 }
 0xc37   :  { %1277 = vrot.lane.b32.xlu0 %v2458_v11, %s2624_s3 }
 0xc3a   :  { %v2460_v12 = vpop.eup %2459 }
 0xc3b   :  { %1179 = vrot.lane.b32.xlu1 %v2460_v12, %s2624_s3  ;;  %v2462_v15 = vpop.eup %2461 }
 0xc3c   :  { %v1271_v16 = vadd.f32 1.0, %v2462_v15  ;;  %v2464_v17 = vpop.eup %2463 }
 0xc3d   :  { %v1173_v20 = vadd.f32 1.0, %v2464_v17 }
 0xc3e   :  { %2465 = vrcp.f32 %v1271_v16 }
 0xc3f   :  { %2467 = vrcp.f32 %v1173_v20 }
 0xc48   :  { %v2466_v21 = vpop.eup %2465 }
 0xc49   :  { %v2468_v28 = vpop.eup %2467  ;;  %v1275_v31 = vmul.f32 %v2466_v21, %v2890_v54 }
 0xc4a   :  { %v1177_v34 = vmul.f32 %v2468_v28, %v2894_v57 }
 0xca9   :  { %v1278_v23 = vpop.permute.xlu0 %1277 }
 0xcaa   :  { %v1280_v24 = vmul.f32 %v2466_v21, %v1278_v23  ;;  %v1508_v23 = vld [vmem:[#allocation2 + $0xc] sm:$0x3] }
 0xcac   :  { %1282 = vrot.lane.b32.xlu0 %v1280_v24, %s2624_s3 }
 0xcad   :  { %v1180_v29 = vpop.permute.xlu1 %1179 }
 0xcae   :  { %v1182_v30 = vmul.f32 %v2468_v28, %v1180_v29 }
 0xcb0   :  { %1184 = vrot.lane.b32.xlu1 %v1182_v30, %s2624_s3 }
 0xd1e   :  { %v1283_v32 = vpop.permute.xlu0 %1282 }
 0xd1f   :  { %v2926_v33 = vadd.f32 %v1283_v32, %v1275_v31 }
 0xd21   :  { %2469 = vtanh.f32 %v2926_v33 }
 0xd22   :  { %v1185_v35 = vpop.permute.xlu1 %1184 }
 0xd23   :  { %v2930_v36 = vadd.f32 %v1185_v35, %v1177_v34 }
 0xd25   :  { %2471 = vtanh.f32 %v2930_v36 }
 0xd2b   :  { %v2470_v37 = vpop.eup %2469 }
 0xd2c   :  { %1288 = vrot.lane.b32.xlu0 %v2470_v37, %s2624_s3 }
 0xd2f   :  { %v2472_v38 = vpop.eup %2471 }
 0xd30   :  { %1190 = vrot.lane.b32.xlu1 %v2472_v38, %s2624_s3 }
 0xd9e   :  { %v1289_v39 = vpop.permute.xlu0 %1288 }
 0xd9f   :  { %v1291_v40 = vmul.f32 %v2466_v21, %v1289_v39 }
 0xda1   :  { %1298 = vrot.lane.b32.xlu0 %v1291_v40, %s2625_s16 }
 0xda2   :  { %v1191_v41 = vpop.permute.xlu1 %1190 }
 0xda3   :  { %v1193_v42 = vmul.f32 %v2468_v28, %v1191_v41 }
 0xda5   :  { %1293 = vrot.lane.b32.xlu1 %v1193_v42, %s2625_s16 }
 0xe13   :  { %v1299_v43 = vpop.permute.xlu0 %1298 }
 0xe14   :  { %1301 = vst.msk [vmem:[#allocation5 + $0x6] sm:$0x3] %vm471_vm2, %v1299_v43  ;;  %2224 = vmatmul.mubr.msk.f32.vlgmr.msra.gmra.mrb[12].mxu1 %vm92_vm0, %v1299_v43 }
 0xe15   :  { %2366 = vmatpush3.bf16.msra.mxu1 %v2750_v18  ;;  %2245 = vmatprep.mubr.msk.f32.mxu1 %vm2622_vm1, %v2623_v27 }
 0xe16   :  { %2367 = vmatprep.subr.bf16.mxu1 %v2621_v19 }
 0xe17   :  { %v1294_v44 = vpop.permute.xlu1 %1293 }
 0xe18   :  { %1296 = vst.msk [vmem:[#allocation4 + $0x8] sm:$0x3] %vm471_vm2, %v1294_v44  ;;  %2213 = vmatmul.mubr.msk.f32.vlgmr.msra.gmra.mrb[12].mxu0 %vm92_vm0, %v1294_v44 }
 0xe19   :  { %2360 = vmatpush3.bf16.msra.mxu0 %v2753_v22  ;;  %2369 = vmatpush3.bf16.msra.mxu1 %v2759_v25 }
 0xe1a   :  { %2361 = vmatprep.subr.bf16.mxu0 %v2621_v19  ;;  %2234 = vmatprep.mubr.msk.f32.mxu0 %vm2622_vm1, %v2623_v27 }
 0xe1b   :  { %2376 = vmatprep.subr.bf16.mxu1 %v2621_v19 }
 0xe1d   :  { %2363 = vmatpush3.bf16.msra.mxu0 %v2763_v26 }
 0xe1e   :  { %2370 = vmatprep.subr.bf16.mxu0 %v2621_v19 }
 0xee7   :  { %v1469_v46 = vpop.f32.mrb[12].mxu1 }
 0xee8   :  { %v1473_v47 = vadd.f32 %v1469_v46, %v1400_v45  ;;  %v2225_v48 = vpop.f32.mrb[13].mxu1 }
 0xeea   :  { %2473 = vtanh.f32 %v1473_v47  ;;  %v1971_v55 = vmul.f32 -1.442695, %v1473_v47 }
 0xeeb   :  { %v1371_v50 = vpop.f32.mrb[12].mxu0 }
 0xeec   :  { %v1375_v51 = vadd.f32 %v1371_v50, %v1302_v49  ;;  %v2214_v52 = vpop.f32.mrb[13].mxu0 }
 0xeee   :  { %2475 = vtanh.f32 %v1375_v51  ;;  %v1969_v56 = vmul.f32 -1.442695, %v1375_v51 }
 0xeef   :  { %2477 = vpow2.f32 %v1971_v55 }
 0xef0   :  { %2479 = vpow2.f32 %v1969_v56 }
 0xef4   :  { %v2474_v53 = vpop.eup %2473 }
 0xef5   :  { %1483 = vrot.lane.b32.xlu0 %v2474_v53, %s2624_s3  ;;  %v1812_v53 = vld [vmem:[#allocation3] sm:$0x3] }
 0xef8   :  { %v2476_v54 = vpop.eup %2475 }
 0xef9   :  { %1385 = vrot.lane.b32.xlu1 %v2476_v54, %s2624_s3  ;;  %v2478_v57 = vpop.eup %2477 }
 0xefa   :  { %v1477_v58 = vadd.f32 1.0, %v2478_v57  ;;  %v2480_v59 = vpop.eup %2479  ;;  %v1714_v57 = vld [vmem:[#allocation2 + $0xe] sm:$0x3] }
 0xefb   :  { %v1379_v60 = vadd.f32 1.0, %v2480_v59 }
 0xefc   :  { %2481 = vrcp.f32 %v1477_v58 }
 0xefd   :  { %2483 = vrcp.f32 %v1379_v60 }
 0xf06   :  { %v2482_v61 = vpop.eup %2481 }
 0xf07   :  { %v2484_v0 = vpop.eup %2483  ;;  %v1481_v3 = vmul.f32 %v2482_v61, %v2926_v33 }
 0xf08   :  { %v1383_v6 = vmul.f32 %v2484_v0, %v2930_v36 }
 0xf67   :  { %v1484_v62 = vpop.permute.xlu0 %1483 }
 0xf68   :  { %v1486_v63 = vmul.f32 %v2482_v61, %v1484_v62 }
 0xf6a   :  { %1488 = vrot.lane.b32.xlu0 %v1486_v63, %s2624_s3 }
 0xf6b   :  { %v1386_v1 = vpop.permute.xlu1 %1385 }
 0xf6c   :  { %v1388_v2 = vmul.f32 %v2484_v0, %v1386_v1 }
 0xf6e   :  { %1390 = vrot.lane.b32.xlu1 %v1388_v2, %s2624_s3 }
 0xfdc   :  { %v1489_v4 = vpop.permute.xlu0 %1488 }
 0xfdd   :  { %v1491_v5 = vadd.f32 %v1489_v4, %v1481_v3 }
 0xfdf   :  { %2485 = vtanh.f32 %v1491_v5 }
 0xfe0   :  { %v1391_v7 = vpop.permute.xlu1 %1390 }
 0xfe1   :  { %v1393_v8 = vadd.f32 %v1391_v7, %v1383_v6 }
 0xfe3   :  { %2487 = vtanh.f32 %v1393_v8 }
 0xfe9   :  { %v2486_v9 = vpop.eup %2485 }
 0xfea   :  { %1494 = vrot.lane.b32.xlu0 %v2486_v9, %s2624_s3 }
 0xfed   :  { %v2488_v10 = vpop.eup %2487 }
 0xfee   :  { %1396 = vrot.lane.b32.xlu1 %v2488_v10, %s2624_s3 }
0x105c   :  { %v1495_v11 = vpop.permute.xlu0 %1494 }
0x105d   :  { %v1497_v12 = vmul.f32 %v2482_v61, %v1495_v11 }
0x105f   :  { %1504 = vrot.lane.b32.xlu0 %v1497_v12, %s2625_s16 }
0x1060   :  { %v1397_v13 = vpop.permute.xlu1 %1396 }
0x1061   :  { %v1399_v14 = vmul.f32 %v2484_v0, %v1397_v13 }
0x1063   :  { %1499 = vrot.lane.b32.xlu1 %v1399_v14, %s2625_s16 }
0x10d1   :  { %v1505_v15 = vpop.permute.xlu0 %1504 }
0x10d2   :  { %1507 = vst.msk [vmem:[#allocation5 + $0x4] sm:$0x3] %vm471_vm2, %v1505_v15  ;;  %2246 = vmatmul.mubr.msk.f32.vlgmr.msra.gmra.mrb[14].mxu1 %vm92_vm0, %v1505_v15 }
0x10d3   :  { %2378 = vmatpush3.bf16.msra.mxu1 %v2750_v18  ;;  %2267 = vmatprep.mubr.msk.f32.mxu1 %vm2622_vm1, %v2623_v27  ;;  %v1606_v18 = vld [vmem:[#allocation3 + $0x2] sm:$0x3] }
0x10d4   :  { %2379 = vmatprep.subr.bf16.mxu1 %v2621_v19 }
0x10d5   :  { %v1500_v16 = vpop.permute.xlu1 %1499 }
0x10d6   :  { %1502 = vst.msk [vmem:[#allocation4 + $0xa] sm:$0x3] %vm471_vm2, %v1500_v16  ;;  %2235 = vmatmul.mubr.msk.f32.vlgmr.msra.gmra.mrb[14].mxu0 %vm92_vm0, %v1500_v16 }
0x10d7   :  { %2372 = vmatpush3.bf16.msra.mxu0 %v2753_v22  ;;  %2381 = vmatpush3.bf16.msra.mxu1 %v2759_v25 }
0x10d8   :  { %2373 = vmatprep.subr.bf16.mxu0 %v2621_v19  ;;  %2256 = vmatprep.mubr.msk.f32.mxu0 %vm2622_vm1, %v2623_v27 }
0x10db   :  { %2375 = vmatpush3.bf16.msra.mxu0 %v2763_v26 }
0x11a5   :  { %v1675_v17 = vpop.f32.mrb[14].mxu1 }
0x11a6   :  { %v1679_v20 = vadd.f32 %v1675_v17, %v1606_v18  ;;  %v2247_v21 = vpop.f32.mrb[15].mxu1 }
0x11a8   :  { %2489 = vtanh.f32 %v1679_v20  ;;  %v1975_v19 = vmul.f32 -1.442695, %v1679_v20 }
0x11a9   :  { %v1577_v24 = vpop.f32.mrb[14].mxu0 }
0x11aa   :  { %v1581_v28 = vadd.f32 %v1577_v24, %v1508_v23  ;;  %v2236_v29 = vpop.f32.mrb[15].mxu0 }
0x11ac   :  { %2491 = vtanh.f32 %v1581_v28  ;;  %v1973_v27 = vmul.f32 -1.442695, %v1581_v28  ;;  %v1925_v28 = vld [vmem:[#allocation5 + $0x8] sm:$0xff] }
0x11ad   :  { %2493 = vpow2.f32 %v1975_v19 }
0x11ae   :  { %2495 = vpow2.f32 %v1973_v27 }
0x11b2   :  { %v2490_v22 = vpop.eup %2489 }
0x11b3   :  { %1689 = vrot.lane.b32.xlu0 %v2490_v22, %s2624_s3 }
0x11b6   :  { %v2492_v25 = vpop.eup %2491 }
0x11b7   :  { %1591 = vrot.lane.b32.xlu1 %v2492_v25, %s2624_s3  ;;  %v2494_v26 = vpop.eup %2493 }
0x11b8   :  { %v1683_v30 = vadd.f32 1.0, %v2494_v26  ;;  %v2496_v31 = vpop.eup %2495 }
0x11b9   :  { %v1585_v32 = vadd.f32 1.0, %v2496_v31 }
0x11ba   :  { %2497 = vrcp.f32 %v1683_v30 }
0x11bb   :  { %2499 = vrcp.f32 %v1585_v32 }
0x11c4   :  { %v2498_v33 = vpop.eup %2497 }
0x11c5   :  { %v2500_v36 = vpop.eup %2499  ;;  %v1687_v39 = vmul.f32 %v2498_v33, %v1491_v5 }
0x11c6   :  { %v1589_v42 = vmul.f32 %v2500_v36, %v1393_v8 }
0x1225   :  { %v1690_v34 = vpop.permute.xlu0 %1689 }
0x1226   :  { %v1692_v35 = vmul.f32 %v2498_v33, %v1690_v34 }
0x1228   :  { %1694 = vrot.lane.b32.xlu0 %v1692_v35, %s2624_s3 }
0x1229   :  { %v1592_v37 = vpop.permute.xlu1 %1591 }
0x122a   :  { %v1594_v38 = vmul.f32 %v2500_v36, %v1592_v37 }
0x122c   :  { %1596 = vrot.lane.b32.xlu1 %v1594_v38, %s2624_s3 }
0x129a   :  { %v1695_v40 = vpop.permute.xlu0 %1694 }
0x129b   :  { %v1697_v41 = vadd.f32 %v1695_v40, %v1687_v39 }
0x129d   :  { %2501 = vtanh.f32 %v1697_v41 }
0x129e   :  { %v1597_v43 = vpop.permute.xlu1 %1596 }
0x129f   :  { %v1599_v44 = vadd.f32 %v1597_v43, %v1589_v42 }
0x12a1   :  { %2503 = vtanh.f32 %v1599_v44 }
0x12a7   :  { %v2502_v45 = vpop.eup %2501 }
0x12a8   :  { %1700 = vrot.lane.b32.xlu0 %v2502_v45, %s2624_s3 }
0x12ab   :  { %v2504_v46 = vpop.eup %2503 }
0x12ac   :  { %1602 = vrot.lane.b32.xlu1 %v2504_v46, %s2624_s3 }
0x131a   :  { %v1701_v47 = vpop.permute.xlu0 %1700 }
0x131b   :  { %v1703_v48 = vmul.f32 %v2498_v33, %v1701_v47 }
0x131d   :  { %1710 = vrot.lane.b32.xlu0 %v1703_v48, %s2625_s16 }
0x131e   :  { %v1603_v49 = vpop.permute.xlu1 %1602 }
0x131f   :  { %v1605_v50 = vmul.f32 %v2500_v36, %v1603_v49 }
0x1321   :  { %1705 = vrot.lane.b32.xlu1 %v1605_v50, %s2625_s16 }
0x138f   :  { %v1711_v51 = vpop.permute.xlu0 %1710 }
0x1390   :  { %1713 = vst.msk [vmem:[#allocation5 + $0x2] sm:$0x3] %vm471_vm2, %v1711_v51  ;;  %2268 = vmatmul.mubr.msk.f32.vlgmr.msra.gmra.mrb[16].mxu1 %vm92_vm0, %v1711_v51 }
0x1393   :  { %v1706_v52 = vpop.permute.xlu1 %1705 }
0x1394   :  { %1708 = vst.msk [vmem:[#allocation4 + $0xc] sm:$0x3] %vm471_vm2, %v1706_v52  ;;  %2257 = vmatmul.mubr.msk.f32.vlgmr.msra.gmra.mrb[16].mxu0 %vm92_vm0, %v1706_v52 }
0x1463   :  { %v1881_v54 = vpop.f32.mrb[16].mxu1 }
0x1464   :  { %v1885_v55 = vadd.f32 %v1881_v54, %v1812_v53  ;;  %v2269_v56 = vpop.f32.mrb[17].mxu1 }
0x1466   :  { %2505 = vtanh.f32 %v1885_v55  ;;  %v1979_v63 = vmul.f32 -1.442695, %v1885_v55 }
0x1467   :  { %v1783_v58 = vpop.f32.mrb[16].mxu0 }
0x1468   :  { %v1787_v59 = vadd.f32 %v1783_v58, %v1714_v57  ;;  %v2258_v60 = vpop.f32.mrb[17].mxu0 }
0x146a   :  { %2507 = vtanh.f32 %v1787_v59  ;;  %v1977_v0 = vmul.f32 -1.442695, %v1787_v59 }
0x146b   :  { %2509 = vpow2.f32 %v1979_v63 }
0x146c   :  { %2511 = vpow2.f32 %v1977_v0 }
0x1470   :  { %v2506_v61 = vpop.eup %2505 }
0x1471   :  { %1895 = vrot.lane.b32.xlu0 %v2506_v61, %s2624_s3 }
0x1474   :  { %v2508_v62 = vpop.eup %2507 }
0x1475   :  { %1797 = vrot.lane.b32.xlu1 %v2508_v62, %s2624_s3  ;;  %v2510_v1 = vpop.eup %2509 }
0x1476   :  { %v1889_v2 = vadd.f32 1.0, %v2510_v1  ;;  %v2512_v3 = vpop.eup %2511 }
0x1477   :  { %v1791_v4 = vadd.f32 1.0, %v2512_v3 }
0x1478   :  { %2513 = vrcp.f32 %v1889_v2 }
0x1479   :  { %2515 = vrcp.f32 %v1791_v4 }
0x1482   :  { %v2514_v5 = vpop.eup %2513 }
0x1483   :  { %v2516_v8 = vpop.eup %2515  ;;  %v1893_v11 = vmul.f32 %v2514_v5, %v1697_v41 }
0x1484   :  { %v1795_v14 = vmul.f32 %v2516_v8, %v1599_v44 }
0x14e3   :  { %v1896_v6 = vpop.permute.xlu0 %1895 }
0x14e4   :  { %v1898_v7 = vmul.f32 %v2514_v5, %v1896_v6 }
0x14e6   :  { %1900 = vrot.lane.b32.xlu0 %v1898_v7, %s2624_s3 }
0x14e7   :  { %v1798_v9 = vpop.permute.xlu1 %1797 }
0x14e8   :  { %v1800_v10 = vmul.f32 %v2516_v8, %v1798_v9 }
0x14ea   :  { %1802 = vrot.lane.b32.xlu1 %v1800_v10, %s2624_s3 }
0x1558   :  { %v1901_v12 = vpop.permute.xlu0 %1900 }
0x1559   :  { %v1903_v13 = vadd.f32 %v1901_v12, %v1893_v11 }
0x155b   :  { %2517 = vtanh.f32 %v1903_v13 }
0x155c   :  { %v1803_v15 = vpop.permute.xlu1 %1802 }
0x155d   :  { %v1805_v16 = vadd.f32 %v1803_v15, %v1795_v14 }
0x155f   :  { %2519 = vtanh.f32 %v1805_v16 }
0x1565   :  { %v2518_v18 = vpop.eup %2517 }
0x1566   :  { %1906 = vrot.lane.b32.xlu0 %v2518_v18, %s2624_s3 }
0x1569   :  { %v2520_v17 = vpop.eup %2519 }
0x156a   :  { %1808 = vrot.lane.b32.xlu1 %v2520_v17, %s2624_s3 }
0x15d8   :  { %v1907_v20 = vpop.permute.xlu0 %1906 }
0x15d9   :  { %v1909_v21 = vmul.f32 %v2514_v5, %v1907_v20 }
0x15db   :  { %1916 = vrot.lane.b32.xlu0 %v1909_v21, %s2625_s16 }
0x15dc   :  { %v1809_v23 = vpop.permute.xlu1 %1808 }
0x15dd   :  { %v1811_v24 = vmul.f32 %v2516_v8, %v1809_v23 }
0x15df   :  { %1911 = vrot.lane.b32.xlu1 %v1811_v24, %s2625_s16 }
0x15e3   :  { %1930 = vrot.lane.b32.xlu1 %v1925_v28, %s2624_s3 }
0x164d   :  { %v1917_v29 = vpop.permute.xlu0 %1916 }
0x164e   :  { %1919 = vst.msk [vmem:[#allocation5] sm:$0x3] %vm471_vm2, %v1917_v29 }
0x1651   :  { %v1912_v22 = vpop.permute.xlu1 %1911 }
0x1652   :  { %1914 = vst.msk [vmem:[#allocation4 + $0xe] sm:$0x3] %vm471_vm2, %v1912_v22 }
0x1655   :  { %v1924_v25 = vld [vmem:[#allocation5] sm:$0xff]  ;;  %v1931_v27 = vpop.permute.xlu1 %1930 }
0x1656   :  { %1928 = vrot.lane.b32.xlu0 %v1924_v25, %s2624_s3 }
0x1659   :  { %v1921_v19 = vld [vmem:[#allocation4 + $0x8] sm:$0xff] }
0x165a   :  { %1923 = vst.msk [vmem:[%s3018_s7 + $0x8] sm:$0xff] %vm92_vm0, %v1921_v19 }
0x165b   :  { %1936 = vst.msk [vmem:[%s3018_s7 + $0x8] sm:$0xff] %vm1934_vm3, %v1931_v27 }
0x16c8   :  { %v1929_v26 = vpop.permute.xlu0 %1928 }
0x16c9   :  { %1935 = vst.msk [vmem:[%s3018_s7] sm:$0xff] %vm1934_vm3, %v1929_v26 }
0x16ca   :  { %1941 = vsyncpa [#allocation7], 1 }
0x16cb   :  { %1942 = vsyncpa [#allocation9], 1 }
0x16cc   :  { %1943 = vsyncpa [#allocation12], 1 }

// kernel: full_context_arc_forward.3
= control target key start
LH: loop header
LB: loop body
LE: loop exit
PB: predicated region body
PF: predicated region fallthrough
CT: control target
= control target key end

     0   :  { %s3287_s0 = inlined_call_operand.vmem [shape: f32[16,64], index: 0, kind: input, shape index: {}]   ;;  %s3288_s1 = inlined_call_operand.vmem [shape: f32[64,128], index: 1, kind: input, shape index: {}]   ;;  %s3289_s2 = inlined_call_operand.vmem [shape: f32[32,128], index: 2, kind: input, shape index: {}]   ;;  %s3290_s3 = inlined_call_operand.vmem [shape: f32[1,128], index: 3, kind: input, shape index: {}]   ;;  %s3291_s4 = inlined_call_operand.vmem [shape: f32[64,128], index: 4, kind: input, shape index: {}]   ;;  %s3292_s5 = inlined_call_operand.vmem [shape: f32[32,128], index: 5, kind: input, shape index: {}]   ;;  %s3293_s6 = inlined_call_operand.vmem [shape: f32[1,128], index: 6, kind: input, shape index: {}]   ;;  %s3294_s7 = inlined_call_operand.vmem [shape: f32[1,32], index: 7, kind: input, shape index: {}]   ;;  %s3295_s8 = inlined_call_operand.hbm [shape: f32[1,32], index: 8, kind: input, shape index: {}]   ;;  %s3296_s9 = inlined_call_operand.<no memory space> [shape: f32[1,1], index: 9, kind: input, shape index: {}]   ;;  %s3297_s10 = inlined_call_operand.hbm [shape: f32[2,8], index: 10, kind: output, shape index: {}]  }
   0x1   :  { %v15_v0 = vstv %s3296_s9 }
   0x2   :  { %16 = vst [vmem:[#allocation4] sm:$0x1] %v15_v0 }
   0x3   :  { %17 = vsyncpa [#allocation6], 0 }
   0x4   :  { %18 = vsyncpa [#allocation7], 0  ;;  %s2755_s15 = smov [#allocation5]   ;;  %s2707_s19 = scalar_lea.hbm %s3295_s8, 16 }
   0x5   :  { %s41_s16 = sshll.u32 %s2755_s15, 4  ;;  %p2708_p0 = scmp.ne.s32.totalorder %s3295_s8, %s2707_s19  ;;  %s42_s16 = int_to_ptr.vmem [resolvable:$true] %s41_s16 }
   0x6   :  { %p2711_p1 = scmp.lt.u32.totalorder %s2707_s19, %s3295_s8 }
   0x8   :  { %p2713_p2 = pnand %p2711_p1, %p2708_p0 }
   0xa   :  { %2716 = shalt.err (!%p2713_p2)
}
   0xb   :  { %s2717_s9 = scalar_lea.vmem %s42_s16, 16  ;;  %s2721_s24 = scalar_lea.vmem %s42_s16, 32 }
   0xc   :  { %p2718_p3 = scmp.ne.s32.totalorder %s42_s16, %s2717_s9  ;;  %p2722_p4 = scmp.lt.s32.totalorder %s42_s16, %s42_s16 }
   0xd   :  { %p2723_p5 = scmp.lt.s32.totalorder %s2721_s24, %s2717_s9 }
   0xf   :  { %p2724_p6 = por %p2723_p5, %p2722_p4 }
  0x11   :  { %p2725_p7 = pnand %p2724_p6, %p2718_p3 }
  0x13   :  { %2728 = shalt.err (!%p2725_p7)
}
  0x14   :  { %44 = dma.hbm_to_vmem [thread:$0]  %s3295_s8, 16, %s42_s16, [#allocation6]  }
  0x15   :  { %2751 = dma.done.wait [#allocation6], 16  }
  0x16   :  { %2752 = vsyncadd [#allocation6], 4294967280  ;;  %v52_v1 = vld [vmem:[%s3288_s1] sm:$0xff]  ;;  %v53_v2 = vld [vmem:[%s3288_s1 + $0x8] sm:$0xff]  ;;  %vm67_vm0 = vcmask 523264   ;;  %v2756_v32 = vmov 0.0|0.0  }
  0x17   :  { %v54_v3 = vld [vmem:[%s3288_s1 + $0x10] sm:$0xff]  ;;  %v2438_v4 = vpack.c.bf16 %v53_v2, %v52_v1  ;;  %v55_v5 = vld [vmem:[%s3288_s1 + $0x18] sm:$0xff]  ;;  %v151_v6 = vld [vmem:[%s3291_s4] sm:$0xff]  ;;  %vm2757_vm1 = vmmov 0   ;;  %v2758_v40 = vmov 0.0   ;;  %vm256_vm2 = vcmask 261120  }
  0x18   :  { %v152_v7 = vld [vmem:[%s3291_s4 + $0x8] sm:$0xff]  ;;  %v2442_v8 = vpack.c.bf16 %v55_v5, %v54_v3  ;;  %v56_v10 = vld [vmem:[%s3288_s1 + $0x20] sm:$0xff]  ;;  %v153_v12 = vld [vmem:[%s3291_s4 + $0x10] sm:$0xff]  ;;  %vm464_vm3 = vcmask 254976   ;;  %vm2067_vm12 = vcmask 58368  }
  0x19   :  { %v2454_v9 = vpack.c.bf16 %v152_v7, %v151_v6  ;;  %v57_v11 = vld [vmem:[%s3288_s1 + $0x28] sm:$0xff]  ;;  %2439 = vmatprep.subr.bf16.mxu0 %v2438_v4  ;;  %v154_v13 = vld [vmem:[%s3291_s4 + $0x18] sm:$0xff]  ;;  %v155_v15 = vld [vmem:[%s3291_s4 + $0x20] sm:$0xff] }
  0x1a   :  { %2441 = vmatpush3.bf16.msra.mxu0 %v2438_v4  ;;  %v2458_v14 = vpack.c.bf16 %v154_v13, %v153_v12  ;;  %v156_v16 = vld [vmem:[%s3291_s4 + $0x28] sm:$0xff]  ;;  %v50_v17 = vld [vmem:[%s3287_s0] sm:$0xff]  ;;  %v2446_v18 = vpack.c.bf16 %v57_v11, %v56_v10  ;;  %v58_v19 = vld [vmem:[%s3288_s1 + $0x30] sm:$0xff] }
  0x1b   :  { %2455 = vmatprep.subr.bf16.mxu1 %v2454_v9  ;;  %2443 = vmatprep.subr.bf16.mxu0 %v2442_v8  ;;  %v59_v20 = vld [vmem:[%s3288_s1 + $0x38] sm:$0xff]  ;;  %v2462_v21 = vpack.c.bf16 %v156_v16, %v155_v15  ;;  %v157_v22 = vld [vmem:[%s3291_s4 + $0x30] sm:$0xff]  ;;  %v243_v26 = vld [vmem:[%s3289_s2] sm:$0xff] }
  0x1c   :  { %2457 = vmatpush3.bf16.msra.mxu1 %v2454_v9  ;;  %2240 = vmatprep.mubr.msk.f32.mxu0 %vm67_vm0, %v50_v17  ;;  %v158_v23 = vld [vmem:[%s3291_s4 + $0x38] sm:$0xff]  ;;  %v2450_v24 = vpack.c.bf16 %v59_v20, %v58_v19  ;;  %v244_v27 = vld [vmem:[%s3289_s2 + $0x8] sm:$0xff]  ;;  %v247_v28 = vld [vmem:[%s3292_s5] sm:$0xff] }
  0x1d   :  { %2459 = vmatprep.subr.bf16.mxu1 %v2458_v14  ;;  %2259 = vmatprep.mubr.msk.f32.mxu1 %vm67_vm0, %v50_v17  ;;  %v2466_v25 = vpack.c.bf16 %v158_v23, %v157_v22  ;;  %v248_v29 = vld [vmem:[%s3292_s5 + $0x8] sm:$0xff]  ;;  %v2901_v31 = vpack.c.bf16 %v244_v27, %v243_v26  ;;  %v245_v33 = vld [vmem:[%s3289_s2 + $0x10] sm:$0xff]  ;;  %v246_v34 = vld [vmem:[%s3289_s2 + $0x18] sm:$0xff] }
  0x1e   :  { %2445 = vmatpush3.bf16.msra.mxu0 %v2442_v8  ;;  %v51_v30 = vld [vmem:[%s3287_s0 + $0x8] sm:$0xff]  ;;  %v2910_v35 = vpack.c.bf16 %v248_v29, %v247_v28  ;;  %v249_v36 = vld [vmem:[%s3292_s5 + $0x10] sm:$0xff]  ;;  %v250_v37 = vld [vmem:[%s3292_s5 + $0x18] sm:$0xff]  ;;  %v2922_v38 = vpack.c.bf16 %v246_v34, %v245_v33 }
  0x1f   :  { %2447 = vmatprep.subr.bf16.mxu0 %v2446_v18  ;;  %v2926_v39 = vpack.c.bf16 %v250_v37, %v249_v36  ;;  %v2084_v41 = vld [vmem:[%s3290_s3] ss:$0 sm:$0xff]  ;;  %s2759_s3 = smov 32  }
  0x20   :  { %2461 = vmatpush3.bf16.msra.mxu1 %v2458_v14  ;;  %v2087_v42 = vld [vmem:[%s3293_s6] ss:$0 sm:$0xff]  ;;  %s2760_s6 = smov 64  }
  0x21   :  { %2463 = vmatprep.subr.bf16.mxu1 %v2462_v21 }
  0x22   :  { %2449 = vmatpush3.bf16.msra.mxu0 %v2446_v18 }
  0x23   :  { %2451 = vmatprep.subr.bf16.mxu0 %v2450_v24 }
  0x24   :  { %2465 = vmatpush3.bf16.msra.mxu1 %v2462_v21 }
  0x25   :  { %2467 = vmatprep.subr.bf16.mxu1 %v2466_v25 }
  0x26   :  { %2453 = vmatpush3.bf16.msra.mxu0 %v2450_v24 }
  0x27   :  { %2470 = vmatprep.subr.bf16.mxu0 %v2756_v32 }
  0x28   :  { %2469 = vmatpush3.bf16.msra.mxu1 %v2466_v25 }
  0x29   :  { %2476 = vmatprep.subr.bf16.mxu1 %v2756_v32  ;;  %2241 = vmatmul.mubr.msk.f32.vlgmr.msra.gmra.mrb[0].mxu0 %vm67_vm0, %v51_v30 }
  0x2a   :  { %2472 = vmatpush3.bf16.msra.mxu0 %v2901_v31  ;;  %2270 = vmatprep.mubr.msk.f32.mxu0 %vm2757_vm1, %v2758_v40 }
  0x2b   :  { %2260 = vmatmul.mubr.msk.f32.vlgmr.msra.gmra.mrb[0].mxu1 %vm67_vm0, %v51_v30  ;;  %2473 = vmatprep.subr.bf16.mxu0 %v2756_v32 }
  0x2c   :  { %2478 = vmatpush3.bf16.msra.mxu1 %v2910_v35  ;;  %2281 = vmatprep.mubr.msk.f32.mxu1 %vm2757_vm1, %v2758_v40 }
  0x2d   :  { %2479 = vmatprep.subr.bf16.mxu1 %v2756_v32 }
  0x2e   :  { %2475 = vmatpush3.bf16.msra.mxu0 %v2922_v38 }
  0x2f   :  { %2482 = vmatprep.subr.bf16.mxu0 %v2756_v32 }
  0x30   :  { %2481 = vmatpush3.bf16.msra.mxu1 %v2926_v39 }
  0x31   :  { %2488 = vmatprep.subr.bf16.mxu1 %v2756_v32  ;;  %2271 = vmatmul.mubr.f32.vlgmr.msra.gmra.mrb[2].mxu0 %v2758_v40 }
  0x32   :  { %2484 = vmatpush3.bf16.msra.mxu0 %v2901_v31  ;;  %2292 = vmatprep.mubr.msk.f32.mxu0 %vm2757_vm1, %v2758_v40 }
  0x33   :  { %2282 = vmatmul.mubr.f32.vlgmr.msra.gmra.mrb[2].mxu1 %v2758_v40  ;;  %2485 = vmatprep.subr.bf16.mxu0 %v2756_v32 }
  0x34   :  { %2490 = vmatpush3.bf16.msra.mxu1 %v2910_v35  ;;  %2303 = vmatprep.mubr.msk.f32.mxu1 %vm2757_vm1, %v2758_v40 }
  0x35   :  { %2491 = vmatprep.subr.bf16.mxu1 %v2756_v32 }
  0x36   :  { %2487 = vmatpush3.bf16.msra.mxu0 %v2922_v38 }
  0x37   :  { %2494 = vmatprep.subr.bf16.mxu0 %v2756_v32 }
  0x38   :  { %2493 = vmatpush3.bf16.msra.mxu1 %v2926_v39 }
  0x39   :  { %2500 = vmatprep.subr.bf16.mxu1 %v2756_v32 }
  0xfc   :  { %v2242_v43 = vpop.f32.mrb[0].mxu0 }
  0xfd   :  { %v146_v44 = vadd.f32 %v2242_v43, %v2084_v41  ;;  %v140_v45 = vpop.f32.mrb[1].mxu0 }
  0xfe   :  { %v2261_v46 = vpop.f32.mrb[0].mxu1  ;;  %v141_v47 = vadd.f32 %v2084_v41, %v140_v45 }
  0xff   :  { %v238_v48 = vadd.f32 %v2261_v46, %v2087_v42  ;;  %v232_v49 = vpop.f32.mrb[1].mxu1  ;;  %150 = vst [vmem:[#allocation2 + $0x8] sm:$0xff] %v146_v44 }
 0x100   :  { %v233_v50 = vadd.f32 %v2087_v42, %v232_v49  ;;  %149 = vst [vmem:[#allocation2] sm:$0xff] %v141_v47 }
 0x101   :  { %242 = vst [vmem:[#allocation3 + $0x8] sm:$0xff] %v238_v48 }
 0x102   :  { %241 = vst [vmem:[#allocation3] sm:$0xff] %v233_v50 }
 0x104   :  { %v326_v51 = vpop.f32.mrb[2].mxu0 }
 0x105   :  { %v2272_v52 = vpop.f32.mrb[3].mxu0 }
 0x106   :  { %v422_v53 = vpop.f32.mrb[2].mxu1 }
 0x107   :  { %v2283_v54 = vpop.f32.mrb[3].mxu1  ;;  %v255_v55 = vld [vmem:[#allocation2] sm:$0x3]  ;;  %v490_v23 = vld [vmem:[#allocation2 + $0x2] sm:$0x3] }
 0x108   :  { %v355_v56 = vld [vmem:[#allocation3 + $0xe] sm:$0x3]  ;;  %v330_v57 = vadd.f32 %v326_v51, %v255_v55  ;;  %v591_v27 = vld [vmem:[#allocation3 + $0xc] sm:$0x3] }
 0x109   :  { %v426_v58 = vadd.f32 %v422_v53, %v355_v56 }
 0x10a   :  { %2575 = vtanh.f32 %v330_v57  ;;  %v2090_v61 = vmul.f32 -1.442695, %v330_v57 }
 0x10b   :  { %2577 = vtanh.f32 %v426_v58  ;;  %v2091_v62 = vmul.f32 -1.442695, %v426_v58 }
 0x10c   :  { %2579 = vpow2.f32 %v2090_v61 }
 0x10d   :  { %2581 = vpow2.f32 %v2091_v62 }
 0x114   :  { %v2576_v59 = vpop.eup %2575 }
 0x115   :  { %340 = vrot.lane.b32.xlu0 %v2576_v59, %s2759_s3  ;;  %v2578_v60 = vpop.eup %2577 }
 0x116   :  { %v2580_v63 = vpop.eup %2579 }
 0x117   :  { %v334_v0 = vadd.f32 1.0, %v2580_v63  ;;  %v2582_v1 = vpop.eup %2581 }
 0x118   :  { %v430_v2 = vadd.f32 1.0, %v2582_v1  ;;  %v714_v1 = vld [vmem:[#allocation2 + $0x4] sm:$0x3] }
 0x119   :  { %436 = vrot.lane.b32.xlu0 %v2578_v60, %s2759_s3  ;;  %2583 = vrcp.f32 %v334_v0 }
 0x11a   :  { %2585 = vrcp.f32 %v430_v2 }
 0x123   :  { %v2584_v3 = vpop.eup %2583 }
 0x124   :  { %v2586_v6 = vpop.eup %2585  ;;  %v338_v9 = vmul.f32 0.0, %v2584_v3 }
 0x125   :  { %v434_v12 = vmul.f32 0.0, %v2586_v6 }
 0x187   :  { %v341_v4 = vpop.permute.xlu0 %340 }
 0x188   :  { %v343_v5 = vmul.f32 %v2584_v3, %v341_v4 }
 0x18a   :  { %345 = vrot.lane.b32.xlu1 %v343_v5, %s2759_s3  ;;  %v815_v5 = vld [vmem:[#allocation3 + $0xa] sm:$0x3] }
 0x18b   :  { %v437_v7 = vpop.permute.xlu0 %436 }
 0x18c   :  { %v439_v8 = vmul.f32 %v2586_v6, %v437_v7 }
 0x18e   :  { %441 = vrot.lane.b32.xlu1 %v439_v8, %s2759_s3 }
 0x1fc   :  { %v346_v10 = vpop.permute.xlu1 %345 }
 0x1fd   :  { %v2961_v11 = vadd.f32 %v346_v10, %v338_v9 }
 0x1ff   :  { %2587 = vtanh.f32 %v2961_v11 }
 0x200   :  { %v442_v13 = vpop.permute.xlu1 %441 }
 0x201   :  { %v2964_v14 = vadd.f32 %v442_v13, %v434_v12 }
 0x203   :  { %2589 = vtanh.f32 %v2964_v14 }
 0x209   :  { %v2588_v15 = vpop.eup %2587 }
 0x20a   :  { %351 = vrot.lane.b32.xlu0 %v2588_v15, %s2759_s3 }
 0x20d   :  { %v2590_v16 = vpop.eup %2589 }
 0x20e   :  { %447 = vrot.lane.b32.xlu1 %v2590_v16, %s2759_s3 }
 0x27c   :  { %v352_v17 = vpop.permute.xlu0 %351 }
 0x27d   :  { %v2969_v18 = vmul.f32 %v2584_v3, %v352_v17 }
 0x27f   :  { %492 = vrot.lane.b32.xlu0 %v2969_v18, %s2760_s6 }
 0x280   :  { %v448_v19 = vpop.permute.xlu1 %447 }
 0x281   :  { %v2973_v20 = vmul.f32 %v2586_v6, %v448_v19 }
 0x283   :  { %593 = vrot.lane.b32.xlu1 %v2973_v20, %s2760_s6 }
 0x2f1   :  { %v493_v21 = vpop.permute.xlu0 %492 }
 0x2f2   :  { %2293 = vmatmul.mubr.msk.f32.vlgmr.msra.gmra.mrb[4].mxu0 %vm256_vm2, %v493_v21 }
 0x2f3   :  { %2496 = vmatpush3.bf16.msra.mxu0 %v2901_v31  ;;  %2314 = vmatprep.mubr.msk.f32.mxu0 %vm2757_vm1, %v2758_v40 }
 0x2f4   :  { %2497 = vmatprep.subr.bf16.mxu0 %v2756_v32 }
 0x2f5   :  { %v594_v22 = vpop.permute.xlu1 %593 }
 0x2f6   :  { %2304 = vmatmul.mubr.msk.f32.vlgmr.msra.gmra.mrb[4].mxu1 %vm256_vm2, %v594_v22 }
 0x2f7   :  { %2499 = vmatpush3.bf16.msra.mxu0 %v2922_v38  ;;  %2502 = vmatpush3.bf16.msra.mxu1 %v2910_v35 }
 0x2f8   :  { %2503 = vmatprep.subr.bf16.mxu1 %v2756_v32  ;;  %2325 = vmatprep.mubr.msk.f32.mxu1 %vm2757_vm1, %v2758_v40 }
 0x2f9   :  { %2506 = vmatprep.subr.bf16.mxu0 %v2756_v32 }
 0x2fb   :  { %2505 = vmatpush3.bf16.msra.mxu1 %v2926_v39 }
 0x2fc   :  { %2512 = vmatprep.subr.bf16.mxu1 %v2756_v32 }
 0x3c5   :  { %v562_v24 = vpop.f32.mrb[4].mxu0 }
 0x3c6   :  { %v566_v25 = vadd.f32 %v562_v24, %v490_v23  ;;  %v2294_v26 = vpop.f32.mrb[5].mxu0 }
 0x3c8   :  { %2591 = vtanh.f32 %v566_v25  ;;  %v2095_v36 = vmul.f32 -1.442695, %v566_v25 }
 0x3c9   :  { %v663_v28 = vpop.f32.mrb[4].mxu1 }
 0x3ca   :  { %v667_v29 = vadd.f32 %v663_v28, %v591_v27  ;;  %v2305_v30 = vpop.f32.mrb[5].mxu1 }
 0x3cc   :  { %2593 = vtanh.f32 %v667_v29  ;;  %v2097_v37 = vmul.f32 -1.442695, %v667_v29 }
 0x3cd   :  { %2595 = vpow2.f32 %v2095_v36 }
 0x3ce   :  { %2597 = vpow2.f32 %v2097_v37 }
 0x3d2   :  { %v2592_v33 = vpop.eup %2591 }
 0x3d3   :  { %576 = vrot.lane.b32.xlu0 %v2592_v33, %s2759_s3 }
 0x3d6   :  { %v2594_v34 = vpop.eup %2593 }
 0x3d7   :  { %677 = vrot.lane.b32.xlu1 %v2594_v34, %s2759_s3  ;;  %v2596_v41 = vpop.eup %2595 }
 0x3d8   :  { %v570_v42 = vadd.f32 1.0, %v2596_v41  ;;  %v2598_v43 = vpop.eup %2597 }
 0x3d9   :  { %v671_v44 = vadd.f32 1.0, %v2598_v43 }
 0x3da   :  { %2599 = vrcp.f32 %v570_v42 }
 0x3db   :  { %2601 = vrcp.f32 %v671_v44 }
 0x3e4   :  { %v2600_v45 = vpop.eup %2599 }
 0x3e5   :  { %v2602_v48 = vpop.eup %2601  ;;  %v574_v51 = vmul.f32 %v2600_v45, %v2961_v11 }
 0x3e6   :  { %v675_v54 = vmul.f32 %v2602_v48, %v2964_v14 }
 0x445   :  { %v577_v46 = vpop.permute.xlu0 %576 }
 0x446   :  { %v579_v47 = vmul.f32 %v2600_v45, %v577_v46 }
 0x448   :  { %581 = vrot.lane.b32.xlu0 %v579_v47, %s2759_s3 }
 0x449   :  { %v678_v49 = vpop.permute.xlu1 %677 }
 0x44a   :  { %v680_v50 = vmul.f32 %v2602_v48, %v678_v49  ;;  %v1039_v49 = vld [vmem:[#allocation3 + $0x8] sm:$0x3] }
 0x44c   :  { %682 = vrot.lane.b32.xlu1 %v680_v50, %s2759_s3 }
 0x4ba   :  { %v582_v52 = vpop.permute.xlu0 %581 }
 0x4bb   :  { %v584_v53 = vadd.f32 %v582_v52, %v574_v51 }
 0x4bd   :  { %2603 = vtanh.f32 %v584_v53 }
 0x4be   :  { %v683_v55 = vpop.permute.xlu1 %682 }
 0x4bf   :  { %v685_v56 = vadd.f32 %v683_v55, %v675_v54 }
 0x4c1   :  { %2605 = vtanh.f32 %v685_v56 }
 0x4c7   :  { %v2604_v57 = vpop.eup %2603 }
 0x4c8   :  { %587 = vrot.lane.b32.xlu0 %v2604_v57, %s2759_s3 }
 0x4cb   :  { %v2606_v58 = vpop.eup %2605 }
 0x4cc   :  { %688 = vrot.lane.b32.xlu1 %v2606_v58, %s2759_s3 }
 0x53a   :  { %v588_v59 = vpop.permute.xlu0 %587 }
 0x53b   :  { %v2999_v60 = vmul.f32 %v2600_v45, %v588_v59  ;;  %v938_v45 = vld [vmem:[#allocation2 + $0x6] sm:$0x3] }
 0x53d   :  { %716 = vrot.lane.b32.xlu0 %v2999_v60, %s2760_s6 }
 0x53e   :  { %v689_v61 = vpop.permute.xlu1 %688 }
 0x53f   :  { %v3003_v62 = vmul.f32 %v2602_v48, %v689_v61 }
 0x541   :  { %817 = vrot.lane.b32.xlu1 %v3003_v62, %s2760_s6 }
 0x5af   :  { %v717_v63 = vpop.permute.xlu0 %716 }
 0x5b0   :  { %2315 = vmatmul.mubr.msk.f32.vlgmr.msra.gmra.mrb[6].mxu0 %vm256_vm2, %v717_v63 }
 0x5b1   :  { %2508 = vmatpush3.bf16.msra.mxu0 %v2901_v31  ;;  %2336 = vmatprep.mubr.msk.f32.mxu0 %vm2757_vm1, %v2758_v40 }
 0x5b2   :  { %2509 = vmatprep.subr.bf16.mxu0 %v2756_v32 }
 0x5b3   :  { %v818_v0 = vpop.permute.xlu1 %817 }
 0x5b4   :  { %2326 = vmatmul.mubr.msk.f32.vlgmr.msra.gmra.mrb[6].mxu1 %vm256_vm2, %v818_v0 }
 0x5b5   :  { %2511 = vmatpush3.bf16.msra.mxu0 %v2922_v38  ;;  %2514 = vmatpush3.bf16.msra.mxu1 %v2910_v35 }
 0x5b6   :  { %2515 = vmatprep.subr.bf16.mxu1 %v2756_v32  ;;  %2347 = vmatprep.mubr.msk.f32.mxu1 %vm2757_vm1, %v2758_v40 }
 0x5b7   :  { %2518 = vmatprep.subr.bf16.mxu0 %v2756_v32 }
 0x5b9   :  { %2517 = vmatpush3.bf16.msra.mxu1 %v2926_v39 }
 0x5ba   :  { %2524 = vmatprep.subr.bf16.mxu1 %v2756_v32 }
 0x683   :  { %v786_v2 = vpop.f32.mrb[6].mxu0 }
 0x684   :  { %v790_v3 = vadd.f32 %v786_v2, %v714_v1  ;;  %v2316_v4 = vpop.f32.mrb[7].mxu0 }
 0x686   :  { %2607 = vtanh.f32 %v790_v3  ;;  %v2099_v11 = vmul.f32 -1.442695, %v790_v3 }
 0x687   :  { %v887_v6 = vpop.f32.mrb[6].mxu1 }
 0x688   :  { %v891_v7 = vadd.f32 %v887_v6, %v815_v5  ;;  %v2327_v8 = vpop.f32.mrb[7].mxu1 }
 0x68a   :  { %2609 = vtanh.f32 %v891_v7  ;;  %v2101_v12 = vmul.f32 -1.442695, %v891_v7 }
 0x68b   :  { %2611 = vpow2.f32 %v2099_v11 }
 0x68c   :  { %2613 = vpow2.f32 %v2101_v12 }
 0x690   :  { %v2608_v9 = vpop.eup %2607 }
 0x691   :  { %800 = vrot.lane.b32.xlu0 %v2608_v9, %s2759_s3 }
 0x694   :  { %v2610_v10 = vpop.eup %2609 }
 0x695   :  { %901 = vrot.lane.b32.xlu1 %v2610_v10, %s2759_s3  ;;  %v2612_v13 = vpop.eup %2611 }
 0x696   :  { %v794_v14 = vadd.f32 1.0, %v2612_v13  ;;  %v2614_v15 = vpop.eup %2613 }
 0x697   :  { %v895_v16 = vadd.f32 1.0, %v2614_v15 }
 0x698   :  { %2615 = vrcp.f32 %v794_v14 }
 0x699   :  { %2617 = vrcp.f32 %v895_v16 }
 0x6a2   :  { %v2616_v17 = vpop.eup %2615 }
 0x6a3   :  { %v2618_v22 = vpop.eup %2617  ;;  %v798_v25 = vmul.f32 %v2616_v17, %v584_v53 }
 0x6a4   :  { %v899_v28 = vmul.f32 %v2618_v22, %v685_v56 }
 0x703   :  { %v801_v19 = vpop.permute.xlu0 %800 }
 0x704   :  { %v803_v21 = vmul.f32 %v2616_v17, %v801_v19 }
 0x706   :  { %805 = vrot.lane.b32.xlu0 %v803_v21, %s2759_s3  ;;  %v1162_v21 = vld [vmem:[#allocation2 + $0x8] sm:$0x3] }
 0x707   :  { %v902_v23 = vpop.permute.xlu1 %901 }
 0x708   :  { %v904_v24 = vmul.f32 %v2618_v22, %v902_v23 }
 0x70a   :  { %906 = vrot.lane.b32.xlu1 %v904_v24, %s2759_s3 }
 0x778   :  { %v806_v26 = vpop.permute.xlu0 %805 }
 0x779   :  { %v808_v27 = vadd.f32 %v806_v26, %v798_v25  ;;  %v1263_v25 = vld [vmem:[#allocation3 + $0x6] sm:$0x3] }
 0x77b   :  { %2619 = vtanh.f32 %v808_v27 }
 0x77c   :  { %v907_v29 = vpop.permute.xlu1 %906 }
 0x77d   :  { %v909_v30 = vadd.f32 %v907_v29, %v899_v28 }
 0x77f   :  { %2621 = vtanh.f32 %v909_v30 }
 0x785   :  { %v2620_v33 = vpop.eup %2619 }
 0x786   :  { %811 = vrot.lane.b32.xlu0 %v2620_v33, %s2759_s3 }
 0x789   :  { %v2622_v34 = vpop.eup %2621 }
 0x78a   :  { %912 = vrot.lane.b32.xlu1 %v2622_v34, %s2759_s3 }
 0x7f8   :  { %v812_v36 = vpop.permute.xlu0 %811 }
 0x7f9   :  { %v3027_v37 = vmul.f32 %v2616_v17, %v812_v36 }
 0x7fb   :  { %940 = vrot.lane.b32.xlu0 %v3027_v37, %s2760_s6 }
 0x7fc   :  { %v913_v41 = vpop.permute.xlu1 %912 }
 0x7fd   :  { %v3031_v42 = vmul.f32 %v2618_v22, %v913_v41 }
 0x7ff   :  { %1041 = vrot.lane.b32.xlu1 %v3031_v42, %s2760_s6 }
 0x86d   :  { %v941_v43 = vpop.permute.xlu0 %940 }
 0x86e   :  { %2337 = vmatmul.mubr.msk.f32.vlgmr.msra.gmra.mrb[8].mxu0 %vm256_vm2, %v941_v43 }
 0x86f   :  { %2520 = vmatpush3.bf16.msra.mxu0 %v2901_v31  ;;  %2358 = vmatprep.mubr.msk.f32.mxu0 %vm2757_vm1, %v2758_v40 }
 0x870   :  { %2521 = vmatprep.subr.bf16.mxu0 %v2756_v32 }
 0x871   :  { %v1042_v44 = vpop.permute.xlu1 %1041 }
 0x872   :  { %2348 = vmatmul.mubr.msk.f32.vlgmr.msra.gmra.mrb[8].mxu1 %vm256_vm2, %v1042_v44 }
 0x873   :  { %2523 = vmatpush3.bf16.msra.mxu0 %v2922_v38  ;;  %2526 = vmatpush3.bf16.msra.mxu1 %v2910_v35 }
 0x874   :  { %2527 = vmatprep.subr.bf16.mxu1 %v2756_v32  ;;  %2369 = vmatprep.mubr.msk.f32.mxu1 %vm2757_vm1, %v2758_v40 }
 0x875   :  { %2530 = vmatprep.subr.bf16.mxu0 %v2756_v32 }
 0x877   :  { %2529 = vmatpush3.bf16.msra.mxu1 %v2926_v39 }
 0x878   :  { %2536 = vmatprep.subr.bf16.mxu1 %v2756_v32 }
 0x941   :  { %v1010_v46 = vpop.f32.mrb[8].mxu0 }
 0x942   :  { %v1014_v47 = vadd.f32 %v1010_v46, %v938_v45  ;;  %v2338_v48 = vpop.f32.mrb[9].mxu0 }
 0x944   :  { %2623 = vtanh.f32 %v1014_v47  ;;  %v2103_v55 = vmul.f32 -1.442695, %v1014_v47 }
 0x945   :  { %v1111_v50 = vpop.f32.mrb[8].mxu1 }
 0x946   :  { %v1115_v51 = vadd.f32 %v1111_v50, %v1039_v49  ;;  %v2349_v52 = vpop.f32.mrb[9].mxu1 }
 0x948   :  { %2625 = vtanh.f32 %v1115_v51  ;;  %v2105_v56 = vmul.f32 -1.442695, %v1115_v51 }
 0x949   :  { %2627 = vpow2.f32 %v2103_v55 }
 0x94a   :  { %2629 = vpow2.f32 %v2105_v56 }
 0x94e   :  { %v2624_v53 = vpop.eup %2623 }
 0x94f   :  { %1024 = vrot.lane.b32.xlu0 %v2624_v53, %s2759_s3 }
 0x952   :  { %v2626_v54 = vpop.eup %2625 }
 0x953   :  { %1125 = vrot.lane.b32.xlu1 %v2626_v54, %s2759_s3  ;;  %v2628_v57 = vpop.eup %2627 }
 0x954   :  { %v1018_v58 = vadd.f32 1.0, %v2628_v57  ;;  %v2630_v59 = vpop.eup %2629 }
 0x955   :  { %v1119_v61 = vadd.f32 1.0, %v2630_v59 }
 0x956   :  { %2631 = vrcp.f32 %v1018_v58 }
 0x957   :  { %2633 = vrcp.f32 %v1119_v61 }
 0x960   :  { %v2632_v63 = vpop.eup %2631 }
 0x961   :  { %v2634_v2 = vpop.eup %2633  ;;  %v1022_v5 = vmul.f32 %v2632_v63, %v808_v27 }
 0x962   :  { %v1123_v8 = vmul.f32 %v2634_v2, %v909_v30 }
 0x9c1   :  { %v1025_v0 = vpop.permute.xlu0 %1024 }
 0x9c2   :  { %v1027_v1 = vmul.f32 %v2632_v63, %v1025_v0 }
 0x9c4   :  { %1029 = vrot.lane.b32.xlu0 %v1027_v1, %s2759_s3 }
 0x9c5   :  { %v1126_v3 = vpop.permute.xlu1 %1125 }
 0x9c6   :  { %v1128_v4 = vmul.f32 %v2634_v2, %v1126_v3  ;;  %v1384_v3 = vld [vmem:[#allocation2 + $0xa] sm:$0x3] }
 0x9c8   :  { %1130 = vrot.lane.b32.xlu1 %v1128_v4, %s2759_s3 }
 0xa36   :  { %v1030_v6 = vpop.permute.xlu0 %1029 }
 0xa37   :  { %v1032_v7 = vadd.f32 %v1030_v6, %v1022_v5 }
 0xa39   :  { %2635 = vtanh.f32 %v1032_v7 }
 0xa3a   :  { %v1131_v9 = vpop.permute.xlu1 %1130 }
 0xa3b   :  { %v1133_v10 = vadd.f32 %v1131_v9, %v1123_v8 }
 0xa3d   :  { %2637 = vtanh.f32 %v1133_v10 }
 0xa43   :  { %v2636_v11 = vpop.eup %2635 }
 0xa44   :  { %1035 = vrot.lane.b32.xlu0 %v2636_v11, %s2759_s3 }
 0xa47   :  { %v2638_v12 = vpop.eup %2637 }
 0xa48   :  { %1136 = vrot.lane.b32.xlu1 %v2638_v12, %s2759_s3 }
 0xab6   :  { %v1036_v13 = vpop.permute.xlu0 %1035 }
 0xab7   :  { %v3055_v14 = vmul.f32 %v2632_v63, %v1036_v13 }
 0xab9   :  { %1164 = vrot.lane.b32.xlu0 %v3055_v14, %s2760_s6 }
 0xaba   :  { %v1137_v15 = vpop.permute.xlu1 %1136 }
 0xabb   :  { %v3059_v16 = vmul.f32 %v2634_v2, %v1137_v15 }
 0xabd   :  { %1265 = vrot.lane.b32.xlu1 %v3059_v16, %s2760_s6 }
 0xb2b   :  { %v1165_v17 = vpop.permute.xlu0 %1164 }
 0xb2c   :  { %2359 = vmatmul.mubr.msk.f32.vlgmr.msra.gmra.mrb[10].mxu0 %vm256_vm2, %v1165_v17 }
 0xb2d   :  { %2532 = vmatpush3.bf16.msra.mxu0 %v2901_v31  ;;  %2380 = vmatprep.mubr.msk.f32.mxu0 %vm2757_vm1, %v2758_v40 }
 0xb2e   :  { %2533 = vmatprep.subr.bf16.mxu0 %v2756_v32 }
 0xb2f   :  { %v1266_v19 = vpop.permute.xlu1 %1265 }
 0xb30   :  { %2370 = vmatmul.mubr.msk.f32.vlgmr.msra.gmra.mrb[10].mxu1 %vm256_vm2, %v1266_v19 }
 0xb31   :  { %2535 = vmatpush3.bf16.msra.mxu0 %v2922_v38  ;;  %2538 = vmatpush3.bf16.msra.mxu1 %v2910_v35 }
 0xb32   :  { %2539 = vmatprep.subr.bf16.mxu1 %v2756_v32  ;;  %2391 = vmatprep.mubr.msk.f32.mxu1 %vm2757_vm1, %v2758_v40 }
 0xb33   :  { %2542 = vmatprep.subr.bf16.mxu0 %v2756_v32 }
 0xb35   :  { %2541 = vmatpush3.bf16.msra.mxu1 %v2926_v39 }
 0xb36   :  { %2548 = vmatprep.subr.bf16.mxu1 %v2756_v32 }
 0xbff   :  { %v1234_v22 = vpop.f32.mrb[10].mxu0 }
 0xc00   :  { %v1238_v23 = vadd.f32 %v1234_v22, %v1162_v21  ;;  %v2360_v24 = vpop.f32.mrb[11].mxu0 }
 0xc02   :  { %2639 = vtanh.f32 %v1238_v23  ;;  %v2107_v33 = vmul.f32 -1.442695, %v1238_v23 }
 0xc03   :  { %v1335_v26 = vpop.f32.mrb[10].mxu1 }
 0xc04   :  { %v1339_v27 = vadd.f32 %v1335_v26, %v1263_v25  ;;  %v2371_v28 = vpop.f32.mrb[11].mxu1 }
 0xc06   :  { %2641 = vtanh.f32 %v1339_v27  ;;  %v2109_v34 = vmul.f32 -1.442695, %v1339_v27 }
 0xc07   :  { %2643 = vpow2.f32 %v2107_v33 }
 0xc08   :  { %2645 = vpow2.f32 %v2109_v34 }
 0xc0c   :  { %v2640_v29 = vpop.eup %2639 }
 0xc0d   :  { %1248 = vrot.lane.b32.xlu0 %v2640_v29, %s2759_s3 }
 0xc10   :  { %v2642_v30 = vpop.eup %2641 }
 0xc11   :  { %1349 = vrot.lane.b32.xlu1 %v2642_v30, %s2759_s3  ;;  %v2644_v36 = vpop.eup %2643 }
 0xc12   :  { %v1242_v41 = vadd.f32 1.0, %v2644_v36  ;;  %v2646_v43 = vpop.eup %2645 }
 0xc13   :  { %v1343_v44 = vadd.f32 1.0, %v2646_v43 }
 0xc14   :  { %2647 = vrcp.f32 %v1242_v41 }
 0xc15   :  { %2649 = vrcp.f32 %v1343_v44 }
 0xc1e   :  { %v2648_v45 = vpop.eup %2647 }
 0xc1f   :  { %v2650_v48 = vpop.eup %2649  ;;  %v1246_v51 = vmul.f32 %v2648_v45, %v1032_v7  ;;  %v1485_v7 = vld [vmem:[#allocation3 + $0x4] sm:$0x3] }
 0xc20   :  { %v1347_v54 = vmul.f32 %v2650_v48, %v1133_v10 }
 0xc7f   :  { %v1249_v46 = vpop.permute.xlu0 %1248 }
 0xc80   :  { %v1251_v47 = vmul.f32 %v2648_v45, %v1249_v46 }
 0xc82   :  { %1253 = vrot.lane.b32.xlu0 %v1251_v47, %s2759_s3 }
 0xc83   :  { %v1350_v49 = vpop.permute.xlu1 %1349 }
 0xc84   :  { %v1352_v50 = vmul.f32 %v2650_v48, %v1350_v49 }
 0xc86   :  { %1354 = vrot.lane.b32.xlu1 %v1352_v50, %s2759_s3 }
 0xcf4   :  { %v1254_v52 = vpop.permute.xlu0 %1253 }
 0xcf5   :  { %v1256_v53 = vadd.f32 %v1254_v52, %v1246_v51 }
 0xcf7   :  { %2651 = vtanh.f32 %v1256_v53 }
 0xcf8   :  { %v1355_v55 = vpop.permute.xlu1 %1354 }
 0xcf9   :  { %v1357_v56 = vadd.f32 %v1355_v55, %v1347_v54  ;;  %v1707_v54 = vld [vmem:[#allocation3 + $0x2] sm:$0x3] }
 0xcfb   :  { %2653 = vtanh.f32 %v1357_v56 }
 0xd01   :  { %v2652_v57 = vpop.eup %2651 }
 0xd02   :  { %1259 = vrot.lane.b32.xlu0 %v2652_v57, %s2759_s3 }
 0xd05   :  { %v2654_v58 = vpop.eup %2653 }
 0xd06   :  { %1360 = vrot.lane.b32.xlu1 %v2654_v58, %s2759_s3 }
 0xd74   :  { %v1260_v59 = vpop.permute.xlu0 %1259 }
 0xd75   :  { %v3083_v61 = vmul.f32 %v2648_v45, %v1260_v59 }
 0xd77   :  { %1386 = vrot.lane.b32.xlu0 %v3083_v61, %s2760_s6 }
 0xd78   :  { %v1361_v63 = vpop.permute.xlu1 %1360 }
 0xd79   :  { %v3087_v0 = vmul.f32 %v2650_v48, %v1361_v63 }
 0xd7b   :  { %1487 = vrot.lane.b32.xlu1 %v3087_v0, %s2760_s6 }
 0xde9   :  { %v1387_v1 = vpop.permute.xlu0 %1386 }
 0xdea   :  { %2381 = vmatmul.mubr.msk.f32.vlgmr.msra.gmra.mrb[12].mxu0 %vm256_vm2, %v1387_v1 }
 0xdeb   :  { %2544 = vmatpush3.bf16.msra.mxu0 %v2901_v31  ;;  %2402 = vmatprep.mubr.msk.f32.mxu0 %vm2757_vm1, %v2758_v40 }
 0xdec   :  { %2545 = vmatprep.subr.bf16.mxu0 %v2756_v32 }
 0xded   :  { %v1488_v2 = vpop.permute.xlu1 %1487 }
 0xdee   :  { %2392 = vmatmul.mubr.msk.f32.vlgmr.msra.gmra.mrb[12].mxu1 %vm256_vm2, %v1488_v2 }
 0xdef   :  { %2547 = vmatpush3.bf16.msra.mxu0 %v2922_v38  ;;  %2550 = vmatpush3.bf16.msra.mxu1 %v2910_v35 }
 0xdf0   :  { %2551 = vmatprep.subr.bf16.mxu1 %v2756_v32  ;;  %2413 = vmatprep.mubr.msk.f32.mxu1 %vm2757_vm1, %v2758_v40 }
 0xdf1   :  { %2554 = vmatprep.subr.bf16.mxu0 %v2756_v32 }
 0xdf3   :  { %2553 = vmatpush3.bf16.msra.mxu1 %v2926_v39 }
 0xdf4   :  { %2560 = vmatprep.subr.bf16.mxu1 %v2756_v32 }
 0xebd   :  { %v1456_v4 = vpop.f32.mrb[12].mxu0 }
 0xebe   :  { %v1460_v5 = vadd.f32 %v1456_v4, %v1384_v3  ;;  %v2382_v6 = vpop.f32.mrb[13].mxu0 }
 0xec0   :  { %2655 = vtanh.f32 %v1460_v5  ;;  %v2111_v13 = vmul.f32 -1.442695, %v1460_v5 }
 0xec1   :  { %v1557_v8 = vpop.f32.mrb[12].mxu1 }
 0xec2   :  { %v1561_v9 = vadd.f32 %v1557_v8, %v1485_v7  ;;  %v2393_v10 = vpop.f32.mrb[13].mxu1 }
 0xec4   :  { %2657 = vtanh.f32 %v1561_v9  ;;  %v2113_v15 = vmul.f32 -1.442695, %v1561_v9 }
 0xec5   :  { %2659 = vpow2.f32 %v2111_v13 }
 0xec6   :  { %2661 = vpow2.f32 %v2113_v15 }
 0xeca   :  { %v2656_v11 = vpop.eup %2655 }
 0xecb   :  { %1470 = vrot.lane.b32.xlu0 %v2656_v11, %s2759_s3 }
 0xece   :  { %v2658_v12 = vpop.eup %2657 }
 0xecf   :  { %1571 = vrot.lane.b32.xlu1 %v2658_v12, %s2759_s3  ;;  %v2660_v17 = vpop.eup %2659 }
 0xed0   :  { %v1464_v19 = vadd.f32 1.0, %v2660_v17  ;;  %v2662_v21 = vpop.eup %2661 }
 0xed1   :  { %v1565_v22 = vadd.f32 1.0, %v2662_v21 }
 0xed2   :  { %2663 = vrcp.f32 %v1464_v19 }
 0xed3   :  { %2665 = vrcp.f32 %v1565_v22  ;;  %v2092_v22 = vld [vmem:[%s3294_s7] ss:$0 sm:$0xff]  ;;  %s2762_s7 = smov [#allocation8]  }
 0xed4   :  { %s2075_s15 = sshll.u32 %s2762_s7, 4  ;;  %s2076_s15 = int_to_ptr.vmem [resolvable:$true] %s2075_s15 }
 0xed5   :  { %s2729_s16 = scalar_lea.vmem %s2076_s15, 32  ;;  %p2734_p9 = scmp.lt.s32.totalorder %s2076_s15, %s2076_s15 }
 0xed6   :  { %p2730_p8 = scmp.ne.s32.totalorder %s2076_s15, %s2729_s16  ;;  %p2735_p10 = scmp.lt.s32.totalorder %s2729_s16, %s2729_s16 }
 0xed8   :  { %p2736_p11 = por %p2735_p10, %p2734_p9 }
 0xeda   :  { %p2737_p12 = pnand %p2736_p11, %p2730_p8 }
 0xedc   :  { %v2664_v23 = vpop.eup %2663 }
 0xedd   :  { %v2666_v26 = vpop.eup %2665  ;;  %v1468_v29 = vmul.f32 %v2664_v23, %v1256_v53 }
 0xede   :  { %v1569_v34 = vmul.f32 %v2666_v26, %v1357_v56 }
 0xf3d   :  { %v1471_v24 = vpop.permute.xlu0 %1470 }
 0xf3e   :  { %v1473_v25 = vmul.f32 %v2664_v23, %v1471_v24 }
 0xf40   :  { %1475 = vrot.lane.b32.xlu0 %v1473_v25, %s2759_s3 }
 0xf41   :  { %v1572_v27 = vpop.permute.xlu1 %1571 }
 0xf42   :  { %v1574_v28 = vmul.f32 %v2666_v26, %v1572_v27 }
 0xf44   :  { %1576 = vrot.lane.b32.xlu1 %v1574_v28, %s2759_s3  ;;  %v2093_v28 = vld [vmem:[#allocation5] ss:$0 sm:$0xff] }
 0xfb2   :  { %v1476_v30 = vpop.permute.xlu0 %1475 }
 0xfb3   :  { %v1478_v33 = vadd.f32 %v1476_v30, %v1468_v29 }
 0xfb5   :  { %2667 = vtanh.f32 %v1478_v33 }
 0xfb6   :  { %v1577_v36 = vpop.permute.xlu1 %1576 }
 0xfb7   :  { %v1579_v41 = vadd.f32 %v1577_v36, %v1569_v34 }
 0xfb9   :  { %2669 = vtanh.f32 %v1579_v41 }
 0xfbf   :  { %v2668_v43 = vpop.eup %2667 }
 0xfc0   :  { %1481 = vrot.lane.b32.xlu0 %v2668_v43, %s2759_s3 }
 0xfc3   :  { %v2670_v44 = vpop.eup %2669 }
 0xfc4   :  { %1582 = vrot.lane.b32.xlu1 %v2670_v44, %s2759_s3 }
0x1032   :  { %v1482_v45 = vpop.permute.xlu0 %1481 }
0x1033   :  { %v3111_v46 = vmul.f32 %v2664_v23, %v1482_v45 }
0x1035   :  { %1608 = vrot.lane.b32.xlu0 %v3111_v46, %s2760_s6 }
0x1036   :  { %v1583_v47 = vpop.permute.xlu1 %1582 }
0x1037   :  { %v3115_v48 = vmul.f32 %v2666_v26, %v1583_v47 }
0x1039   :  { %1709 = vrot.lane.b32.xlu1 %v3115_v48, %s2760_s6 }
0x10a7   :  { %v1609_v49 = vpop.permute.xlu0 %1608 }
0x10a8   :  { %2403 = vmatmul.mubr.msk.f32.vlgmr.msra.gmra.mrb[14].mxu0 %vm256_vm2, %v1609_v49 }
0x10a9   :  { %2556 = vmatpush3.bf16.msra.mxu0 %v2901_v31  ;;  %2424 = vmatprep.mubr.msk.f32.mxu0 %vm2757_vm1, %v2758_v40  ;;  %v1606_v31 = vld [vmem:[#allocation2 + $0xc] sm:$0x3] }
0x10aa   :  { %2557 = vmatprep.subr.bf16.mxu0 %v2756_v32 }
0x10ab   :  { %v1710_v50 = vpop.permute.xlu1 %1709 }
0x10ac   :  { %2414 = vmatmul.mubr.msk.f32.vlgmr.msra.gmra.mrb[14].mxu1 %vm256_vm2, %v1710_v50 }
0x10ad   :  { %2559 = vmatpush3.bf16.msra.mxu0 %v2922_v38  ;;  %2562 = vmatpush3.bf16.msra.mxu1 %v2910_v35 }
0x10ae   :  { %2563 = vmatprep.subr.bf16.mxu1 %v2756_v32  ;;  %2435 = vmatprep.mubr.msk.f32.mxu1 %vm2757_vm1, %v2758_v40 }
0x10b1   :  { %2565 = vmatpush3.bf16.msra.mxu1 %v2926_v39 }
0x117b   :  { %v1678_v51 = vpop.f32.mrb[14].mxu0 }
0x117c   :  { %v1682_v52 = vadd.f32 %v1678_v51, %v1606_v31  ;;  %v2404_v53 = vpop.f32.mrb[15].mxu0 }
0x117e   :  { %2671 = vtanh.f32 %v1682_v52  ;;  %v2115_v32 = vmul.f32 -1.442695, %v1682_v52  ;;  %v1828_v52 = vld [vmem:[#allocation2 + $0xe] sm:$0x3] }
0x117f   :  { %v1779_v55 = vpop.f32.mrb[14].mxu1 }
0x1180   :  { %v1783_v56 = vadd.f32 %v1779_v55, %v1707_v54  ;;  %v2415_v57 = vpop.f32.mrb[15].mxu1 }
0x1181   :  { %v253_v57 = vlaneseq }
0x1182   :  { %2673 = vtanh.f32 %v1783_v56  ;;  %v2117_v40 = vmul.f32 -1.442695, %v1783_v56 }
0x1183   :  { %2675 = vpow2.f32 %v2115_v32 }
0x1184   :  { %2677 = vpow2.f32 %v2117_v40 }
0x1188   :  { %v2672_v38 = vpop.eup %2671 }
0x1189   :  { %1692 = vrot.lane.b32.xlu0 %v2672_v38, %s2759_s3  ;;  %v3182_v38 = vand.u32 127, %v253_v57 }
0x118b   :  { %vm484_vm4 = vcmp.eq.s32.totalorder %v3182_v38, 0  ;;  %vm487_vm5 = vcmp.eq.s32.totalorder %v3182_v38, 7  ;;  %vm708_vm6 = vcmp.eq.s32.totalorder %v3182_v38, 1  ;;  %vm711_vm7 = vcmp.eq.s32.totalorder %v3182_v38, 6 }
0x118c   :  { %v2674_v35 = vpop.eup %2673  ;;  %vm932_vm8 = vcmp.eq.s32.totalorder %v3182_v38, 2  ;;  %vm935_vm9 = vcmp.eq.s32.totalorder %v3182_v38, 5  ;;  %vm1156_vm10 = vcmp.eq.s32.totalorder %v3182_v38, 3  ;;  %vm1159_vm11 = vcmp.eq.s32.totalorder %v3182_v38, 4 }
0x118d   :  { %1793 = vrot.lane.b32.xlu1 %v2674_v35, %s2759_s3  ;;  %v2676_v39 = vpop.eup %2675 }
0x118e   :  { %v1686_v58 = vadd.f32 1.0, %v2676_v39  ;;  %v2678_v59 = vpop.eup %2677 }
0x118f   :  { %v1787_v63 = vadd.f32 1.0, %v2678_v59 }
0x1190   :  { %2679 = vrcp.f32 %v1686_v58 }
0x1191   :  { %2681 = vrcp.f32 %v1787_v63 }
0x119a   :  { %v2680_v1 = vpop.eup %2679 }
0x119b   :  { %v2682_v4 = vpop.eup %2681  ;;  %v1690_v7 = vmul.f32 %v2680_v1, %v1478_v33 }
0x119c   :  { %v1791_v10 = vmul.f32 %v2682_v4, %v1579_v41 }
0x11fb   :  { %v1693_v2 = vpop.permute.xlu0 %1692 }
0x11fc   :  { %v1695_v3 = vmul.f32 %v2680_v1, %v1693_v2 }
0x11fe   :  { %1697 = vrot.lane.b32.xlu0 %v1695_v3, %s2759_s3 }
0x11ff   :  { %v1794_v5 = vpop.permute.xlu1 %1793 }
0x1200   :  { %v1796_v6 = vmul.f32 %v2682_v4, %v1794_v5 }
0x1202   :  { %1798 = vrot.lane.b32.xlu1 %v1796_v6, %s2759_s3 }
0x1270   :  { %v1698_v8 = vpop.permute.xlu0 %1697 }
0x1271   :  { %v3135_v9 = vadd.f32 %v1698_v8, %v1690_v7 }
0x1273   :  { %2683 = vtanh.f32 %v3135_v9 }
0x1274   :  { %v1799_v11 = vpop.permute.xlu1 %1798 }
0x1275   :  { %v3138_v12 = vadd.f32 %v1799_v11, %v1791_v10 }
0x1277   :  { %2685 = vtanh.f32 %v3138_v12 }
0x127d   :  { %v2684_v13 = vpop.eup %2683 }
0x127e   :  { %1703 = vrot.lane.b32.xlu0 %v2684_v13, %s2759_s3 }
0x1281   :  { %v2686_v15 = vpop.eup %2685 }
0x1282   :  { %1804 = vrot.lane.b32.xlu1 %v2686_v15, %s2759_s3 }
0x12f0   :  { %v1704_v17 = vpop.permute.xlu0 %1703 }
0x12f1   :  { %v3143_v19 = vmul.f32 %v2680_v1, %v1704_v17 }
0x12f3   :  { %1830 = vrot.lane.b32.xlu0 %v3143_v19, %s2760_s6 }
0x12f4   :  { %v1805_v21 = vpop.permute.xlu1 %1804 }
0x12f5   :  { %v3150_v23 = vmul.f32 %v2682_v4, %v1805_v21 }
0x12f7   :  { %1931 = vrot.lane.b32.xlu1 %v3150_v23, %s2760_s6  ;;  %456 = vrot.lane.b32.xlu0 %v2092_v22, %s2760_s6 }
0x1365   :  { %v1831_v24 = vpop.permute.xlu0 %1830 }
0x1366   :  { %2425 = vmatmul.mubr.msk.f32.vlgmr.msra.gmra.mrb[16].mxu0 %vm256_vm2, %v1831_v24 }
0x1369   :  { %v1932_v25 = vpop.permute.xlu1 %1931  ;;  %v3156_v26 = vpop.permute.xlu0 %456 }
0x136a   :  { %2436 = vmatmul.mubr.msk.f32.vlgmr.msra.gmra.mrb[16].mxu1 %vm256_vm2, %v1932_v25  ;;  %v459_v27 = vmul.f32 %v3156_v26, %v2969_v18  ;;  %v692_v18 = vmul.f32 %v2999_v60, %v3156_v26  ;;  %v916_v56 = vmul.f32 %v3027_v37, %v3156_v26  ;;  %v1140_v15 = vmul.f32 %v3055_v14, %v3156_v26 }
0x136b   :  { %v1364_v14 = vmul.f32 %v3083_v61, %v3156_v26 }
0x136c   :  { %461 = vrot.lane.b32.xlu1 %v459_v27, %s2760_s6 }
0x1370   :  { %473 = vrot.lane.b32.xlu1 %v2093_v28, %s2760_s6 }
0x13de   :  { %v462_v29 = vpop.permute.xlu1 %461 }
0x13df   :  { %v465_v30 = vsel %vm464_vm3, %v462_v29, 0.0 }
0x13e0   :  { %466 = vadd.xlane.f32.xlu0 %v465_v30 }
0x13e2   :  { %v3164_v33 = vpop.permute.xlu1 %473 }
0x13e3   :  { %v476_v34 = vmul.f32 %v3164_v33, %v2973_v20  ;;  %v1929_v20 = vld [vmem:[#allocation3] sm:$0x3]  ;;  %v700_v60 = vmul.f32 %v3003_v62, %v3164_v33  ;;  %v924_v13 = vmul.f32 %v3031_v42, %v3164_v33  ;;  %v1148_v42 = vmul.f32 %v3059_v16, %v3164_v33 }
0x13e4   :  { %v1372_v25 = vmul.f32 %v3087_v0, %v3164_v33 }
0x13e5   :  { %478 = vrot.lane.b32.xlu1 %v476_v34, %s2760_s6 }
0x13f6   :  { %694 = vrot.lane.b32.xlu0 %v692_v18, %s2760_s6 }
0x1439   :  { %v1900_v36 = vpop.f32.mrb[16].mxu0 }
0x143a   :  { %v2426_v41 = vpop.f32.mrb[17].mxu0  ;;  %v1904_v53 = vadd.f32 %v1900_v36, %v1828_v52 }
0x143c   :  { %v2119_v63 = vmul.f32 -1.442695, %v1904_v53 }
0x143d   :  { %v2001_v43 = vpop.f32.mrb[16].mxu1 }
0x143e   :  { %v2437_v44 = vpop.f32.mrb[17].mxu1  ;;  %v2005_v51 = vadd.f32 %v2001_v43, %v1929_v20 }
0x1440   :  { %2687 = vtanh.f32 %v2005_v51  ;;  %v2121_v3 = vmul.f32 -1.442695, %v2005_v51 }
0x1441   :  { %2689 = vtanh.f32 %v1904_v53  ;;  %v1586_v53 = vmul.f32 %v3111_v46, %v3156_v26 }
0x1442   :  { %2691 = vpow2.f32 %v2119_v63 }
0x1443   :  { %2693 = vpow2.f32 %v2121_v3 }
0x144a   :  { %v2688_v54 = vpop.eup %2687 }
0x144b   :  { %v2690_v55 = vpop.eup %2689 }
0x144c   :  { %v2692_v7 = vpop.eup %2691 }
0x144d   :  { %v1908_v8 = vadd.f32 1.0, %v2692_v7  ;;  %v2694_v10 = vpop.eup %2693  ;;  %v1808_v7 = vmul.f32 %v3143_v19, %v3156_v26 }
0x144e   :  { %v2009_v11 = vadd.f32 1.0, %v2694_v10 }
0x144f   :  { %2695 = vrcp.f32 %v1908_v8  ;;  %v2761_v8 = vmov 0  }
0x1450   :  { %2697 = vrcp.f32 %v2009_v11  ;;  %2574 = vset.pattern.permute.xlu0 %v2761_v8 }
0x1457   :  { %v479_v45 = vpop.permute.xlu1 %478 }
0x1458   :  { %v481_v47 = vsel %vm464_vm3, %v479_v45, 0.0 }
0x1459   :  { %482 = vadd.xlane.f32.xlu1 %v481_v47  ;;  %v2696_v17 = vpop.eup %2695 }
0x145a   :  { %v3202_v22 = vpop.eup %2697  ;;  %v1912_v41 = vmul.f32 %v2696_v17, %v3135_v9 }
0x145b   :  { %v2013_v51 = vmul.f32 %v3202_v22, %v3138_v12  ;;  %v1816_v12 = vmul.f32 %v3150_v23, %v3164_v33 }
0x146d   :  { %v467_v49 = vpop.xlane.xlu0 %466 }
0x146e   :  { %v485_v35 = vsel %vm484_vm4, %v467_v49, 0.0 }
0x1471   :  { %v695_v50 = vpop.permute.xlu0 %694 }
0x1472   :  { %v697_v31 = vsel %vm464_vm3, %v695_v50, 0.0 }
0x1473   :  { %698 = vadd.xlane.f32.xlu1 %v697_v31 }
0x1484   :  { %702 = vrot.lane.b32.xlu1 %v700_v60, %s2760_s6 }
0x1488   :  { %2015 = vrot.lane.b32.xlu1 %v2688_v54, %s2759_s3 }
0x148c   :  { %1914 = vrot.lane.b32.xlu1 %v2690_v55, %s2759_s3  ;;  %v1594_v55 = vmul.f32 %v3115_v48, %v3164_v33 }
0x1490   :  { %918 = vrot.lane.b32.xlu1 %v916_v56, %s2760_s6 }
0x14e6   :  { %v483_v62 = vpop.xlane.xlu1 %482 }
0x14e7   :  { %v488_v32 = vsel %vm487_vm5, %v483_v62, 0.0 }
0x14e8   :  { %v489_v40 = vadd.f32 %v488_v32, %v485_v35 }
0x1500   :  { %v699_v37 = vpop.xlane.xlu1 %698 }
0x1501   :  { %v709_v39 = vsel %vm708_vm6, %v699_v37, 0.0 }
0x1502   :  { %v710_v58 = vadd.f32 %v709_v39, %v489_v40 }
0x1504   :  { %v703_v59 = vpop.permute.xlu1 %702 }
0x1505   :  { %v705_v1 = vsel %vm464_vm3, %v703_v59, 0.0 }
0x1506   :  { %706 = vadd.xlane.f32.xlu0 %v705_v1 }
0x1508   :  { %v2016_v2 = vpop.permute.xlu1 %2015 }
0x1509   :  { %v2018_v24 = vmul.f32 %v3202_v22, %v2016_v2 }
0x150c   :  { %v1915_v4 = vpop.permute.xlu1 %1914 }
0x150d   :  { %v1917_v21 = vmul.f32 %v2696_v17, %v1915_v4 }
0x1510   :  { %v919_v5 = vpop.permute.xlu1 %918 }
0x1511   :  { %v921_v6 = vsel %vm464_vm3, %v919_v5, 0.0 }
0x1512   :  { %922 = vadd.xlane.f32.xlu1 %v921_v6 }
0x151c   :  { %926 = vrot.lane.b32.xlu0 %v924_v13, %s2760_s6 }
0x1523   :  { %1142 = vrot.lane.b32.xlu1 %v1140_v15, %s2760_s6 }
0x1527   :  { %1919 = vrot.lane.b32.xlu1 %v1917_v21, %s2759_s3 }
0x152b   :  { %2020 = vrot.lane.b32.xlu1 %v2018_v24, %s2759_s3 }
0x152f   :  { %1150 = vrot.lane.b32.xlu1 %v1148_v42, %s2760_s6 }
0x1533   :  { %1366 = vrot.lane.b32.xlu1 %v1364_v14, %s2760_s6 }
0x1537   :  { %1374 = vrot.lane.b32.xlu1 %v1372_v25, %s2760_s6 }
0x1593   :  { %v707_v27 = vpop.xlane.xlu0 %706 }
0x1594   :  { %v712_v28 = vsel %vm711_vm7, %v707_v27, 0.0 }
0x1595   :  { %v713_v29 = vadd.f32 %v712_v28, %v710_v58 }
0x1597   :  { %v927_v16 = vpop.permute.xlu0 %926 }
0x1598   :  { %v929_v30 = vsel %vm464_vm3, %v927_v16, 0.0 }
0x1599   :  { %930 = vadd.xlane.f32.xlu0 %v929_v30 }
0x159f   :  { %v923_v61 = vpop.xlane.xlu1 %922 }
0x15a0   :  { %v933_v34 = vsel %vm932_vm8, %v923_v61, 0.0 }
0x15a1   :  { %v934_v0 = vadd.f32 %v933_v34, %v713_v29  ;;  %v2122_v29 = vld [vmem:[#allocation4] ss:$0 sm:$0xff] }
0x15a3   :  { %v1143_v18 = vpop.permute.xlu1 %1142 }
0x15a4   :  { %v1145_v36 = vsel %vm464_vm3, %v1143_v18, 0.0 }
0x15a5   :  { %1146 = vadd.xlane.f32.xlu0 %v1145_v36 }
0x15a7   :  { %v1920_v43 = vpop.permute.xlu1 %1919 }
0x15a8   :  { %v1922_v44 = vadd.f32 %v1920_v43, %v1912_v41 }
0x15aa   :  { %2699 = vtanh.f32 %v1922_v44 }
0x15ab   :  { %v2021_v45 = vpop.permute.xlu1 %2020 }
0x15ac   :  { %v2023_v52 = vadd.f32 %v2021_v45, %v2013_v51 }
0x15ae   :  { %2701 = vtanh.f32 %v2023_v52 }
0x15af   :  { %v1151_v47 = vpop.permute.xlu1 %1150 }
0x15b0   :  { %v1153_v49 = vsel %vm464_vm3, %v1151_v47, 0.0 }
0x15b1   :  { %1154 = vadd.xlane.f32.xlu0 %v1153_v49 }
0x15b3   :  { %v1367_v50 = vpop.permute.xlu1 %1366 }
0x15b4   :  { %v2700_v31 = vpop.eup %2699  ;;  %v1369_v20 = vsel %vm464_vm3, %v1367_v50, 0.0 }
0x15b5   :  { %1370 = vadd.xlane.f32.xlu0 %v1369_v20  ;;  %1925 = vrot.lane.b32.xlu1 %v2700_v31, %s2759_s3 }
0x15b7   :  { %v1375_v60 = vpop.permute.xlu1 %1374 }
0x15b8   :  { %v2702_v9 = vpop.eup %2701  ;;  %v1377_v54 = vsel %vm464_vm3, %v1375_v60, 0.0 }
0x15cb   :  { %2026 = vrot.lane.b32.xlu0 %v2702_v9, %s2759_s3 }
0x15cf   :  { %1588 = vrot.lane.b32.xlu0 %v1586_v53, %s2760_s6 }
0x15d9   :  { %1378 = vadd.xlane.f32.xlu1 %v1377_v54 }
0x15ea   :  { %1596 = vrot.lane.b32.xlu1 %v1594_v55, %s2760_s6 }
0x15ee   :  { %1818 = vrot.lane.b32.xlu1 %v1816_v12, %s2760_s6 }
0x1626   :  { %v931_v56 = vpop.xlane.xlu0 %930 }
0x1627   :  { %v936_v46 = vsel %vm935_vm9, %v931_v56, 0.0  ;;  %v1926_v57 = vpop.permute.xlu1 %1925 }
0x1628   :  { %v937_v62 = vadd.f32 %v936_v46, %v934_v0  ;;  %v1928_v35 = vmul.f32 %v2696_v17, %v1926_v57 }
0x162a   :  { %v2030_v32 = vmul.f32 %v1928_v35, %v3156_v26 }
0x162c   :  { %2032 = vrot.lane.b32.xlu1 %v2030_v32, %s2760_s6 }
0x1632   :  { %v1147_v48 = vpop.xlane.xlu0 %1146 }
0x1633   :  { %v1157_v23 = vsel %vm1156_vm10, %v1147_v48, 0.0 }
0x1634   :  { %v1158_v40 = vadd.f32 %v1157_v23, %v937_v62 }
0x163e   :  { %v1155_v37 = vpop.xlane.xlu0 %1154 }
0x163f   :  { %v1160_v39 = vsel %vm1159_vm11, %v1155_v37, 0.0 }
0x1640   :  { %v1161_v58 = vadd.f32 %v1160_v39, %v1158_v40 }
0x1642   :  { %v1371_v59 = vpop.xlane.xlu0 %1370 }
0x1643   :  { %v1380_v63 = vsel %vm1159_vm11, %v1371_v59, 0.0 }
0x1644   :  { %v1381_v1 = vadd.f32 %v1380_v63, %v1161_v58 }
0x1646   :  { %v2027_v2 = vpop.permute.xlu0 %2026 }
0x1647   :  { %v2029_v3 = vmul.f32 %v3202_v22, %v2027_v2 }
0x1649   :  { %v2038_v4 = vmul.f32 %v2029_v3, %v3164_v33 }
0x164a   :  { %v1589_v5 = vpop.permute.xlu0 %1588 }
0x164b   :  { %2040 = vrot.lane.b32.xlu1 %v2038_v4, %s2760_s6  ;;  %v1591_v6 = vsel %vm464_vm3, %v1589_v5, 0.0 }
0x164c   :  { %1592 = vadd.xlane.f32.xlu0 %v1591_v6 }
0x1662   :  { %1810 = vrot.lane.b32.xlu0 %v1808_v7, %s2760_s6 }
0x1666   :  { %v1379_v10 = vpop.xlane.xlu1 %1378 }
0x1667   :  { %v1382_v11 = vsel %vm1156_vm10, %v1379_v10, 0.0 }
0x1668   :  { %v1383_v13 = vadd.f32 %v1382_v11, %v1381_v1 }
0x166a   :  { %v1597_v15 = vpop.permute.xlu1 %1596 }
0x166b   :  { %v1599_v33 = vsel %vm464_vm3, %v1597_v15, 0.0 }
0x166e   :  { %v1819_v17 = vpop.permute.xlu1 %1818 }
0x166f   :  { %1600 = vadd.xlane.f32.xlu1 %v1599_v33  ;;  %v1821_v21 = vsel %vm464_vm3, %v1819_v17, 0.0 }
0x1673   :  { %1822 = vadd.xlane.f32.xlu1 %v1821_v21 }
0x169e   :  { %v2033_v22 = vpop.permute.xlu1 %2032 }
0x169f   :  { %v2035_v28 = vsel %vm464_vm3, %v2033_v22, 0.0 }
0x16bd   :  { %v2041_v24 = vpop.permute.xlu1 %2040 }
0x16be   :  { %v2043_v19 = vsel %vm464_vm3, %v2041_v24, 0.0 }
0x16bf   :  { %2044 = vadd.xlane.f32.xlu1 %v2043_v19 }
0x16d9   :  { %v1593_v26 = vpop.xlane.xlu0 %1592 }
0x16da   :  { %v1602_v42 = vsel %vm935_vm9, %v1593_v26, 0.0 }
0x16db   :  { %v1603_v14 = vadd.f32 %v1602_v42, %v1383_v13 }
0x16dd   :  { %v1811_v25 = vpop.permute.xlu0 %1810 }
0x16de   :  { %v1813_v27 = vsel %vm464_vm3, %v1811_v25, 0.0 }
0x16df   :  { %1814 = vadd.xlane.f32.xlu0 %v1813_v27 }
0x16e3   :  { %2036 = vadd.xlane.f32.xlu0 %v2035_v28 }
0x16f9   :  { %2057 = vperm.xlu0 %2574, %v2122_v29  }
0x16fc   :  { %v1601_v16 = vpop.xlane.xlu1 %1600 }
0x16fd   :  { %v1604_v30 = vsel %vm932_vm8, %v1601_v16, 0.0 }
0x16fe   :  { %v1605_v61 = vadd.f32 %v1604_v30, %v1603_v14 }
0x1700   :  { %v1823_v34 = vpop.xlane.xlu1 %1822 }
0x1701   :  { %v1826_v41 = vsel %vm708_vm6, %v1823_v34, 0.0 }
0x174c   :  { %v2045_v47 = vpop.xlane.xlu1 %2044 }
0x174d   :  { %v2048_v50 = vsel %vm484_vm4, %v2045_v47, 0.0 }
0x176c   :  { %v1815_v0 = vpop.xlane.xlu0 %1814 }
0x176d   :  { %v1824_v18 = vsel %vm711_vm7, %v1815_v0, 0.0 }
0x176e   :  { %v1825_v36 = vadd.f32 %v1824_v18, %v1605_v61 }
0x1770   :  { %v2037_v43 = vpop.xlane.xlu0 %2036  ;;  %v1827_v44 = vadd.f32 %v1826_v41, %v1825_v36 }
0x1771   :  { %v2046_v45 = vsel %vm487_vm5, %v2037_v43, 0.0 }
0x1772   :  { %v2047_v49 = vadd.f32 %v2046_v45, %v1827_v44 }
0x1774   :  { %v2049_v31 = vadd.f32 %v2048_v50, %v2047_v49 }
0x1778   :  { %v2058_v20 = vpop.permute.xlu0 %2057 }
0x1779   :  { %v2060_v51 = vadd.f32 %v2058_v20, %v2049_v31 }
0x177b   :  { %v2123_v52 = vmul.f32 -1.442695, %v2060_v51 }
0x177d   :  { %2703 = vpow2.f32 %v2123_v52 }
0x1787   :  { %v2704_v9 = vpop.eup %2703 }
0x1788   :  { %v2064_v53 = vadd.f32 1.0, %v2704_v9 }
0x178a   :  { %2705 = vrcp.f32 %v2064_v53 }
0x1794   :  { %v2706_v60 = vpop.eup %2705 }
0x1795   :  { %2068 = vst.msk [vmem:[#allocation8] sm:$0x3] %vm2067_vm12, %v2706_v60 }
0x1796   :  { %2740 = shalt.err (!%p2737_p12)
}
0x1797   :  { %s2741_s18 = scalar_lea.hbm %s3297_s10, 32 }
0x1798   :  { %p2742_p13 = scmp.ne.s32.totalorder %s3297_s10, %s2741_s18  ;;  %p2745_p0 = scmp.lt.u32.totalorder %s2741_s18, %s3297_s10 }
0x179a   :  { %p2747_p1 = pnand %p2745_p0, %p2742_p13 }
0x179c   :  { %2750 = shalt.err (!%p2747_p1)
}
0x179d   :  { %2078 = dma.vmem_to_hbm [thread:$0]  %s2076_s15, 32, %s3297_s10, [#allocation7]  }
0x179e   :  { %2753 = dma.done.wait [#allocation7], 32  }
0x179f   :  { %2754 = vsyncadd [#allocation7], 4294967264 }
0x17a0   :  { %2082 = vsyncpa [#allocation6], 1 }
0x17a1   :  { %2083 = vsyncpa [#allocation7], 1 }

</bundles_post_ra>
